<compile_context>
chip_gen: v6e
topology: v6e:2x2x1
jax: 0.10.0
libtpu: 0.0.40
codegen_flags: <defaults>
</compile_context>

<pallas_src>
import functools

import numpy as np

import jax
import jax.numpy as jnp
from jax.experimental import pallas as pl
from jax.experimental.pallas import tpu as pltpu

# ----------------------------- small "config" -------------------------------
# (dim, kernel, stride) per conv layer of the feature extractor
CONV_LAYERS = [(24, 10, 5), (24, 3, 2), (24, 2, 2)]
EMBED = 32          # encoder_embed_dim
HEADS = 4
FFN = 64            # encoder_ffn_embed_dim
N_LAYERS = 3        # encoder layers available
OUTPUT_LAYER = 2    # extract_features(..., output_layer=2) -> run layers 0..1
POS_K = 5           # pos_conv kernel (odd -> SamePad is a no-op)
POS_GROUPS = 2      # pos_conv groups
SAMPLE_RATE = 16000
EPS = 1e-5

_GELU_C = 0.7978845608028654  # sqrt(2/pi)


# ------------------------------ kernel helpers ------------------------------
def _gelu(y):
    # TODO(synk): PyTorch/fairseq use exact erf-GELU; tanh approximation used here.
    return 0.5 * y * (1.0 + jnp.tanh(_GELU_C * (y + 0.044715 * y * y * y)))


def _layernorm(x, g, b, eps):
    mean = jnp.mean(x, axis=-1, keepdims=True)
    var = jnp.mean((x - mean) * (x - mean), axis=-1, keepdims=True)  # population var
    return (x - mean) * jax.lax.rsqrt(var + eps) * g + b


def _tap_conv(h, w):
    """Stride-1 'valid' conv as k shifted dots.
    h: (T_in, C) value; w: (k*C, C_out) value, rows blocked per tap j."""
    t_in, c = h.shape
    k = w.shape[0] // c
    length = t_in - k + 1
    acc = jnp.dot(h[0:length, :], w[0:c, :], preferred_element_type=jnp.float32)
    for j in range(1, k):
        acc = acc + jnp.dot(h[j:j + length, :], w[j * c:(j + 1) * c, :],
                            preferred_element_type=jnp.float32)
    return acc                                       # (length, C_out)


# ------------------------------ Pallas kernels ------------------------------
def _feat_kernel(a_ref, w1_ref, gng_ref, gnb_ref, w2_ref, sel2_ref, w3_ref, sel3_ref,
                 lng_ref, lnb_ref, pw_ref, pb_ref, o_ref, *, eps):
    """Conv feature extractor + feature LayerNorm + post_extract_proj, fully fused."""
    a2d = a_ref[...]                                 # (t1 + n_shift - 1, stride1)
    k1, c1 = w1_ref.shape
    s1 = a2d.shape[1]
    n_shift = k1 // s1
    t1 = a2d.shape[0] - (n_shift - 1)

    # ---- conv1 (in_ch=1, stride=s1): in-kernel im2col from shifted column blocks ----
    patches = jnp.concatenate([a2d[r:r + t1, :] for r in range(n_shift)], axis=1)  # (t1,k1)
    y = jnp.dot(patches, w1_ref[...], preferred_element_type=jnp.float32)           # (t1,c1)
    # GroupNorm(c1, c1): per-channel normalization over time.
    mu = jnp.mean(y, axis=0, keepdims=True)
    var = jnp.mean((y - mu) * (y - mu), axis=0, keepdims=True)
    h = _gelu((y - mu) * jax.lax.rsqrt(var + eps) * gng_ref[...] + gnb_ref[...])

    # ---- conv2 / conv3: stride-1 tap dots + 0/1 selection matmul (stride-2 downsample) ----
    h = _gelu(jnp.dot(sel2_ref[...], _tap_conv(h, w2_ref[...]),
                      preferred_element_type=jnp.float32))                          # (t2,c)
    h = _gelu(jnp.dot(sel3_ref[...], _tap_conv(h, w3_ref[...]),
                      preferred_element_type=jnp.float32))                          # (t3,c)

    # ---- feature LayerNorm + post_extract_proj ----
    h = _layernorm(h, lng_ref[...], lnb_ref[...], eps)
    o_ref[...] = (jnp.dot(h, pw_ref[...], preferred_element_type=jnp.float32)
                  + pb_ref[...]).astype(o_ref.dtype)


def _encoder_kernel(x_ref, posw_ref, posb_ref, encg_ref, encb_ref,
                    wqkv_ref, bqkv_ref, wo_ref, bo_ref, g1_ref, be1_ref,
                    w1_ref, b1_ref, w2_ref, b2_ref, g2_ref, be2_ref,
                    o_ref, attn_ref, *, heads, groups, pos_k, eps):
    """pos_conv + encoder LayerNorm + all transformer layers (post-LN), fully fused."""
    x = x_ref[...]                                   # (T, E)
    t, e = x.shape
    gc = e // groups
    pad = pos_k // 2

    # ---- grouped pos_conv: per-group tap dots on a zero-padded view (no block-diag) ----
    zpad = jnp.zeros((pad, e), jnp.float32)
    xp = jnp.concatenate([zpad, x, zpad], axis=0)     # (T + 2*pad, E)
    for g in range(groups):
        acc = jnp.zeros((t, gc), jnp.float32)
        for j in range(pos_k):
            xs = xp[j:j + t, g * gc:(g + 1) * gc]                         # (T, gc)
            wjg = posw_ref[(j * groups + g) * gc:(j * groups + g + 1) * gc, :]  # (gc, gc)
            acc = acc + jnp.dot(xs, wjg, preferred_element_type=jnp.float32)
        attn_ref[:, g * gc:(g + 1) * gc] = acc        # lane-contiguous group writeback
    pos = _gelu(attn_ref[...] + posb_ref[...])
    # TODO(synk): spk_emb is None in the wrapper, so speaker-conditional LayerNorm
    # reduces to plain LayerNorm (layer_norm_first=False path).
    x = _layernorm(x + pos, encg_ref[...], encb_ref[...], eps)

    # ---- transformer layers (post-LN), statically unrolled ----
    n_layers = wqkv_ref.shape[0]
    dh = e // heads
    scale = 1.0 / (dh ** 0.5)
    for i in range(n_layers):
        qkv = (jnp.dot(x, wqkv_ref[i], preferred_element_type=jnp.float32)
               + bqkv_ref[i])                                           # (T, 3E)
        for h in range(heads):
            q = qkv[:, h * dh:(h + 1) * dh] * scale
            k = qkv[:, e + h * dh:e + (h + 1) * dh]
            v = qkv[:, 2 * e + h * dh:2 * e + (h + 1) * dh]
            s = jax.lax.dot_general(q, k, (((1,), (1,)), ((), ())),
                                    preferred_element_type=jnp.float32)  # (T, T)
            s = s - jnp.max(s, axis=-1, keepdims=True)
            p = jnp.exp(s)
            p = p * pl.reciprocal(jnp.sum(p, axis=-1, keepdims=True), approx=True)
            # per-head PV result written lane-contiguously (no XLU concatenate)
            attn_ref[:, h * dh:(h + 1) * dh] = jnp.dot(
                p, v, preferred_element_type=jnp.float32)
        a = (jnp.dot(attn_ref[...], wo_ref[i], preferred_element_type=jnp.float32)
             + bo_ref[i])
        x = _layernorm(x + a, g1_ref[i], be1_ref[i], eps)
        hmid = _gelu(jnp.dot(x, w1_ref[i], preferred_element_type=jnp.float32) + b1_ref[i])
        ff = jnp.dot(hmid, w2_ref[i], preferred_element_type=jnp.float32) + b2_ref[i]
        x = _layernorm(x + ff, g2_ref[i], be2_ref[i], eps)

    o_ref[...] = x.astype(o_ref.dtype)


# --------------------------- pallas_call wrappers ----------------------------
_VMEM_SPEC = pl.BlockSpec(memory_space=pltpu.MemorySpace.VMEM)


def feature_extractor(a2d, sel2, sel3, p):
    t3 = sel3.shape[0]
    args = [a2d, p["conv1_w"], p["gn_g"], p["gn_b"], p["conv2_w"], sel2,
            p["conv3_w"], sel3, p["feat_ln_g"], p["feat_ln_b"], p["proj_w"], p["proj_b"]]
    return pl.pallas_call(
        functools.partial(_feat_kernel, eps=EPS),
        out_shape=jax.ShapeDtypeStruct((t3, EMBED), jnp.float32),
        in_specs=[_VMEM_SPEC] * len(args),
        out_specs=_VMEM_SPEC,
    )(*args)


def encoder(x, p, n_run):
    L = p["L"]
    args = [x, p["pos_w"], p["pos_b"], p["enc_ln_g"], p["enc_ln_b"],
            L["wqkv"][:n_run], L["bqkv"][:n_run], L["wo"][:n_run], L["bo"][:n_run],
            L["ln1_g"][:n_run], L["ln1_b"][:n_run],
            L["w1"][:n_run], L["b1"][:n_run], L["w2"][:n_run], L["b2"][:n_run],
            L["ln2_g"][:n_run], L["ln2_b"][:n_run]]
    t, e = x.shape
    return pl.pallas_call(
        functools.partial(_encoder_kernel, heads=HEADS, groups=POS_GROUPS,
                          pos_k=POS_K, eps=EPS),
        out_shape=jax.ShapeDtypeStruct((t, e), jnp.float32),
        in_specs=[_VMEM_SPEC] * len(args),
        out_specs=_VMEM_SPEC,
        scratch_shapes=[pltpu.VMEM((t, e), jnp.float32)],
    )(*args)


# ------------------------------ parameters ----------------------------------
def init_params(key):
    keys = iter(jax.random.split(key, 64))

    def nrm(shape, scale=0.05):
        return (scale * jax.random.normal(next(keys), shape)).astype(jnp.float32)

    p = {}
    (d1, k1, _), (d2, k2, _), (d3, k3, _) = CONV_LAYERS

    # conv feature extractor (conv_bias=False); weights stored tap-blocked (k*in, out)
    w1 = nrm((d1, 1, k1), 0.1)                                   # (out, in=1, k)
    p["conv1_w"] = jnp.transpose(w1[:, 0, :], (1, 0))            # (k1, d1)
    p["gn_g"] = jnp.ones((1, d1), jnp.float32)                   # GroupNorm on block 0 only
    p["gn_b"] = jnp.zeros((1, d1), jnp.float32)
    w2 = nrm((d2, d1, k2), 0.1)
    p["conv2_w"] = jnp.concatenate([w2[:, :, j].T for j in range(k2)], axis=0)  # (k2*d1, d2)
    w3 = nrm((d3, d2, k3), 0.1)
    p["conv3_w"] = jnp.concatenate([w3[:, :, j].T for j in range(k3)], axis=0)  # (k3*d2, d3)

    p["feat_ln_g"] = jnp.ones((1, d3), jnp.float32)
    p["feat_ln_b"] = jnp.zeros((1, d3), jnp.float32)
    p["proj_w"] = nrm((d3, EMBED))                               # post_extract_proj (in, out)
    p["proj_b"] = jnp.zeros((1, EMBED), jnp.float32)

    # pos_conv (grouped Conv1d) stored as per-(tap, group) (gc, gc) blocks, no block-diag.
    # TODO(synk): pos_conv weight_norm is ignored (irrelevant for synthetic weights).
    gc = EMBED // POS_GROUPS
    pw = nrm((EMBED, gc, POS_K), 0.1)                            # (out, in/g, k)
    blocks = []
    for j in range(POS_K):
        for g in range(POS_GROUPS):
            blocks.append(pw[g * gc:(g + 1) * gc, :, j].T)       # (gc in, gc out)
    p["pos_w"] = jnp.concatenate(blocks, axis=0)                 # (POS_K*POS_GROUPS*gc, gc)
    p["pos_b"] = jnp.zeros((1, EMBED), jnp.float32)
    p["enc_ln_g"] = jnp.ones((1, EMBED), jnp.float32)
    p["enc_ln_b"] = jnp.zeros((1, EMBED), jnp.float32)

    # transformer layers, stacked along a leading layer axis for a single fused kernel
    acc = {n: [] for n in ("wqkv", "bqkv", "wo", "bo", "ln1_g", "ln1_b",
                           "w1", "b1", "w2", "b2", "ln2_g", "ln2_b")}
    for _ in range(N_LAYERS):
        wq, wk, wv = nrm((EMBED, EMBED)), nrm((EMBED, EMBED)), nrm((EMBED, EMBED))
        acc["wqkv"].append(jnp.concatenate([wq, wk, wv], axis=1))        # (E, 3E)
        acc["bqkv"].append(jnp.zeros((1, 3 * EMBED), jnp.float32))
        acc["wo"].append(nrm((EMBED, EMBED)))
        acc["bo"].append(jnp.zeros((1, EMBED), jnp.float32))
        acc["ln1_g"].append(jnp.ones((1, EMBED), jnp.float32))
        acc["ln1_b"].append(jnp.zeros((1, EMBED), jnp.float32))
        acc["w1"].append(nrm((EMBED, FFN)))
        acc["b1"].append(jnp.zeros((1, FFN), jnp.float32))
        acc["w2"].append(nrm((FFN, EMBED)))
        acc["b2"].append(jnp.zeros((1, EMBED), jnp.float32))
        acc["ln2_g"].append(jnp.ones((1, EMBED), jnp.float32))
        acc["ln2_b"].append(jnp.zeros((1, EMBED), jnp.float32))
    p["L"] = {n: jnp.stack(v, axis=0) for n, v in acc.items()}
    return p


# ------------------------------ forward pass ---------------------------------
def _selection_matrix(t_out, stride, valid_len):
    s = np.zeros((t_out, valid_len), np.float32)
    s[np.arange(t_out), stride * np.arange(t_out)] = 1.0
    return jnp.asarray(s)


@functools.partial(jax.jit, static_argnames=("sample_rate", "output_layer"))
def contentvec_forward(params, audio, sample_rate, output_layer=OUTPUT_LAYER):
    # audio: (B, N); the wrapper keeps only the first sample
    audio = audio[:1]
    # TODO(synk): torchaudio.functional.resample not implemented; inputs must be at model rate.
    assert sample_rate == SAMPLE_RATE
    # padding_mask is all-False in the wrapper -> no input masking anywhere.

    x = audio[0].astype(jnp.float32)                  # (N,)
    n = x.shape[0]
    (_, k1, st1), (_, k2, st2), (_, k3, st3) = CONV_LAYERS
    assert k1 % st1 == 0, "conv1 in-kernel patching assumes kernel % stride == 0"
    t1 = (n - k1) // st1 + 1
    t2 = (t1 - k2) // st2 + 1
    t3 = (t2 - k3) // st3 + 1

    # audio reshaped so conv1 patches are shifted column blocks inside the kernel
    rows = t1 + k1 // st1 - 1
    a2d = x[: rows * st1].reshape(rows, st1)

    # 0/1 row-selection matrices for the stride-2 downsample of convs 2 and 3
    sel2 = _selection_matrix(t2, st2, t1 - k2 + 1)
    sel3 = _selection_matrix(t3, st3, t2 - k3 + 1)

    # kernel A: convs + GroupNorm + GELU + feature LayerNorm + post_extract_proj
    feats = feature_extractor(a2d, sel2, sel3, params)       # (t3, EMBED)

    # kernel B: pos_conv + residual + encoder LN + transformer layers 0..tgt_layer
    n_run = min(output_layer, N_LAYERS)                      # tgt_layer = output_layer - 1
    y = encoder(feats, params, n_run)                        # (t3, EMBED)

    return y[None, ...]                                      # logits: (1, t3, EMBED)


if __name__ == "__main__":
    key = jax.random.PRNGKey(0)
    audio = jax.random.normal(key, (2, 400), dtype=jnp.float32)   # (batch=2, samples=400)
    params = init_params(jax.random.PRNGKey(42))

    logits = contentvec_forward(params, audio, sample_rate=SAMPLE_RATE,
                                output_layer=OUTPUT_LAYER)
    logits = jax.block_until_ready(logits)

    assert logits.shape == (1, 19, EMBED), logits.shape
    assert bool(jnp.all(jnp.isfinite(logits)))
    print("KERNEL_OK")
</pallas_src>

<mosaic_0001>
module attributes {stable_mosaic.version = 11 : i64} {
  func.func @_feat_kernel(%arg0: memref<80x5xf32, #tpu.memory_space<vmem>>, %arg1: memref<10x24xf32, #tpu.memory_space<vmem>>, %arg2: memref<1x24xf32, #tpu.memory_space<vmem>>, %arg3: memref<1x24xf32, #tpu.memory_space<vmem>>, %arg4: memref<72x24xf32, #tpu.memory_space<vmem>>, %arg5: memref<39x77xf32, #tpu.memory_space<vmem>>, %arg6: memref<48x24xf32, #tpu.memory_space<vmem>>, %arg7: memref<19x38xf32, #tpu.memory_space<vmem>>, %arg8: memref<1x24xf32, #tpu.memory_space<vmem>>, %arg9: memref<1x24xf32, #tpu.memory_space<vmem>>, %arg10: memref<24x32xf32, #tpu.memory_space<vmem>>, %arg11: memref<1x32xf32, #tpu.memory_space<vmem>>, %arg12: memref<19x32xf32, #tpu.memory_space<vmem>>) attributes {dimension_semantics = [], scalar_prefetch = 0 : i64, scratch_operands = 0 : i64, tpu.core_type = #tpu.core_type<tc>} {
    %c0 = arith.constant 0 : index
    %c0_0 = arith.constant 0 : index
    %0 = vector.load %arg0[%c0, %c0_0] : memref<80x5xf32, #tpu.memory_space<vmem>>, vector<80x5xf32>
    %1 = vector.extract_strided_slice %0 {offsets = [0, 0], sizes = [79, 5], strides = [1, 1]} : vector<80x5xf32> to vector<79x5xf32>
    %2 = vector.extract_strided_slice %0 {offsets = [1, 0], sizes = [79, 5], strides = [1, 1]} : vector<80x5xf32> to vector<79x5xf32>
    %3 = tpu.concatenate %1, %2 in 1 : vector<79x5xf32>, vector<79x5xf32> -> vector<79x10xf32>
    %c0_1 = arith.constant 0 : index
    %c0_2 = arith.constant 0 : index
    %4 = vector.load %arg1[%c0_1, %c0_2] : memref<10x24xf32, #tpu.memory_space<vmem>>, vector<10x24xf32>
    %cst = arith.constant dense<0.000000e+00> : vector<79x24xf32>
    %5 = tpu.matmul %3, %4, %cst {dimension_numbers = #tpu.dot_dimension_numbers<[1], [0], [0], [1], [0, 0, 1, 1], [], []>} : vector<79x10xf32>, vector<10x24xf32>, vector<79x24xf32> -> vector<79x24xf32>
    %cst_3 = arith.constant dense<0.000000e+00> : vector<24xf32>
    %6 = vector.multi_reduction <add>, %5, %cst_3 [0] : vector<79x24xf32> to vector<24xf32>
    %7 = vector.shape_cast %6 : vector<24xf32> to vector<1x24xf32>
    %cst_4 = arith.constant 7.900000e+01 : f32
    %8 = vector.broadcast %cst_4 : f32 to vector<1x24xf32>
    %9 = arith.divf %7, %8 : vector<1x24xf32>
    %10 = vector.broadcast %9 : vector<1x24xf32> to vector<79x24xf32>
    %11 = arith.subf %5, %10 : vector<79x24xf32>
    %12 = vector.broadcast %9 : vector<1x24xf32> to vector<79x24xf32>
    %13 = arith.subf %5, %12 : vector<79x24xf32>
    %14 = arith.mulf %11, %13 : vector<79x24xf32>
    %cst_5 = arith.constant dense<0.000000e+00> : vector<24xf32>
    %15 = vector.multi_reduction <add>, %14, %cst_5 [0] : vector<79x24xf32> to vector<24xf32>
    %16 = vector.shape_cast %15 : vector<24xf32> to vector<1x24xf32>
    %cst_6 = arith.constant 7.900000e+01 : f32
    %17 = vector.broadcast %cst_6 : f32 to vector<1x24xf32>
    %18 = arith.divf %16, %17 : vector<1x24xf32>
    %19 = vector.broadcast %9 : vector<1x24xf32> to vector<79x24xf32>
    %20 = arith.subf %5, %19 : vector<79x24xf32>
    %cst_7 = arith.constant 9.99999974E-6 : f32
    %21 = vector.broadcast %cst_7 : f32 to vector<1x24xf32>
    %22 = arith.addf %18, %21 : vector<1x24xf32>
    %23 = math.rsqrt %22 : vector<1x24xf32>
    %24 = vector.broadcast %23 : vector<1x24xf32> to vector<79x24xf32>
    %25 = arith.mulf %20, %24 : vector<79x24xf32>
    %c0_8 = arith.constant 0 : index
    %c0_9 = arith.constant 0 : index
    %26 = vector.load %arg2[%c0_8, %c0_9] : memref<1x24xf32, #tpu.memory_space<vmem>>, vector<1x24xf32>
    %27 = vector.broadcast %26 : vector<1x24xf32> to vector<79x24xf32>
    %28 = arith.mulf %25, %27 : vector<79x24xf32>
    %c0_10 = arith.constant 0 : index
    %c0_11 = arith.constant 0 : index
    %29 = vector.load %arg3[%c0_10, %c0_11] : memref<1x24xf32, #tpu.memory_space<vmem>>, vector<1x24xf32>
    %30 = vector.broadcast %29 : vector<1x24xf32> to vector<79x24xf32>
    %31 = arith.addf %28, %30 : vector<79x24xf32>
    %cst_12 = arith.constant 5.000000e-01 : f32
    %32 = vector.broadcast %cst_12 : f32 to vector<79x24xf32>
    %33 = arith.mulf %32, %31 : vector<79x24xf32>
    %cst_13 = arith.constant 4.471500e-02 : f32
    %34 = vector.broadcast %cst_13 : f32 to vector<79x24xf32>
    %35 = arith.mulf %34, %31 : vector<79x24xf32>
    %36 = arith.mulf %35, %31 : vector<79x24xf32>
    %37 = arith.mulf %36, %31 : vector<79x24xf32>
    %38 = arith.addf %31, %37 : vector<79x24xf32>
    %cst_14 = arith.constant 0.797884583 : f32
    %39 = vector.broadcast %cst_14 : f32 to vector<79x24xf32>
    %40 = arith.mulf %39, %38 : vector<79x24xf32>
    %41 = math.tanh %40 : vector<79x24xf32>
    %cst_15 = arith.constant 1.000000e+00 : f32
    %42 = vector.broadcast %cst_15 : f32 to vector<79x24xf32>
    %43 = arith.addf %42, %41 : vector<79x24xf32>
    %44 = arith.mulf %33, %43 : vector<79x24xf32>
    %c0_16 = arith.constant 0 : index
    %c0_17 = arith.constant 0 : index
    %45 = vector.load %arg5[%c0_16, %c0_17] : memref<39x77xf32, #tpu.memory_space<vmem>>, vector<39x77xf32>
    %c0_18 = arith.constant 0 : index
    %c0_19 = arith.constant 0 : index
    %46 = vector.load %arg4[%c0_18, %c0_19] : memref<72x24xf32, #tpu.memory_space<vmem>>, vector<72x24xf32>
    %47 = vector.extract_strided_slice %44 {offsets = [0, 0], sizes = [77, 24], strides = [1, 1]} : vector<79x24xf32> to vector<77x24xf32>
    %48 = vector.extract_strided_slice %46 {offsets = [0, 0], sizes = [24, 24], strides = [1, 1]} : vector<72x24xf32> to vector<24x24xf32>
    %cst_20 = arith.constant dense<0.000000e+00> : vector<77x24xf32>
    %49 = tpu.matmul %47, %48, %cst_20 {dimension_numbers = #tpu.dot_dimension_numbers<[1], [0], [0], [1], [0, 0, 1, 1], [], []>} : vector<77x24xf32>, vector<24x24xf32>, vector<77x24xf32> -> vector<77x24xf32>
    %50 = vector.extract_strided_slice %44 {offsets = [1, 0], sizes = [77, 24], strides = [1, 1]} : vector<79x24xf32> to vector<77x24xf32>
    %51 = vector.extract_strided_slice %46 {offsets = [24, 0], sizes = [24, 24], strides = [1, 1]} : vector<72x24xf32> to vector<24x24xf32>
    %cst_21 = arith.constant dense<0.000000e+00> : vector<77x24xf32>
    %52 = tpu.matmul %50, %51, %cst_21 {dimension_numbers = #tpu.dot_dimension_numbers<[1], [0], [0], [1], [0, 0, 1, 1], [], []>} : vector<77x24xf32>, vector<24x24xf32>, vector<77x24xf32> -> vector<77x24xf32>
    %53 = arith.addf %49, %52 : vector<77x24xf32>
    %54 = vector.extract_strided_slice %44 {offsets = [2, 0], sizes = [77, 24], strides = [1, 1]} : vector<79x24xf32> to vector<77x24xf32>
    %55 = vector.extract_strided_slice %46 {offsets = [48, 0], sizes = [24, 24], strides = [1, 1]} : vector<72x24xf32> to vector<24x24xf32>
    %cst_22 = arith.constant dense<0.000000e+00> : vector<77x24xf32>
    %56 = tpu.matmul %54, %55, %cst_22 {dimension_numbers = #tpu.dot_dimension_numbers<[1], [0], [0], [1], [0, 0, 1, 1], [], []>} : vector<77x24xf32>, vector<24x24xf32>, vector<77x24xf32> -> vector<77x24xf32>
    %57 = arith.addf %53, %56 : vector<77x24xf32>
    %cst_23 = arith.constant dense<0.000000e+00> : vector<39x24xf32>
    %58 = tpu.matmul %45, %57, %cst_23 {dimension_numbers = #tpu.dot_dimension_numbers<[1], [0], [0], [1], [0, 0, 1, 1], [], []>} : vector<39x77xf32>, vector<77x24xf32>, vector<39x24xf32> -> vector<39x24xf32>
    %cst_24 = arith.constant 5.000000e-01 : f32
    %59 = vector.broadcast %cst_24 : f32 to vector<39x24xf32>
    %60 = arith.mulf %59, %58 : vector<39x24xf32>
    %cst_25 = arith.constant 4.471500e-02 : f32
    %61 = vector.broadcast %cst_25 : f32 to vector<39x24xf32>
    %62 = arith.mulf %61, %58 : vector<39x24xf32>
    %63 = arith.mulf %62, %58 : vector<39x24xf32>
    %64 = arith.mulf %63, %58 : vector<39x24xf32>
    %65 = arith.addf %58, %64 : vector<39x24xf32>
    %cst_26 = arith.constant 0.797884583 : f32
    %66 = vector.broadcast %cst_26 : f32 to vector<39x24xf32>
    %67 = arith.mulf %66, %65 : vector<39x24xf32>
    %68 = math.tanh %67 : vector<39x24xf32>
    %cst_27 = arith.constant 1.000000e+00 : f32
    %69 = vector.broadcast %cst_27 : f32 to vector<39x24xf32>
    %70 = arith.addf %69, %68 : vector<39x24xf32>
    %71 = arith.mulf %60, %70 : vector<39x24xf32>
    %c0_28 = arith.constant 0 : index
    %c0_29 = arith.constant 0 : index
    %72 = vector.load %arg7[%c0_28, %c0_29] : memref<19x38xf32, #tpu.memory_space<vmem>>, vector<19x38xf32>
    %c0_30 = arith.constant 0 : index
    %c0_31 = arith.constant 0 : index
    %73 = vector.load %arg6[%c0_30, %c0_31] : memref<48x24xf32, #tpu.memory_space<vmem>>, vector<48x24xf32>
    %74 = vector.extract_strided_slice %71 {offsets = [0, 0], sizes = [38, 24], strides = [1, 1]} : vector<39x24xf32> to vector<38x24xf32>
    %75 = vector.extract_strided_slice %73 {offsets = [0, 0], sizes = [24, 24], strides = [1, 1]} : vector<48x24xf32> to vector<24x24xf32>
    %cst_32 = arith.constant dense<0.000000e+00> : vector<38x24xf32>
    %76 = tpu.matmul %74, %75, %cst_32 {dimension_numbers = #tpu.dot_dimension_numbers<[1], [0], [0], [1], [0, 0, 1, 1], [], []>} : vector<38x24xf32>, vector<24x24xf32>, vector<38x24xf32> -> vector<38x24xf32>
    %77 = vector.extract_strided_slice %71 {offsets = [1, 0], sizes = [38, 24], strides = [1, 1]} : vector<39x24xf32> to vector<38x24xf32>
    %78 = vector.extract_strided_slice %73 {offsets = [24, 0], sizes = [24, 24], strides = [1, 1]} : vector<48x24xf32> to vector<24x24xf32>
    %cst_33 = arith.constant dense<0.000000e+00> : vector<38x24xf32>
    %79 = tpu.matmul %77, %78, %cst_33 {dimension_numbers = #tpu.dot_dimension_numbers<[1], [0], [0], [1], [0, 0, 1, 1], [], []>} : vector<38x24xf32>, vector<24x24xf32>, vector<38x24xf32> -> vector<38x24xf32>
    %80 = arith.addf %76, %79 : vector<38x24xf32>
    %cst_34 = arith.constant dense<0.000000e+00> : vector<19x24xf32>
    %81 = tpu.matmul %72, %80, %cst_34 {dimension_numbers = #tpu.dot_dimension_numbers<[1], [0], [0], [1], [0, 0, 1, 1], [], []>} : vector<19x38xf32>, vector<38x24xf32>, vector<19x24xf32> -> vector<19x24xf32>
    %cst_35 = arith.constant 5.000000e-01 : f32
    %82 = vector.broadcast %cst_35 : f32 to vector<19x24xf32>
    %83 = arith.mulf %82, %81 : vector<19x24xf32>
    %cst_36 = arith.constant 4.471500e-02 : f32
    %84 = vector.broadcast %cst_36 : f32 to vector<19x24xf32>
    %85 = arith.mulf %84, %81 : vector<19x24xf32>
    %86 = arith.mulf %85, %81 : vector<19x24xf32>
    %87 = arith.mulf %86, %81 : vector<19x24xf32>
    %88 = arith.addf %81, %87 : vector<19x24xf32>
    %cst_37 = arith.constant 0.797884583 : f32
    %89 = vector.broadcast %cst_37 : f32 to vector<19x24xf32>
    %90 = arith.mulf %89, %88 : vector<19x24xf32>
    %91 = math.tanh %90 : vector<19x24xf32>
    %cst_38 = arith.constant 1.000000e+00 : f32
    %92 = vector.broadcast %cst_38 : f32 to vector<19x24xf32>
    %93 = arith.addf %92, %91 : vector<19x24xf32>
    %94 = arith.mulf %83, %93 : vector<19x24xf32>
    %c0_39 = arith.constant 0 : index
    %c0_40 = arith.constant 0 : index
    %95 = vector.load %arg8[%c0_39, %c0_40] : memref<1x24xf32, #tpu.memory_space<vmem>>, vector<1x24xf32>
    %c0_41 = arith.constant 0 : index
    %c0_42 = arith.constant 0 : index
    %96 = vector.load %arg9[%c0_41, %c0_42] : memref<1x24xf32, #tpu.memory_space<vmem>>, vector<1x24xf32>
    %cst_43 = arith.constant dense<0.000000e+00> : vector<19xf32>
    %97 = vector.multi_reduction <add>, %94, %cst_43 [1] : vector<19x24xf32> to vector<19xf32>
    %98 = vector.shape_cast %97 : vector<19xf32> to vector<19x1xf32>
    %cst_44 = arith.constant 2.400000e+01 : f32
    %99 = vector.broadcast %cst_44 : f32 to vector<19x1xf32>
    %100 = arith.divf %98, %99 : vector<19x1xf32>
    %101 = vector.broadcast %100 : vector<19x1xf32> to vector<19x24xf32>
    %102 = arith.subf %94, %101 : vector<19x24xf32>
    %103 = vector.broadcast %100 : vector<19x1xf32> to vector<19x24xf32>
    %104 = arith.subf %94, %103 : vector<19x24xf32>
    %105 = arith.mulf %102, %104 : vector<19x24xf32>
    %cst_45 = arith.constant dense<0.000000e+00> : vector<19xf32>
    %106 = vector.multi_reduction <add>, %105, %cst_45 [1] : vector<19x24xf32> to vector<19xf32>
    %107 = vector.shape_cast %106 : vector<19xf32> to vector<19x1xf32>
    %cst_46 = arith.constant 2.400000e+01 : f32
    %108 = vector.broadcast %cst_46 : f32 to vector<19x1xf32>
    %109 = arith.divf %107, %108 : vector<19x1xf32>
    %110 = vector.broadcast %100 : vector<19x1xf32> to vector<19x24xf32>
    %111 = arith.subf %94, %110 : vector<19x24xf32>
    %cst_47 = arith.constant 9.99999974E-6 : f32
    %112 = vector.broadcast %cst_47 : f32 to vector<19x1xf32>
    %113 = arith.addf %109, %112 : vector<19x1xf32>
    %114 = math.rsqrt %113 : vector<19x1xf32>
    %115 = vector.broadcast %114 : vector<19x1xf32> to vector<19x24xf32>
    %116 = arith.mulf %111, %115 : vector<19x24xf32>
    %117 = vector.broadcast %95 : vector<1x24xf32> to vector<19x24xf32>
    %118 = arith.mulf %116, %117 : vector<19x24xf32>
    %119 = vector.broadcast %96 : vector<1x24xf32> to vector<19x24xf32>
    %120 = arith.addf %118, %119 : vector<19x24xf32>
    %c0_48 = arith.constant 0 : index
    %c0_49 = arith.constant 0 : index
    %121 = vector.load %arg10[%c0_48, %c0_49] : memref<24x32xf32, #tpu.memory_space<vmem>>, vector<24x32xf32>
    %cst_50 = arith.constant dense<0.000000e+00> : vector<19x32xf32>
    %122 = tpu.matmul %120, %121, %cst_50 {dimension_numbers = #tpu.dot_dimension_numbers<[1], [0], [0], [1], [0, 0, 1, 1], [], []>} : vector<19x24xf32>, vector<24x32xf32>, vector<19x32xf32> -> vector<19x32xf32>
    %c0_51 = arith.constant 0 : index
    %c0_52 = arith.constant 0 : index
    %123 = vector.load %arg11[%c0_51, %c0_52] : memref<1x32xf32, #tpu.memory_space<vmem>>, vector<1x32xf32>
    %124 = vector.broadcast %123 : vector<1x32xf32> to vector<19x32xf32>
    %125 = arith.addf %122, %124 : vector<19x32xf32>
    %c0_53 = arith.constant 0 : index
    %c0_54 = arith.constant 0 : index
    %126 = vector.load %arg12[%c0_53, %c0_54] : memref<19x32xf32, #tpu.memory_space<vmem>>, vector<19x32xf32>
    tpu.vector_store %arg12[%c0_53, %c0_54], %125 {strides = array<i32>} : memref<19x32xf32, #tpu.memory_space<vmem>>, vector<19x32xf32>,
    return
  }
}

module attributes {stable_mosaic.version = 11 : i64} {
  func.func @_encoder_kernel(%arg0: memref<19x32xf32, #tpu.memory_space<vmem>>, %arg1: memref<160x16xf32, #tpu.memory_space<vmem>>, %arg2: memref<1x32xf32, #tpu.memory_space<vmem>>, %arg3: memref<1x32xf32, #tpu.memory_space<vmem>>, %arg4: memref<1x32xf32, #tpu.memory_space<vmem>>, %arg5: memref<2x32x96xf32, #tpu.memory_space<vmem>>, %arg6: memref<2x1x96xf32, #tpu.memory_space<vmem>>, %arg7: memref<2x32x32xf32, #tpu.memory_space<vmem>>, %arg8: memref<2x1x32xf32, #tpu.memory_space<vmem>>, %arg9: memref<2x1x32xf32, #tpu.memory_space<vmem>>, %arg10: memref<2x1x32xf32, #tpu.memory_space<vmem>>, %arg11: memref<2x32x64xf32, #tpu.memory_space<vmem>>, %arg12: memref<2x1x64xf32, #tpu.memory_space<vmem>>, %arg13: memref<2x64x32xf32, #tpu.memory_space<vmem>>, %arg14: memref<2x1x32xf32, #tpu.memory_space<vmem>>, %arg15: memref<2x1x32xf32, #tpu.memory_space<vmem>>, %arg16: memref<2x1x32xf32, #tpu.memory_space<vmem>>, %arg17: memref<19x32xf32, #tpu.memory_space<vmem>>, %arg18: memref<19x32xf32, #tpu.memory_space<vmem>>) attributes {dimension_semantics = [], scalar_prefetch = 0 : i64, scratch_operands = 1 : i64, tpu.core_type = #tpu.core_type<tc>} {
    %c0 = arith.constant 0 : index
    %c0_0 = arith.constant 0 : index
    %0 = vector.load %arg0[%c0, %c0_0] : memref<19x32xf32, #tpu.memory_space<vmem>>, vector<19x32xf32>
    %cst = arith.constant 0.000000e+00 : f32
    %1 = vector.broadcast %cst : f32 to vector<2x32xf32>
    %2 = tpu.concatenate %1, %0, %1 in 0 : vector<2x32xf32>, vector<19x32xf32>, vector<2x32xf32> -> vector<23x32xf32>
    %cst_1 = arith.constant 0.000000e+00 : f32
    %3 = vector.broadcast %cst_1 : f32 to vector<19x16xf32>
    %4 = vector.extract_strided_slice %2 {offsets = [0, 0], sizes = [19, 16], strides = [1, 1]} : vector<23x32xf32> to vector<19x16xf32>
    %c0_2 = arith.constant 0 : index
    %c0_3 = arith.constant 0 : index
    %5 = vector.load %arg1[%c0_2, %c0_3] : memref<160x16xf32, #tpu.memory_space<vmem>>, vector<16x16xf32>
    %cst_4 = arith.constant dense<0.000000e+00> : vector<19x16xf32>
    %6 = tpu.matmul %4, %5, %cst_4 {dimension_numbers = #tpu.dot_dimension_numbers<[1], [0], [0], [1], [0, 0, 1, 1], [], []>} : vector<19x16xf32>, vector<16x16xf32>, vector<19x16xf32> -> vector<19x16xf32>
    %7 = arith.addf %3, %6 : vector<19x16xf32>
    %8 = vector.extract_strided_slice %2 {offsets = [1, 0], sizes = [19, 16], strides = [1, 1]} : vector<23x32xf32> to vector<19x16xf32>
    %c32 = arith.constant 32 : index
    %c0_5 = arith.constant 0 : index
    %9 = vector.load %arg1[%c32, %c0_5] : memref<160x16xf32, #tpu.memory_space<vmem>>, vector<16x16xf32>
    %cst_6 = arith.constant dense<0.000000e+00> : vector<19x16xf32>
    %10 = tpu.matmul %8, %9, %cst_6 {dimension_numbers = #tpu.dot_dimension_numbers<[1], [0], [0], [1], [0, 0, 1, 1], [], []>} : vector<19x16xf32>, vector<16x16xf32>, vector<19x16xf32> -> vector<19x16xf32>
    %11 = arith.addf %7, %10 : vector<19x16xf32>
    %12 = vector.extract_strided_slice %2 {offsets = [2, 0], sizes = [19, 16], strides = [1, 1]} : vector<23x32xf32> to vector<19x16xf32>
    %c64 = arith.constant 64 : index
    %c0_7 = arith.constant 0 : index
    %13 = vector.load %arg1[%c64, %c0_7] : memref<160x16xf32, #tpu.memory_space<vmem>>, vector<16x16xf32>
    %cst_8 = arith.constant dense<0.000000e+00> : vector<19x16xf32>
    %14 = tpu.matmul %12, %13, %cst_8 {dimension_numbers = #tpu.dot_dimension_numbers<[1], [0], [0], [1], [0, 0, 1, 1], [], []>} : vector<19x16xf32>, vector<16x16xf32>, vector<19x16xf32> -> vector<19x16xf32>
    %15 = arith.addf %11, %14 : vector<19x16xf32>
    %16 = vector.extract_strided_slice %2 {offsets = [3, 0], sizes = [19, 16], strides = [1, 1]} : vector<23x32xf32> to vector<19x16xf32>
    %c96 = arith.constant 96 : index
    %c0_9 = arith.constant 0 : index
    %17 = vector.load %arg1[%c96, %c0_9] : memref<160x16xf32, #tpu.memory_space<vmem>>, vector<16x16xf32>
    %cst_10 = arith.constant dense<0.000000e+00> : vector<19x16xf32>
    %18 = tpu.matmul %16, %17, %cst_10 {dimension_numbers = #tpu.dot_dimension_numbers<[1], [0], [0], [1], [0, 0, 1, 1], [], []>} : vector<19x16xf32>, vector<16x16xf32>, vector<19x16xf32> -> vector<19x16xf32>
    %19 = arith.addf %15, %18 : vector<19x16xf32>
    %20 = vector.extract_strided_slice %2 {offsets = [4, 0], sizes = [19, 16], strides = [1, 1]} : vector<23x32xf32> to vector<19x16xf32>
    %c128 = arith.constant 128 : index
    %c0_11 = arith.constant 0 : index
    %21 = vector.load %arg1[%c128, %c0_11] : memref<160x16xf32, #tpu.memory_space<vmem>>, vector<16x16xf32>
    %cst_12 = arith.constant dense<0.000000e+00> : vector<19x16xf32>
    %22 = tpu.matmul %20, %21, %cst_12 {dimension_numbers = #tpu.dot_dimension_numbers<[1], [0], [0], [1], [0, 0, 1, 1], [], []>} : vector<19x16xf32>, vector<16x16xf32>, vector<19x16xf32> -> vector<19x16xf32>
    %23 = arith.addf %19, %22 : vector<19x16xf32>
    %c0_13 = arith.constant 0 : index
    %c0_14 = arith.constant 0 : index
    %24 = vector.load %arg18[%c0_13, %c0_14] : memref<19x32xf32, #tpu.memory_space<vmem>>, vector<19x16xf32>
    tpu.vector_store %arg18[%c0_13, %c0_14], %23 {strides = array<i32>} : memref<19x32xf32, #tpu.memory_space<vmem>>, vector<19x16xf32>,
    %cst_15 = arith.constant 0.000000e+00 : f32
    %25 = vector.broadcast %cst_15 : f32 to vector<19x16xf32>
    %26 = vector.extract_strided_slice %2 {offsets = [0, 16], sizes = [19, 16], strides = [1, 1]} : vector<23x32xf32> to vector<19x16xf32>
    %c16 = arith.constant 16 : index
    %c0_16 = arith.constant 0 : index
    %27 = vector.load %arg1[%c16, %c0_16] : memref<160x16xf32, #tpu.memory_space<vmem>>, vector<16x16xf32>
    %cst_17 = arith.constant dense<0.000000e+00> : vector<19x16xf32>
    %28 = tpu.matmul %26, %27, %cst_17 {dimension_numbers = #tpu.dot_dimension_numbers<[1], [0], [0], [1], [0, 0, 1, 1], [], []>} : vector<19x16xf32>, vector<16x16xf32>, vector<19x16xf32> -> vector<19x16xf32>
    %29 = arith.addf %25, %28 : vector<19x16xf32>
    %30 = vector.extract_strided_slice %2 {offsets = [1, 16], sizes = [19, 16], strides = [1, 1]} : vector<23x32xf32> to vector<19x16xf32>
    %c48 = arith.constant 48 : index
    %c0_18 = arith.constant 0 : index
    %31 = vector.load %arg1[%c48, %c0_18] : memref<160x16xf32, #tpu.memory_space<vmem>>, vector<16x16xf32>
    %cst_19 = arith.constant dense<0.000000e+00> : vector<19x16xf32>
    %32 = tpu.matmul %30, %31, %cst_19 {dimension_numbers = #tpu.dot_dimension_numbers<[1], [0], [0], [1], [0, 0, 1, 1], [], []>} : vector<19x16xf32>, vector<16x16xf32>, vector<19x16xf32> -> vector<19x16xf32>
    %33 = arith.addf %29, %32 : vector<19x16xf32>
    %34 = vector.extract_strided_slice %2 {offsets = [2, 16], sizes = [19, 16], strides = [1, 1]} : vector<23x32xf32> to vector<19x16xf32>
    %c80 = arith.constant 80 : index
    %c0_20 = arith.constant 0 : index
    %35 = vector.load %arg1[%c80, %c0_20] : memref<160x16xf32, #tpu.memory_space<vmem>>, vector<16x16xf32>
    %cst_21 = arith.constant dense<0.000000e+00> : vector<19x16xf32>
    %36 = tpu.matmul %34, %35, %cst_21 {dimension_numbers = #tpu.dot_dimension_numbers<[1], [0], [0], [1], [0, 0, 1, 1], [], []>} : vector<19x16xf32>, vector<16x16xf32>, vector<19x16xf32> -> vector<19x16xf32>
    %37 = arith.addf %33, %36 : vector<19x16xf32>
    %38 = vector.extract_strided_slice %2 {offsets = [3, 16], sizes = [19, 16], strides = [1, 1]} : vector<23x32xf32> to vector<19x16xf32>
    %c112 = arith.constant 112 : index
    %c0_22 = arith.constant 0 : index
    %39 = vector.load %arg1[%c112, %c0_22] : memref<160x16xf32, #tpu.memory_space<vmem>>, vector<16x16xf32>
    %cst_23 = arith.constant dense<0.000000e+00> : vector<19x16xf32>
    %40 = tpu.matmul %38, %39, %cst_23 {dimension_numbers = #tpu.dot_dimension_numbers<[1], [0], [0], [1], [0, 0, 1, 1], [], []>} : vector<19x16xf32>, vector<16x16xf32>, vector<19x16xf32> -> vector<19x16xf32>
    %41 = arith.addf %37, %40 : vector<19x16xf32>
    %42 = vector.extract_strided_slice %2 {offsets = [4, 16], sizes = [19, 16], strides = [1, 1]} : vector<23x32xf32> to vector<19x16xf32>
    %c144 = arith.constant 144 : index
    %c0_24 = arith.constant 0 : index
    %43 = vector.load %arg1[%c144, %c0_24] : memref<160x16xf32, #tpu.memory_space<vmem>>, vector<16x16xf32>
    %cst_25 = arith.constant dense<0.000000e+00> : vector<19x16xf32>
    %44 = tpu.matmul %42, %43, %cst_25 {dimension_numbers = #tpu.dot_dimension_numbers<[1], [0], [0], [1], [0, 0, 1, 1], [], []>} : vector<19x16xf32>, vector<16x16xf32>, vector<19x16xf32> -> vector<19x16xf32>
    %45 = arith.addf %41, %44 : vector<19x16xf32>
    %c0_26 = arith.constant 0 : index
    %c16_27 = arith.constant 16 : index
    %46 = vector.load %arg18[%c0_26, %c16_27] : memref<19x32xf32, #tpu.memory_space<vmem>>, vector<19x16xf32>
    tpu.vector_store %arg18[%c0_26, %c16_27], %45 {strides = array<i32>} : memref<19x32xf32, #tpu.memory_space<vmem>>, vector<19x16xf32>,
    %c0_28 = arith.constant 0 : index
    %c0_29 = arith.constant 0 : index
    %47 = vector.load %arg18[%c0_28, %c0_29] : memref<19x32xf32, #tpu.memory_space<vmem>>, vector<19x32xf32>
    %c0_30 = arith.constant 0 : index
    %c0_31 = arith.constant 0 : index
    %48 = vector.load %arg2[%c0_30, %c0_31] : memref<1x32xf32, #tpu.memory_space<vmem>>, vector<1x32xf32>
    %49 = vector.broadcast %48 : vector<1x32xf32> to vector<19x32xf32>
    %50 = arith.addf %47, %49 : vector<19x32xf32>
    %cst_32 = arith.constant 5.000000e-01 : f32
    %51 = vector.broadcast %cst_32 : f32 to vector<19x32xf32>
    %52 = arith.mulf %51, %50 : vector<19x32xf32>
    %cst_33 = arith.constant 4.471500e-02 : f32
    %53 = vector.broadcast %cst_33 : f32 to vector<19x32xf32>
    %54 = arith.mulf %53, %50 : vector<19x32xf32>
    %55 = arith.mulf %54, %50 : vector<19x32xf32>
    %56 = arith.mulf %55, %50 : vector<19x32xf32>
    %57 = arith.addf %50, %56 : vector<19x32xf32>
    %cst_34 = arith.constant 0.797884583 : f32
    %58 = vector.broadcast %cst_34 : f32 to vector<19x32xf32>
    %59 = arith.mulf %58, %57 : vector<19x32xf32>
    %60 = math.tanh %59 : vector<19x32xf32>
    %cst_35 = arith.constant 1.000000e+00 : f32
    %61 = vector.broadcast %cst_35 : f32 to vector<19x32xf32>
    %62 = arith.addf %61, %60 : vector<19x32xf32>
    %63 = arith.mulf %52, %62 : vector<19x32xf32>
    %64 = arith.addf %0, %63 : vector<19x32xf32>
    %c0_36 = arith.constant 0 : index
    %c0_37 = arith.constant 0 : index
    %65 = vector.load %arg3[%c0_36, %c0_37] : memref<1x32xf32, #tpu.memory_space<vmem>>, vector<1x32xf32>
    %c0_38 = arith.constant 0 : index
    %c0_39 = arith.constant 0 : index
    %66 = vector.load %arg4[%c0_38, %c0_39] : memref<1x32xf32, #tpu.memory_space<vmem>>, vector<1x32xf32>
    %cst_40 = arith.constant dense<0.000000e+00> : vector<19xf32>
    %67 = vector.multi_reduction <add>, %64, %cst_40 [1] : vector<19x32xf32> to vector<19xf32>
    %68 = vector.shape_cast %67 : vector<19xf32> to vector<19x1xf32>
    %cst_41 = arith.constant 3.200000e+01 : f32
    %69 = vector.broadcast %cst_41 : f32 to vector<19x1xf32>
    %70 = arith.divf %68, %69 : vector<19x1xf32>
    %71 = vector.broadcast %70 : vector<19x1xf32> to vector<19x32xf32>
    %72 = arith.subf %64, %71 : vector<19x32xf32>
    %73 = vector.broadcast %70 : vector<19x1xf32> to vector<19x32xf32>
    %74 = arith.subf %64, %73 : vector<19x32xf32>
    %75 = arith.mulf %72, %74 : vector<19x32xf32>
    %cst_42 = arith.constant dense<0.000000e+00> : vector<19xf32>
    %76 = vector.multi_reduction <add>, %75, %cst_42 [1] : vector<19x32xf32> to vector<19xf32>
    %77 = vector.shape_cast %76 : vector<19xf32> to vector<19x1xf32>
    %cst_43 = arith.constant 3.200000e+01 : f32
    %78 = vector.broadcast %cst_43 : f32 to vector<19x1xf32>
    %79 = arith.divf %77, %78 : vector<19x1xf32>
    %80 = vector.broadcast %70 : vector<19x1xf32> to vector<19x32xf32>
    %81 = arith.subf %64, %80 : vector<19x32xf32>
    %cst_44 = arith.constant 9.99999974E-6 : f32
    %82 = vector.broadcast %cst_44 : f32 to vector<19x1xf32>
    %83 = arith.addf %79, %82 : vector<19x1xf32>
    %84 = math.rsqrt %83 : vector<19x1xf32>
    %85 = vector.broadcast %84 : vector<19x1xf32> to vector<19x32xf32>
    %86 = arith.mulf %81, %85 : vector<19x32xf32>
    %87 = vector.broadcast %65 : vector<1x32xf32> to vector<19x32xf32>
    %88 = arith.mulf %86, %87 : vector<19x32xf32>
    %89 = vector.broadcast %66 : vector<1x32xf32> to vector<19x32xf32>
    %90 = arith.addf %88, %89 : vector<19x32xf32>
    %c0_45 = arith.constant 0 : index
    %c0_46 = arith.constant 0 : index
    %c0_47 = arith.constant 0 : index
    %91 = vector.load %arg5[%c0_45, %c0_46, %c0_47] : memref<2x32x96xf32, #tpu.memory_space<vmem>>, vector<1x32x96xf32>
    %92 = vector.shape_cast %91 : vector<1x32x96xf32> to vector<32x96xf32>
    %cst_48 = arith.constant dense<0.000000e+00> : vector<19x96xf32>
    %93 = tpu.matmul %90, %92, %cst_48 {dimension_numbers = #tpu.dot_dimension_numbers<[1], [0], [0], [1], [0, 0, 1, 1], [], []>} : vector<19x32xf32>, vector<32x96xf32>, vector<19x96xf32> -> vector<19x96xf32>
    %c0_49 = arith.constant 0 : index
    %c0_50 = arith.constant 0 : index
    %c0_51 = arith.constant 0 : index
    %94 = vector.load %arg6[%c0_49, %c0_50, %c0_51] : memref<2x1x96xf32, #tpu.memory_space<vmem>>, vector<1x1x96xf32>
    %95 = vector.shape_cast %94 : vector<1x1x96xf32> to vector<1x96xf32>
    %96 = vector.broadcast %95 : vector<1x96xf32> to vector<19x96xf32>
    %97 = arith.addf %93, %96 : vector<19x96xf32>
    %98 = vector.extract_strided_slice %97 {offsets = [0, 0], sizes = [19, 8], strides = [1, 1]} : vector<19x96xf32> to vector<19x8xf32>
    %cst_52 = arith.constant 0.353553385 : f32
    %99 = vector.broadcast %cst_52 : f32 to vector<19x8xf32>
    %100 = arith.mulf %98, %99 : vector<19x8xf32>
    %101 = vector.extract_strided_slice %97 {offsets = [0, 32], sizes = [19, 8], strides = [1, 1]} : vector<19x96xf32> to vector<19x8xf32>
    %102 = vector.extract_strided_slice %97 {offsets = [0, 64], sizes = [19, 8], strides = [1, 1]} : vector<19x96xf32> to vector<19x8xf32>
    %cst_53 = arith.constant dense<0.000000e+00> : vector<19x19xf32>
    %103 = tpu.matmul %100, %101, %cst_53 {dimension_numbers = #tpu.dot_dimension_numbers<[1], [1], [0], [0], [0, 0, 1, 0], [], []>} : vector<19x8xf32>, vector<19x8xf32>, vector<19x19xf32> -> vector<19x19xf32>
    %cst_54 = arith.constant dense<0xFF800000> : vector<19xf32>
    %104 = vector.multi_reduction <maximumf>, %103, %cst_54 [1] : vector<19x19xf32> to vector<19xf32>
    %105 = vector.shape_cast %104 : vector<19xf32> to vector<19x1xf32>
    %106 = vector.broadcast %105 : vector<19x1xf32> to vector<19x19xf32>
    %107 = arith.subf %103, %106 : vector<19x19xf32>
    %108 = math.exp %107 : vector<19x19xf32>
    %cst_55 = arith.constant dense<0.000000e+00> : vector<19xf32>
    %109 = vector.multi_reduction <add>, %108, %cst_55 [1] : vector<19x19xf32> to vector<19xf32>
    %110 = vector.shape_cast %109 : vector<19xf32> to vector<19x1xf32>
    %111 = tpu.reciprocal %110 {approx = true} : vector<19x1xf32> -> vector<19x1xf32>
    %112 = vector.broadcast %111 : vector<19x1xf32> to vector<19x19xf32>
    %113 = arith.mulf %108, %112 : vector<19x19xf32>
    %cst_56 = arith.constant dense<0.000000e+00> : vector<19x8xf32>
    %114 = tpu.matmul %113, %102, %cst_56 {dimension_numbers = #tpu.dot_dimension_numbers<[1], [0], [0], [1], [0, 0, 1, 1], [], []>} : vector<19x19xf32>, vector<19x8xf32>, vector<19x8xf32> -> vector<19x8xf32>
    %c0_57 = arith.constant 0 : index
    %c0_58 = arith.constant 0 : index
    %115 = vector.load %arg18[%c0_57, %c0_58] : memref<19x32xf32, #tpu.memory_space<vmem>>, vector<19x8xf32>
    tpu.vector_store %arg18[%c0_57, %c0_58], %114 {strides = array<i32>} : memref<19x32xf32, #tpu.memory_space<vmem>>, vector<19x8xf32>,
    %116 = vector.extract_strided_slice %97 {offsets = [0, 8], sizes = [19, 8], strides = [1, 1]} : vector<19x96xf32> to vector<19x8xf32>
    %cst_59 = arith.constant 0.353553385 : f32
    %117 = vector.broadcast %cst_59 : f32 to vector<19x8xf32>
    %118 = arith.mulf %116, %117 : vector<19x8xf32>
    %119 = vector.extract_strided_slice %97 {offsets = [0, 40], sizes = [19, 8], strides = [1, 1]} : vector<19x96xf32> to vector<19x8xf32>
    %120 = vector.extract_strided_slice %97 {offsets = [0, 72], sizes = [19, 8], strides = [1, 1]} : vector<19x96xf32> to vector<19x8xf32>
    %cst_60 = arith.constant dense<0.000000e+00> : vector<19x19xf32>
    %121 = tpu.matmul %118, %119, %cst_60 {dimension_numbers = #tpu.dot_dimension_numbers<[1], [1], [0], [0], [0, 0, 1, 0], [], []>} : vector<19x8xf32>, vector<19x8xf32>, vector<19x19xf32> -> vector<19x19xf32>
    %cst_61 = arith.constant dense<0xFF800000> : vector<19xf32>
    %122 = vector.multi_reduction <maximumf>, %121, %cst_61 [1] : vector<19x19xf32> to vector<19xf32>
    %123 = vector.shape_cast %122 : vector<19xf32> to vector<19x1xf32>
    %124 = vector.broadcast %123 : vector<19x1xf32> to vector<19x19xf32>
    %125 = arith.subf %121, %124 : vector<19x19xf32>
    %126 = math.exp %125 : vector<19x19xf32>
    %cst_62 = arith.constant dense<0.000000e+00> : vector<19xf32>
    %127 = vector.multi_reduction <add>, %126, %cst_62 [1] : vector<19x19xf32> to vector<19xf32>
    %128 = vector.shape_cast %127 : vector<19xf32> to vector<19x1xf32>
    %129 = tpu.reciprocal %128 {approx = true} : vector<19x1xf32> -> vector<19x1xf32>
    %130 = vector.broadcast %129 : vector<19x1xf32> to vector<19x19xf32>
    %131 = arith.mulf %126, %130 : vector<19x19xf32>
    %cst_63 = arith.constant dense<0.000000e+00> : vector<19x8xf32>
    %132 = tpu.matmul %131, %120, %cst_63 {dimension_numbers = #tpu.dot_dimension_numbers<[1], [0], [0], [1], [0, 0, 1, 1], [], []>} : vector<19x19xf32>, vector<19x8xf32>, vector<19x8xf32> -> vector<19x8xf32>
    %c0_64 = arith.constant 0 : index
    %c8 = arith.constant 8 : index
    %133 = vector.load %arg18[%c0_64, %c8] : memref<19x32xf32, #tpu.memory_space<vmem>>, vector<19x8xf32>
    tpu.vector_store %arg18[%c0_64, %c8], %132 {strides = array<i32>} : memref<19x32xf32, #tpu.memory_space<vmem>>, vector<19x8xf32>,
    %134 = vector.extract_strided_slice %97 {offsets = [0, 16], sizes = [19, 8], strides = [1, 1]} : vector<19x96xf32> to vector<19x8xf32>
    %cst_65 = arith.constant 0.353553385 : f32
    %135 = vector.broadcast %cst_65 : f32 to vector<19x8xf32>
    %136 = arith.mulf %134, %135 : vector<19x8xf32>
    %137 = vector.extract_strided_slice %97 {offsets = [0, 48], sizes = [19, 8], strides = [1, 1]} : vector<19x96xf32> to vector<19x8xf32>
    %138 = vector.extract_strided_slice %97 {offsets = [0, 80], sizes = [19, 8], strides = [1, 1]} : vector<19x96xf32> to vector<19x8xf32>
    %cst_66 = arith.constant dense<0.000000e+00> : vector<19x19xf32>
    %139 = tpu.matmul %136, %137, %cst_66 {dimension_numbers = #tpu.dot_dimension_numbers<[1], [1], [0], [0], [0, 0, 1, 0], [], []>} : vector<19x8xf32>, vector<19x8xf32>, vector<19x19xf32> -> vector<19x19xf32>
    %cst_67 = arith.constant dense<0xFF800000> : vector<19xf32>
    %140 = vector.multi_reduction <maximumf>, %139, %cst_67 [1] : vector<19x19xf32> to vector<19xf32>
    %141 = vector.shape_cast %140 : vector<19xf32> to vector<19x1xf32>
    %142 = vector.broadcast %141 : vector<19x1xf32> to vector<19x19xf32>
    %143 = arith.subf %139, %142 : vector<19x19xf32>
    %144 = math.exp %143 : vector<19x19xf32>
    %cst_68 = arith.constant dense<0.000000e+00> : vector<19xf32>
    %145 = vector.multi_reduction <add>, %144, %cst_68 [1] : vector<19x19xf32> to vector<19xf32>
    %146 = vector.shape_cast %145 : vector<19xf32> to vector<19x1xf32>
    %147 = tpu.reciprocal %146 {approx = true} : vector<19x1xf32> -> vector<19x1xf32>
    %148 = vector.broadcast %147 : vector<19x1xf32> to vector<19x19xf32>
    %149 = arith.mulf %144, %148 : vector<19x19xf32>
    %cst_69 = arith.constant dense<0.000000e+00> : vector<19x8xf32>
    %150 = tpu.matmul %149, %138, %cst_69 {dimension_numbers = #tpu.dot_dimension_numbers<[1], [0], [0], [1], [0, 0, 1, 1], [], []>} : vector<19x19xf32>, vector<19x8xf32>, vector<19x8xf32> -> vector<19x8xf32>
    %c0_70 = arith.constant 0 : index
    %c16_71 = arith.constant 16 : index
    %151 = vector.load %arg18[%c0_70, %c16_71] : memref<19x32xf32, #tpu.memory_space<vmem>>, vector<19x8xf32>
    tpu.vector_store %arg18[%c0_70, %c16_71], %150 {strides = array<i32>} : memref<19x32xf32, #tpu.memory_space<vmem>>, vector<19x8xf32>,
    %152 = vector.extract_strided_slice %97 {offsets = [0, 24], sizes = [19, 8], strides = [1, 1]} : vector<19x96xf32> to vector<19x8xf32>
    %cst_72 = arith.constant 0.353553385 : f32
    %153 = vector.broadcast %cst_72 : f32 to vector<19x8xf32>
    %154 = arith.mulf %152, %153 : vector<19x8xf32>
    %155 = vector.extract_strided_slice %97 {offsets = [0, 56], sizes = [19, 8], strides = [1, 1]} : vector<19x96xf32> to vector<19x8xf32>
    %156 = vector.extract_strided_slice %97 {offsets = [0, 88], sizes = [19, 8], strides = [1, 1]} : vector<19x96xf32> to vector<19x8xf32>
    %cst_73 = arith.constant dense<0.000000e+00> : vector<19x19xf32>
    %157 = tpu.matmul %154, %155, %cst_73 {dimension_numbers = #tpu.dot_dimension_numbers<[1], [1], [0], [0], [0, 0, 1, 0], [], []>} : vector<19x8xf32>, vector<19x8xf32>, vector<19x19xf32> -> vector<19x19xf32>
    %cst_74 = arith.constant dense<0xFF800000> : vector<19xf32>
    %158 = vector.multi_reduction <maximumf>, %157, %cst_74 [1] : vector<19x19xf32> to vector<19xf32>
    %159 = vector.shape_cast %158 : vector<19xf32> to vector<19x1xf32>
    %160 = vector.broadcast %159 : vector<19x1xf32> to vector<19x19xf32>
    %161 = arith.subf %157, %160 : vector<19x19xf32>
    %162 = math.exp %161 : vector<19x19xf32>
    %cst_75 = arith.constant dense<0.000000e+00> : vector<19xf32>
    %163 = vector.multi_reduction <add>, %162, %cst_75 [1] : vector<19x19xf32> to vector<19xf32>
    %164 = vector.shape_cast %163 : vector<19xf32> to vector<19x1xf32>
    %165 = tpu.reciprocal %164 {approx = true} : vector<19x1xf32> -> vector<19x1xf32>
    %166 = vector.broadcast %165 : vector<19x1xf32> to vector<19x19xf32>
    %167 = arith.mulf %162, %166 : vector<19x19xf32>
    %cst_76 = arith.constant dense<0.000000e+00> : vector<19x8xf32>
    %168 = tpu.matmul %167, %156, %cst_76 {dimension_numbers = #tpu.dot_dimension_numbers<[1], [0], [0], [1], [0, 0, 1, 1], [], []>} : vector<19x19xf32>, vector<19x8xf32>, vector<19x8xf32> -> vector<19x8xf32>
    %c0_77 = arith.constant 0 : index
    %c24 = arith.constant 24 : index
    %169 = vector.load %arg18[%c0_77, %c24] : memref<19x32xf32, #tpu.memory_space<vmem>>, vector<19x8xf32>
    tpu.vector_store %arg18[%c0_77, %c24], %168 {strides = array<i32>} : memref<19x32xf32, #tpu.memory_space<vmem>>, vector<19x8xf32>,
    %c0_78 = arith.constant 0 : index
    %c0_79 = arith.constant 0 : index
    %170 = vector.load %arg18[%c0_78, %c0_79] : memref<19x32xf32, #tpu.memory_space<vmem>>, vector<19x32xf32>
    %c0_80 = arith.constant 0 : index
    %c0_81 = arith.constant 0 : index
    %c0_82 = arith.constant 0 : index
    %171 = vector.load %arg7[%c0_80, %c0_81, %c0_82] : memref<2x32x32xf32, #tpu.memory_space<vmem>>, vector<1x32x32xf32>
    %172 = vector.shape_cast %171 : vector<1x32x32xf32> to vector<32x32xf32>
    %cst_83 = arith.constant dense<0.000000e+00> : vector<19x32xf32>
    %173 = tpu.matmul %170, %172, %cst_83 {dimension_numbers = #tpu.dot_dimension_numbers<[1], [0], [0], [1], [0, 0, 1, 1], [], []>} : vector<19x32xf32>, vector<32x32xf32>, vector<19x32xf32> -> vector<19x32xf32>
    %c0_84 = arith.constant 0 : index
    %c0_85 = arith.constant 0 : index
    %c0_86 = arith.constant 0 : index
    %174 = vector.load %arg8[%c0_84, %c0_85, %c0_86] : memref<2x1x32xf32, #tpu.memory_space<vmem>>, vector<1x1x32xf32>
    %175 = vector.shape_cast %174 : vector<1x1x32xf32> to vector<1x32xf32>
    %176 = vector.broadcast %175 : vector<1x32xf32> to vector<19x32xf32>
    %177 = arith.addf %173, %176 : vector<19x32xf32>
    %178 = arith.addf %90, %177 : vector<19x32xf32>
    %c0_87 = arith.constant 0 : index
    %c0_88 = arith.constant 0 : index
    %c0_89 = arith.constant 0 : index
    %179 = vector.load %arg9[%c0_87, %c0_88, %c0_89] : memref<2x1x32xf32, #tpu.memory_space<vmem>>, vector<1x1x32xf32>
    %180 = vector.shape_cast %179 : vector<1x1x32xf32> to vector<1x32xf32>
    %c0_90 = arith.constant 0 : index
    %c0_91 = arith.constant 0 : index
    %c0_92 = arith.constant 0 : index
    %181 = vector.load %arg10[%c0_90, %c0_91, %c0_92] : memref<2x1x32xf32, #tpu.memory_space<vmem>>, vector<1x1x32xf32>
    %182 = vector.shape_cast %181 : vector<1x1x32xf32> to vector<1x32xf32>
    %cst_93 = arith.constant dense<0.000000e+00> : vector<19xf32>
    %183 = vector.multi_reduction <add>, %178, %cst_93 [1] : vector<19x32xf32> to vector<19xf32>
    %184 = vector.shape_cast %183 : vector<19xf32> to vector<19x1xf32>
    %cst_94 = arith.constant 3.200000e+01 : f32
    %185 = vector.broadcast %cst_94 : f32 to vector<19x1xf32>
    %186 = arith.divf %184, %185 : vector<19x1xf32>
    %187 = vector.broadcast %186 : vector<19x1xf32> to vector<19x32xf32>
    %188 = arith.subf %178, %187 : vector<19x32xf32>
    %189 = vector.broadcast %186 : vector<19x1xf32> to vector<19x32xf32>
    %190 = arith.subf %178, %189 : vector<19x32xf32>
    %191 = arith.mulf %188, %190 : vector<19x32xf32>
    %cst_95 = arith.constant dense<0.000000e+00> : vector<19xf32>
    %192 = vector.multi_reduction <add>, %191, %cst_95 [1] : vector<19x32xf32> to vector<19xf32>
    %193 = vector.shape_cast %192 : vector<19xf32> to vector<19x1xf32>
    %cst_96 = arith.constant 3.200000e+01 : f32
    %194 = vector.broadcast %cst_96 : f32 to vector<19x1xf32>
    %195 = arith.divf %193, %194 : vector<19x1xf32>
    %196 = vector.broadcast %186 : vector<19x1xf32> to vector<19x32xf32>
    %197 = arith.subf %178, %196 : vector<19x32xf32>
    %cst_97 = arith.constant 9.99999974E-6 : f32
    %198 = vector.broadcast %cst_97 : f32 to vector<19x1xf32>
    %199 = arith.addf %195, %198 : vector<19x1xf32>
    %200 = math.rsqrt %199 : vector<19x1xf32>
    %201 = vector.broadcast %200 : vector<19x1xf32> to vector<19x32xf32>
    %202 = arith.mulf %197, %201 : vector<19x32xf32>
    %203 = vector.broadcast %180 : vector<1x32xf32> to vector<19x32xf32>
    %204 = arith.mulf %202, %203 : vector<19x32xf32>
    %205 = vector.broadcast %182 : vector<1x32xf32> to vector<19x32xf32>
    %206 = arith.addf %204, %205 : vector<19x32xf32>
    %c0_98 = arith.constant 0 : index
    %c0_99 = arith.constant 0 : index
    %c0_100 = arith.constant 0 : index
    %207 = vector.load %arg11[%c0_98, %c0_99, %c0_100] : memref<2x32x64xf32, #tpu.memory_space<vmem>>, vector<1x32x64xf32>
    %208 = vector.shape_cast %207 : vector<1x32x64xf32> to vector<32x64xf32>
    %cst_101 = arith.constant dense<0.000000e+00> : vector<19x64xf32>
    %209 = tpu.matmul %206, %208, %cst_101 {dimension_numbers = #tpu.dot_dimension_numbers<[1], [0], [0], [1], [0, 0, 1, 1], [], []>} : vector<19x32xf32>, vector<32x64xf32>, vector<19x64xf32> -> vector<19x64xf32>
    %c0_102 = arith.constant 0 : index
    %c0_103 = arith.constant 0 : index
    %c0_104 = arith.constant 0 : index
    %210 = vector.load %arg12[%c0_102, %c0_103, %c0_104] : memref<2x1x64xf32, #tpu.memory_space<vmem>>, vector<1x1x64xf32>
    %211 = vector.shape_cast %210 : vector<1x1x64xf32> to vector<1x64xf32>
    %212 = vector.broadcast %211 : vector<1x64xf32> to vector<19x64xf32>
    %213 = arith.addf %209, %212 : vector<19x64xf32>
    %cst_105 = arith.constant 5.000000e-01 : f32
    %214 = vector.broadcast %cst_105 : f32 to vector<19x64xf32>
    %215 = arith.mulf %214, %213 : vector<19x64xf32>
    %cst_106 = arith.constant 4.471500e-02 : f32
    %216 = vector.broadcast %cst_106 : f32 to vector<19x64xf32>
    %217 = arith.mulf %216, %213 : vector<19x64xf32>
    %218 = arith.mulf %217, %213 : vector<19x64xf32>
    %219 = arith.mulf %218, %213 : vector<19x64xf32>
    %220 = arith.addf %213, %219 : vector<19x64xf32>
    %cst_107 = arith.constant 0.797884583 : f32
    %221 = vector.broadcast %cst_107 : f32 to vector<19x64xf32>
    %222 = arith.mulf %221, %220 : vector<19x64xf32>
    %223 = math.tanh %222 : vector<19x64xf32>
    %cst_108 = arith.constant 1.000000e+00 : f32
    %224 = vector.broadcast %cst_108 : f32 to vector<19x64xf32>
    %225 = arith.addf %224, %223 : vector<19x64xf32>
    %226 = arith.mulf %215, %225 : vector<19x64xf32>
    %c0_109 = arith.constant 0 : index
    %c0_110 = arith.constant 0 : index
    %c0_111 = arith.constant 0 : index
    %227 = vector.load %arg13[%c0_109, %c0_110, %c0_111] : memref<2x64x32xf32, #tpu.memory_space<vmem>>, vector<1x64x32xf32>
    %228 = vector.shape_cast %227 : vector<1x64x32xf32> to vector<64x32xf32>
    %cst_112 = arith.constant dense<0.000000e+00> : vector<19x32xf32>
    %229 = tpu.matmul %226, %228, %cst_112 {dimension_numbers = #tpu.dot_dimension_numbers<[1], [0], [0], [1], [0, 0, 1, 1], [], []>} : vector<19x64xf32>, vector<64x32xf32>, vector<19x32xf32> -> vector<19x32xf32>
    %c0_113 = arith.constant 0 : index
    %c0_114 = arith.constant 0 : index
    %c0_115 = arith.constant 0 : index
    %230 = vector.load %arg14[%c0_113, %c0_114, %c0_115] : memref<2x1x32xf32, #tpu.memory_space<vmem>>, vector<1x1x32xf32>
    %231 = vector.shape_cast %230 : vector<1x1x32xf32> to vector<1x32xf32>
    %232 = vector.broadcast %231 : vector<1x32xf32> to vector<19x32xf32>
    %233 = arith.addf %229, %232 : vector<19x32xf32>
    %234 = arith.addf %206, %233 : vector<19x32xf32>
    %c0_116 = arith.constant 0 : index
    %c0_117 = arith.constant 0 : index
    %c0_118 = arith.constant 0 : index
    %235 = vector.load %arg15[%c0_116, %c0_117, %c0_118] : memref<2x1x32xf32, #tpu.memory_space<vmem>>, vector<1x1x32xf32>
    %236 = vector.shape_cast %235 : vector<1x1x32xf32> to vector<1x32xf32>
    %c0_119 = arith.constant 0 : index
    %c0_120 = arith.constant 0 : index
    %c0_121 = arith.constant 0 : index
    %237 = vector.load %arg16[%c0_119, %c0_120, %c0_121] : memref<2x1x32xf32, #tpu.memory_space<vmem>>, vector<1x1x32xf32>
    %238 = vector.shape_cast %237 : vector<1x1x32xf32> to vector<1x32xf32>
    %cst_122 = arith.constant dense<0.000000e+00> : vector<19xf32>
    %239 = vector.multi_reduction <add>, %234, %cst_122 [1] : vector<19x32xf32> to vector<19xf32>
    %240 = vector.shape_cast %239 : vector<19xf32> to vector<19x1xf32>
    %cst_123 = arith.constant 3.200000e+01 : f32
    %241 = vector.broadcast %cst_123 : f32 to vector<19x1xf32>
    %242 = arith.divf %240, %241 : vector<19x1xf32>
    %243 = vector.broadcast %242 : vector<19x1xf32> to vector<19x32xf32>
    %244 = arith.subf %234, %243 : vector<19x32xf32>
    %245 = vector.broadcast %242 : vector<19x1xf32> to vector<19x32xf32>
    %246 = arith.subf %234, %245 : vector<19x32xf32>
    %247 = arith.mulf %244, %246 : vector<19x32xf32>
    %cst_124 = arith.constant dense<0.000000e+00> : vector<19xf32>
    %248 = vector.multi_reduction <add>, %247, %cst_124 [1] : vector<19x32xf32> to vector<19xf32>
    %249 = vector.shape_cast %248 : vector<19xf32> to vector<19x1xf32>
    %cst_125 = arith.constant 3.200000e+01 : f32
    %250 = vector.broadcast %cst_125 : f32 to vector<19x1xf32>
    %251 = arith.divf %249, %250 : vector<19x1xf32>
    %252 = vector.broadcast %242 : vector<19x1xf32> to vector<19x32xf32>
    %253 = arith.subf %234, %252 : vector<19x32xf32>
    %cst_126 = arith.constant 9.99999974E-6 : f32
    %254 = vector.broadcast %cst_126 : f32 to vector<19x1xf32>
    %255 = arith.addf %251, %254 : vector<19x1xf32>
    %256 = math.rsqrt %255 : vector<19x1xf32>
    %257 = vector.broadcast %256 : vector<19x1xf32> to vector<19x32xf32>
    %258 = arith.mulf %253, %257 : vector<19x32xf32>
    %259 = vector.broadcast %236 : vector<1x32xf32> to vector<19x32xf32>
    %260 = arith.mulf %258, %259 : vector<19x32xf32>
    %261 = vector.broadcast %238 : vector<1x32xf32> to vector<19x32xf32>
    %262 = arith.addf %260, %261 : vector<19x32xf32>
    %c1 = arith.constant 1 : index
    %c0_127 = arith.constant 0 : index
    %c0_128 = arith.constant 0 : index
    %263 = vector.load %arg5[%c1, %c0_127, %c0_128] : memref<2x32x96xf32, #tpu.memory_space<vmem>>, vector<1x32x96xf32>
    %264 = vector.shape_cast %263 : vector<1x32x96xf32> to vector<32x96xf32>
    %cst_129 = arith.constant dense<0.000000e+00> : vector<19x96xf32>
    %265 = tpu.matmul %262, %264, %cst_129 {dimension_numbers = #tpu.dot_dimension_numbers<[1], [0], [0], [1], [0, 0, 1, 1], [], []>} : vector<19x32xf32>, vector<32x96xf32>, vector<19x96xf32> -> vector<19x96xf32>
    %c1_130 = arith.constant 1 : index
    %c0_131 = arith.constant 0 : index
    %c0_132 = arith.constant 0 : index
    %266 = vector.load %arg6[%c1_130, %c0_131, %c0_132] : memref<2x1x96xf32, #tpu.memory_space<vmem>>, vector<1x1x96xf32>
    %267 = vector.shape_cast %266 : vector<1x1x96xf32> to vector<1x96xf32>
    %268 = vector.broadcast %267 : vector<1x96xf32> to vector<19x96xf32>
    %269 = arith.addf %265, %268 : vector<19x96xf32>
    %270 = vector.extract_strided_slice %269 {offsets = [0, 0], sizes = [19, 8], strides = [1, 1]} : vector<19x96xf32> to vector<19x8xf32>
    %cst_133 = arith.constant 0.353553385 : f32
    %271 = vector.broadcast %cst_133 : f32 to vector<19x8xf32>
    %272 = arith.mulf %270, %271 : vector<19x8xf32>
    %273 = vector.extract_strided_slice %269 {offsets = [0, 32], sizes = [19, 8], strides = [1, 1]} : vector<19x96xf32> to vector<19x8xf32>
    %274 = vector.extract_strided_slice %269 {offsets = [0, 64], sizes = [19, 8], strides = [1, 1]} : vector<19x96xf32> to vector<19x8xf32>
    %cst_134 = arith.constant dense<0.000000e+00> : vector<19x19xf32>
    %275 = tpu.matmul %272, %273, %cst_134 {dimension_numbers = #tpu.dot_dimension_numbers<[1], [1], [0], [0], [0, 0, 1, 0], [], []>} : vector<19x8xf32>, vector<19x8xf32>, vector<19x19xf32> -> vector<19x19xf32>
    %cst_135 = arith.constant dense<0xFF800000> : vector<19xf32>
    %276 = vector.multi_reduction <maximumf>, %275, %cst_135 [1] : vector<19x19xf32> to vector<19xf32>
    %277 = vector.shape_cast %276 : vector<19xf32> to vector<19x1xf32>
    %278 = vector.broadcast %277 : vector<19x1xf32> to vector<19x19xf32>
    %279 = arith.subf %275, %278 : vector<19x19xf32>
    %280 = math.exp %279 : vector<19x19xf32>
    %cst_136 = arith.constant dense<0.000000e+00> : vector<19xf32>
    %281 = vector.multi_reduction <add>, %280, %cst_136 [1] : vector<19x19xf32> to vector<19xf32>
    %282 = vector.shape_cast %281 : vector<19xf32> to vector<19x1xf32>
    %283 = tpu.reciprocal %282 {approx = true} : vector<19x1xf32> -> vector<19x1xf32>
    %284 = vector.broadcast %283 : vector<19x1xf32> to vector<19x19xf32>
    %285 = arith.mulf %280, %284 : vector<19x19xf32>
    %cst_137 = arith.constant dense<0.000000e+00> : vector<19x8xf32>
    %286 = tpu.matmul %285, %274, %cst_137 {dimension_numbers = #tpu.dot_dimension_numbers<[1], [0], [0], [1], [0, 0, 1, 1], [], []>} : vector<19x19xf32>, vector<19x8xf32>, vector<19x8xf32> -> vector<19x8xf32>
    %c0_138 = arith.constant 0 : index
    %c0_139 = arith.constant 0 : index
    %287 = vector.load %arg18[%c0_138, %c0_139] : memref<19x32xf32, #tpu.memory_space<vmem>>, vector<19x8xf32>
    tpu.vector_store %arg18[%c0_138, %c0_139], %286 {strides = array<i32>} : memref<19x32xf32, #tpu.memory_space<vmem>>, vector<19x8xf32>,
    %288 = vector.extract_strided_slice %269 {offsets = [0, 8], sizes = [19, 8], strides = [1, 1]} : vector<19x96xf32> to vector<19x8xf32>
    %cst_140 = arith.constant 0.353553385 : f32
    %289 = vector.broadcast %cst_140 : f32 to vector<19x8xf32>
    %290 = arith.mulf %288, %289 : vector<19x8xf32>
    %291 = vector.extract_strided_slice %269 {offsets = [0, 40], sizes = [19, 8], strides = [1, 1]} : vector<19x96xf32> to vector<19x8xf32>
    %292 = vector.extract_strided_slice %269 {offsets = [0, 72], sizes = [19, 8], strides = [1, 1]} : vector<19x96xf32> to vector<19x8xf32>
    %cst_141 = arith.constant dense<0.000000e+00> : vector<19x19xf32>
    %293 = tpu.matmul %290, %291, %cst_141 {dimension_numbers = #tpu.dot_dimension_numbers<[1], [1], [0], [0], [0, 0, 1, 0], [], []>} : vector<19x8xf32>, vector<19x8xf32>, vector<19x19xf32> -> vector<19x19xf32>
    %cst_142 = arith.constant dense<0xFF800000> : vector<19xf32>
    %294 = vector.multi_reduction <maximumf>, %293, %cst_142 [1] : vector<19x19xf32> to vector<19xf32>
    %295 = vector.shape_cast %294 : vector<19xf32> to vector<19x1xf32>
    %296 = vector.broadcast %295 : vector<19x1xf32> to vector<19x19xf32>
    %297 = arith.subf %293, %296 : vector<19x19xf32>
    %298 = math.exp %297 : vector<19x19xf32>
    %cst_143 = arith.constant dense<0.000000e+00> : vector<19xf32>
    %299 = vector.multi_reduction <add>, %298, %cst_143 [1] : vector<19x19xf32> to vector<19xf32>
    %300 = vector.shape_cast %299 : vector<19xf32> to vector<19x1xf32>
    %301 = tpu.reciprocal %300 {approx = true} : vector<19x1xf32> -> vector<19x1xf32>
    %302 = vector.broadcast %301 : vector<19x1xf32> to vector<19x19xf32>
    %303 = arith.mulf %298, %302 : vector<19x19xf32>
    %cst_144 = arith.constant dense<0.000000e+00> : vector<19x8xf32>
    %304 = tpu.matmul %303, %292, %cst_144 {dimension_numbers = #tpu.dot_dimension_numbers<[1], [0], [0], [1], [0, 0, 1, 1], [], []>} : vector<19x19xf32>, vector<19x8xf32>, vector<19x8xf32> -> vector<19x8xf32>
    %c0_145 = arith.constant 0 : index
    %c8_146 = arith.constant 8 : index
    %305 = vector.load %arg18[%c0_145, %c8_146] : memref<19x32xf32, #tpu.memory_space<vmem>>, vector<19x8xf32>
    tpu.vector_store %arg18[%c0_145, %c8_146], %304 {strides = array<i32>} : memref<19x32xf32, #tpu.memory_space<vmem>>, vector<19x8xf32>,
    %306 = vector.extract_strided_slice %269 {offsets = [0, 16], sizes = [19, 8], strides = [1, 1]} : vector<19x96xf32> to vector<19x8xf32>
    %cst_147 = arith.constant 0.353553385 : f32
    %307 = vector.broadcast %cst_147 : f32 to vector<19x8xf32>
    %308 = arith.mulf %306, %307 : vector<19x8xf32>
    %309 = vector.extract_strided_slice %269 {offsets = [0, 48], sizes = [19, 8], strides = [1, 1]} : vector<19x96xf32> to vector<19x8xf32>
    %310 = vector.extract_strided_slice %269 {offsets = [0, 80], sizes = [19, 8], strides = [1, 1]} : vector<19x96xf32> to vector<19x8xf32>
    %cst_148 = arith.constant dense<0.000000e+00> : vector<19x19xf32>
    %311 = tpu.matmul %308, %309, %cst_148 {dimension_numbers = #tpu.dot_dimension_numbers<[1], [1], [0], [0], [0, 0, 1, 0], [], []>} : vector<19x8xf32>, vector<19x8xf32>, vector<19x19xf32> -> vector<19x19xf32>
    %cst_149 = arith.constant dense<0xFF800000> : vector<19xf32>
    %312 = vector.multi_reduction <maximumf>, %311, %cst_149 [1] : vector<19x19xf32> to vector<19xf32>
    %313 = vector.shape_cast %312 : vector<19xf32> to vector<19x1xf32>
    %314 = vector.broadcast %313 : vector<19x1xf32> to vector<19x19xf32>
    %315 = arith.subf %311, %314 : vector<19x19xf32>
    %316 = math.exp %315 : vector<19x19xf32>
    %cst_150 = arith.constant dense<0.000000e+00> : vector<19xf32>
    %317 = vector.multi_reduction <add>, %316, %cst_150 [1] : vector<19x19xf32> to vector<19xf32>
    %318 = vector.shape_cast %317 : vector<19xf32> to vector<19x1xf32>
    %319 = tpu.reciprocal %318 {approx = true} : vector<19x1xf32> -> vector<19x1xf32>
    %320 = vector.broadcast %319 : vector<19x1xf32> to vector<19x19xf32>
    %321 = arith.mulf %316, %320 : vector<19x19xf32>
    %cst_151 = arith.constant dense<0.000000e+00> : vector<19x8xf32>
    %322 = tpu.matmul %321, %310, %cst_151 {dimension_numbers = #tpu.dot_dimension_numbers<[1], [0], [0], [1], [0, 0, 1, 1], [], []>} : vector<19x19xf32>, vector<19x8xf32>, vector<19x8xf32> -> vector<19x8xf32>
    %c0_152 = arith.constant 0 : index
    %c16_153 = arith.constant 16 : index
    %323 = vector.load %arg18[%c0_152, %c16_153] : memref<19x32xf32, #tpu.memory_space<vmem>>, vector<19x8xf32>
    tpu.vector_store %arg18[%c0_152, %c16_153], %322 {strides = array<i32>} : memref<19x32xf32, #tpu.memory_space<vmem>>, vector<19x8xf32>,
    %324 = vector.extract_strided_slice %269 {offsets = [0, 24], sizes = [19, 8], strides = [1, 1]} : vector<19x96xf32> to vector<19x8xf32>
    %cst_154 = arith.constant 0.353553385 : f32
    %325 = vector.broadcast %cst_154 : f32 to vector<19x8xf32>
    %326 = arith.mulf %324, %325 : vector<19x8xf32>
    %327 = vector.extract_strided_slice %269 {offsets = [0, 56], sizes = [19, 8], strides = [1, 1]} : vector<19x96xf32> to vector<19x8xf32>
    %328 = vector.extract_strided_slice %269 {offsets = [0, 88], sizes = [19, 8], strides = [1, 1]} : vector<19x96xf32> to vector<19x8xf32>
    %cst_155 = arith.constant dense<0.000000e+00> : vector<19x19xf32>
    %329 = tpu.matmul %326, %327, %cst_155 {dimension_numbers = #tpu.dot_dimension_numbers<[1], [1], [0], [0], [0, 0, 1, 0], [], []>} : vector<19x8xf32>, vector<19x8xf32>, vector<19x19xf32> -> vector<19x19xf32>
    %cst_156 = arith.constant dense<0xFF800000> : vector<19xf32>
    %330 = vector.multi_reduction <maximumf>, %329, %cst_156 [1] : vector<19x19xf32> to vector<19xf32>
    %331 = vector.shape_cast %330 : vector<19xf32> to vector<19x1xf32>
    %332 = vector.broadcast %331 : vector<19x1xf32> to vector<19x19xf32>
    %333 = arith.subf %329, %332 : vector<19x19xf32>
    %334 = math.exp %333 : vector<19x19xf32>
    %cst_157 = arith.constant dense<0.000000e+00> : vector<19xf32>
    %335 = vector.multi_reduction <add>, %334, %cst_157 [1] : vector<19x19xf32> to vector<19xf32>
    %336 = vector.shape_cast %335 : vector<19xf32> to vector<19x1xf32>
    %337 = tpu.reciprocal %336 {approx = true} : vector<19x1xf32> -> vector<19x1xf32>
    %338 = vector.broadcast %337 : vector<19x1xf32> to vector<19x19xf32>
    %339 = arith.mulf %334, %338 : vector<19x19xf32>
    %cst_158 = arith.constant dense<0.000000e+00> : vector<19x8xf32>
    %340 = tpu.matmul %339, %328, %cst_158 {dimension_numbers = #tpu.dot_dimension_numbers<[1], [0], [0], [1], [0, 0, 1, 1], [], []>} : vector<19x19xf32>, vector<19x8xf32>, vector<19x8xf32> -> vector<19x8xf32>
    %c0_159 = arith.constant 0 : index
    %c24_160 = arith.constant 24 : index
    %341 = vector.load %arg18[%c0_159, %c24_160] : memref<19x32xf32, #tpu.memory_space<vmem>>, vector<19x8xf32>
    tpu.vector_store %arg18[%c0_159, %c24_160], %340 {strides = array<i32>} : memref<19x32xf32, #tpu.memory_space<vmem>>, vector<19x8xf32>,
    %c0_161 = arith.constant 0 : index
    %c0_162 = arith.constant 0 : index
    %342 = vector.load %arg18[%c0_161, %c0_162] : memref<19x32xf32, #tpu.memory_space<vmem>>, vector<19x32xf32>
    %c1_163 = arith.constant 1 : index
    %c0_164 = arith.constant 0 : index
    %c0_165 = arith.constant 0 : index
    %343 = vector.load %arg7[%c1_163, %c0_164, %c0_165] : memref<2x32x32xf32, #tpu.memory_space<vmem>>, vector<1x32x32xf32>
    %344 = vector.shape_cast %343 : vector<1x32x32xf32> to vector<32x32xf32>
    %cst_166 = arith.constant dense<0.000000e+00> : vector<19x32xf32>
    %345 = tpu.matmul %342, %344, %cst_166 {dimension_numbers = #tpu.dot_dimension_numbers<[1], [0], [0], [1], [0, 0, 1, 1], [], []>} : vector<19x32xf32>, vector<32x32xf32>, vector<19x32xf32> -> vector<19x32xf32>
    %c1_167 = arith.constant 1 : index
    %c0_168 = arith.constant 0 : index
    %c0_169 = arith.constant 0 : index
    %346 = vector.load %arg8[%c1_167, %c0_168, %c0_169] : memref<2x1x32xf32, #tpu.memory_space<vmem>>, vector<1x1x32xf32>
    %347 = vector.shape_cast %346 : vector<1x1x32xf32> to vector<1x32xf32>
    %348 = vector.broadcast %347 : vector<1x32xf32> to vector<19x32xf32>
    %349 = arith.addf %345, %348 : vector<19x32xf32>
    %350 = arith.addf %262, %349 : vector<19x32xf32>
    %c1_170 = arith.constant 1 : index
    %c0_171 = arith.constant 0 : index
    %c0_172 = arith.constant 0 : index
    %351 = vector.load %arg9[%c1_170, %c0_171, %c0_172] : memref<2x1x32xf32, #tpu.memory_space<vmem>>, vector<1x1x32xf32>
    %352 = vector.shape_cast %351 : vector<1x1x32xf32> to vector<1x32xf32>
    %c1_173 = arith.constant 1 : index
    %c0_174 = arith.constant 0 : index
    %c0_175 = arith.constant 0 : index
    %353 = vector.load %arg10[%c1_173, %c0_174, %c0_175] : memref<2x1x32xf32, #tpu.memory_space<vmem>>, vector<1x1x32xf32>
    %354 = vector.shape_cast %353 : vector<1x1x32xf32> to vector<1x32xf32>
    %cst_176 = arith.constant dense<0.000000e+00> : vector<19xf32>
    %355 = vector.multi_reduction <add>, %350, %cst_176 [1] : vector<19x32xf32> to vector<19xf32>
    %356 = vector.shape_cast %355 : vector<19xf32> to vector<19x1xf32>
    %cst_177 = arith.constant 3.200000e+01 : f32
    %357 = vector.broadcast %cst_177 : f32 to vector<19x1xf32>
    %358 = arith.divf %356, %357 : vector<19x1xf32>
    %359 = vector.broadcast %358 : vector<19x1xf32> to vector<19x32xf32>
    %360 = arith.subf %350, %359 : vector<19x32xf32>
    %361 = vector.broadcast %358 : vector<19x1xf32> to vector<19x32xf32>
    %362 = arith.subf %350, %361 : vector<19x32xf32>
    %363 = arith.mulf %360, %362 : vector<19x32xf32>
    %cst_178 = arith.constant dense<0.000000e+00> : vector<19xf32>
    %364 = vector.multi_reduction <add>, %363, %cst_178 [1] : vector<19x32xf32> to vector<19xf32>
    %365 = vector.shape_cast %364 : vector<19xf32> to vector<19x1xf32>
    %cst_179 = arith.constant 3.200000e+01 : f32
    %366 = vector.broadcast %cst_179 : f32 to vector<19x1xf32>
    %367 = arith.divf %365, %366 : vector<19x1xf32>
    %368 = vector.broadcast %358 : vector<19x1xf32> to vector<19x32xf32>
    %369 = arith.subf %350, %368 : vector<19x32xf32>
    %cst_180 = arith.constant 9.99999974E-6 : f32
    %370 = vector.broadcast %cst_180 : f32 to vector<19x1xf32>
    %371 = arith.addf %367, %370 : vector<19x1xf32>
    %372 = math.rsqrt %371 : vector<19x1xf32>
    %373 = vector.broadcast %372 : vector<19x1xf32> to vector<19x32xf32>
    %374 = arith.mulf %369, %373 : vector<19x32xf32>
    %375 = vector.broadcast %352 : vector<1x32xf32> to vector<19x32xf32>
    %376 = arith.mulf %374, %375 : vector<19x32xf32>
    %377 = vector.broadcast %354 : vector<1x32xf32> to vector<19x32xf32>
    %378 = arith.addf %376, %377 : vector<19x32xf32>
    %c1_181 = arith.constant 1 : index
    %c0_182 = arith.constant 0 : index
    %c0_183 = arith.constant 0 : index
    %379 = vector.load %arg11[%c1_181, %c0_182, %c0_183] : memref<2x32x64xf32, #tpu.memory_space<vmem>>, vector<1x32x64xf32>
    %380 = vector.shape_cast %379 : vector<1x32x64xf32> to vector<32x64xf32>
    %cst_184 = arith.constant dense<0.000000e+00> : vector<19x64xf32>
    %381 = tpu.matmul %378, %380, %cst_184 {dimension_numbers = #tpu.dot_dimension_numbers<[1], [0], [0], [1], [0, 0, 1, 1], [], []>} : vector<19x32xf32>, vector<32x64xf32>, vector<19x64xf32> -> vector<19x64xf32>
    %c1_185 = arith.constant 1 : index
    %c0_186 = arith.constant 0 : index
    %c0_187 = arith.constant 0 : index
    %382 = vector.load %arg12[%c1_185, %c0_186, %c0_187] : memref<2x1x64xf32, #tpu.memory_space<vmem>>, vector<1x1x64xf32>
    %383 = vector.shape_cast %382 : vector<1x1x64xf32> to vector<1x64xf32>
    %384 = vector.broadcast %383 : vector<1x64xf32> to vector<19x64xf32>
    %385 = arith.addf %381, %384 : vector<19x64xf32>
    %cst_188 = arith.constant 5.000000e-01 : f32
    %386 = vector.broadcast %cst_188 : f32 to vector<19x64xf32>
    %387 = arith.mulf %386, %385 : vector<19x64xf32>
    %cst_189 = arith.constant 4.471500e-02 : f32
    %388 = vector.broadcast %cst_189 : f32 to vector<19x64xf32>
    %389 = arith.mulf %388, %385 : vector<19x64xf32>
    %390 = arith.mulf %389, %385 : vector<19x64xf32>
    %391 = arith.mulf %390, %385 : vector<19x64xf32>
    %392 = arith.addf %385, %391 : vector<19x64xf32>
    %cst_190 = arith.constant 0.797884583 : f32
    %393 = vector.broadcast %cst_190 : f32 to vector<19x64xf32>
    %394 = arith.mulf %393, %392 : vector<19x64xf32>
    %395 = math.tanh %394 : vector<19x64xf32>
    %cst_191 = arith.constant 1.000000e+00 : f32
    %396 = vector.broadcast %cst_191 : f32 to vector<19x64xf32>
    %397 = arith.addf %396, %395 : vector<19x64xf32>
    %398 = arith.mulf %387, %397 : vector<19x64xf32>
    %c1_192 = arith.constant 1 : index
    %c0_193 = arith.constant 0 : index
    %c0_194 = arith.constant 0 : index
    %399 = vector.load %arg13[%c1_192, %c0_193, %c0_194] : memref<2x64x32xf32, #tpu.memory_space<vmem>>, vector<1x64x32xf32>
    %400 = vector.shape_cast %399 : vector<1x64x32xf32> to vector<64x32xf32>
    %cst_195 = arith.constant dense<0.000000e+00> : vector<19x32xf32>
    %401 = tpu.matmul %398, %400, %cst_195 {dimension_numbers = #tpu.dot_dimension_numbers<[1], [0], [0], [1], [0, 0, 1, 1], [], []>} : vector<19x64xf32>, vector<64x32xf32>, vector<19x32xf32> -> vector<19x32xf32>
    %c1_196 = arith.constant 1 : index
    %c0_197 = arith.constant 0 : index
    %c0_198 = arith.constant 0 : index
    %402 = vector.load %arg14[%c1_196, %c0_197, %c0_198] : memref<2x1x32xf32, #tpu.memory_space<vmem>>, vector<1x1x32xf32>
    %403 = vector.shape_cast %402 : vector<1x1x32xf32> to vector<1x32xf32>
    %404 = vector.broadcast %403 : vector<1x32xf32> to vector<19x32xf32>
    %405 = arith.addf %401, %404 : vector<19x32xf32>
    %406 = arith.addf %378, %405 : vector<19x32xf32>
    %c1_199 = arith.constant 1 : index
    %c0_200 = arith.constant 0 : index
    %c0_201 = arith.constant 0 : index
    %407 = vector.load %arg15[%c1_199, %c0_200, %c0_201] : memref<2x1x32xf32, #tpu.memory_space<vmem>>, vector<1x1x32xf32>
    %408 = vector.shape_cast %407 : vector<1x1x32xf32> to vector<1x32xf32>
    %c1_202 = arith.constant 1 : index
    %c0_203 = arith.constant 0 : index
    %c0_204 = arith.constant 0 : index
    %409 = vector.load %arg16[%c1_202, %c0_203, %c0_204] : memref<2x1x32xf32, #tpu.memory_space<vmem>>, vector<1x1x32xf32>
    %410 = vector.shape_cast %409 : vector<1x1x32xf32> to vector<1x32xf32>
    %cst_205 = arith.constant dense<0.000000e+00> : vector<19xf32>
    %411 = vector.multi_reduction <add>, %406, %cst_205 [1] : vector<19x32xf32> to vector<19xf32>
    %412 = vector.shape_cast %411 : vector<19xf32> to vector<19x1xf32>
    %cst_206 = arith.constant 3.200000e+01 : f32
    %413 = vector.broadcast %cst_206 : f32 to vector<19x1xf32>
    %414 = arith.divf %412, %413 : vector<19x1xf32>
    %415 = vector.broadcast %414 : vector<19x1xf32> to vector<19x32xf32>
    %416 = arith.subf %406, %415 : vector<19x32xf32>
    %417 = vector.broadcast %414 : vector<19x1xf32> to vector<19x32xf32>
    %418 = arith.subf %406, %417 : vector<19x32xf32>
    %419 = arith.mulf %416, %418 : vector<19x32xf32>
    %cst_207 = arith.constant dense<0.000000e+00> : vector<19xf32>
    %420 = vector.multi_reduction <add>, %419, %cst_207 [1] : vector<19x32xf32> to vector<19xf32>
    %421 = vector.shape_cast %420 : vector<19xf32> to vector<19x1xf32>
    %cst_208 = arith.constant 3.200000e+01 : f32
    %422 = vector.broadcast %cst_208 : f32 to vector<19x1xf32>
    %423 = arith.divf %421, %422 : vector<19x1xf32>
    %424 = vector.broadcast %414 : vector<19x1xf32> to vector<19x32xf32>
    %425 = arith.subf %406, %424 : vector<19x32xf32>
    %cst_209 = arith.constant 9.99999974E-6 : f32
    %426 = vector.broadcast %cst_209 : f32 to vector<19x1xf32>
    %427 = arith.addf %423, %426 : vector<19x1xf32>
    %428 = math.rsqrt %427 : vector<19x1xf32>
    %429 = vector.broadcast %428 : vector<19x1xf32> to vector<19x32xf32>
    %430 = arith.mulf %425, %429 : vector<19x32xf32>
    %431 = vector.broadcast %408 : vector<1x32xf32> to vector<19x32xf32>
    %432 = arith.mulf %430, %431 : vector<19x32xf32>
    %433 = vector.broadcast %410 : vector<1x32xf32> to vector<19x32xf32>
    %434 = arith.addf %432, %433 : vector<19x32xf32>
    %c0_210 = arith.constant 0 : index
    %c0_211 = arith.constant 0 : index
    %435 = vector.load %arg17[%c0_210, %c0_211] : memref<19x32xf32, #tpu.memory_space<vmem>>, vector<19x32xf32>
    tpu.vector_store %arg17[%c0_210, %c0_211], %434 {strides = array<i32>} : memref<19x32xf32, #tpu.memory_space<vmem>>, vector<19x32xf32>,
    return
  }
}

</mosaic_0001>

<bundles_post_ra>
// kernel: squeeze.1
= control target key start
LH: loop header
LB: loop body
LE: loop exit
PB: predicated region body
PF: predicated region fallthrough
CT: control target
= control target key end

     0   :  { %s721_s8 = smov 124   ;;  %s722_s9 = smov 126   ;;  %vm522_vm0 = vcmask 1014784   ;;  %vm535_vm1 = vcmask 1022976   ;;  %vm549_vm2 = vcmask 1039360   ;;  %vm8_vm3 = vcmask 39936   ;;  %s1138_s0 = inlined_call_operand.vmem [shape: f32[400], index: 0, kind: input, shape index: {}]   ;;  %s1139_s1 = inlined_call_operand.vmem [shape: f32[80,5], index: 1, kind: output, shape index: {}]  }
   0x1   :  { %v5_v0 = vld [vmem:[%s1138_s0] sm:$0xf]  ;;  %s720_s0 = smov 127   ;;  %s723_s10 = smov 123   ;;  %vm526_vm4 = vcmask 31744   ;;  %vm539_vm5 = vcmask 23552  }
   0x2   :  { %6 = vst [vmem:[#allocation0] sm:$0xf] %v5_v0  ;;  %s724_s11 = smov 122   ;;  %s725_s12 = smov 121   ;;  %vm529_vm6 = vcmask 39968   ;;  %vm542_vm7 = vcmask 39960  }
   0x3   :  { %s726_s13 = smov 119   ;;  %s727_s14 = smov 118   ;;  %vm553_vm8 = vcmask 7168   ;;  %vm556_vm9 = vcmask 39944  }
   0x4   :  { %s728_s15 = smov 117   ;;  %s729_s16 = smov 116  }
   0x5   :  { %s730_s17 = smov 114   ;;  %s731_s18 = smov 113  }
   0x6   :  { %s732_s19 = smov 111   ;;  %s733_s20 = smov 109  }
   0x7   :  { %s734_s21 = smov 108   ;;  %s735_s22 = smov 106  }
   0x8   :  { %s736_s23 = smov 104   ;;  %s737_s24 = smov 103  }
   0x9   :  { %v11_v1 = vld [vmem:[#allocation0 + $0x3] sm:$0x1]   ;;  %v25_v2 = vld [vmem:[#allocation0 + $0x2] sm:$0x1]   ;;  %v18_v3 = vld [vmem:[#allocation0 + $0x1] sm:$0x1]  }
   0xa   :  { %12 = vrot.lane.b32.xlu0 %v11_v1, %s720_s0  ;;  %26 = vrot.lane.b32.xlu1 %v25_v2, %s721_s8  ;;  %v31_v4 = vld [vmem:[#allocation0] sm:$0x1]   ;;  %v38_v5 = vld [vmem:[#allocation0 + $0x3] sm:$0x1]   ;;  %v45_v6 = vld [vmem:[#allocation0 + $0x1] sm:$0x1]  }
   0xb   :  { %v52_v7 = vld [vmem:[#allocation0 + $0x2] sm:$0x1]   ;;  %v58_v8 = vld [vmem:[#allocation0] sm:$0x1]   ;;  %v65_v9 = vld [vmem:[#allocation0 + $0x3] sm:$0x1]  }
   0xc   :  { %v72_v10 = vld [vmem:[#allocation0 + $0x1] sm:$0x1]   ;;  %v79_v11 = vld [vmem:[#allocation0 + $0x2] sm:$0x1]   ;;  %v85_v12 = vld [vmem:[#allocation0] sm:$0x1]  }
   0xd   :  { %v92_v13 = vld [vmem:[#allocation0 + $0x1] sm:$0x1]   ;;  %v99_v14 = vld [vmem:[#allocation0 + $0x2] sm:$0x1]   ;;  %v105_v15 = vld [vmem:[#allocation0] sm:$0x1]  }
   0xe   :  { %19 = vrot.lane.b32.xlu0 %v18_v3, %s722_s9  ;;  %32 = vrot.lane.b32.xlu1 %v31_v4, %s723_s10  ;;  %v112_v16 = vld [vmem:[#allocation0 + $0x1] sm:$0x1]   ;;  %v119_v17 = vld [vmem:[#allocation0 + $0x2] sm:$0x1]   ;;  %v125_v18 = vld [vmem:[#allocation0] sm:$0x1]  }
   0xf   :  { %v132_v19 = vld [vmem:[#allocation0 + $0x1] sm:$0x1]   ;;  %v139_v20 = vld [vmem:[#allocation0 + $0x2] sm:$0x1]   ;;  %s738_s25 = smov 101   ;;  %s739_s26 = smov 99  }
  0x10   :  { %v145_v21 = vld [vmem:[#allocation0] sm:$0x1]   ;;  %v152_v22 = vld [vmem:[#allocation0 + $0x1] sm:$0x1]   ;;  %s740_s27 = smov 98   ;;  %s741_s28 = smov 96  }
  0x11   :  { %v159_v23 = vld [vmem:[#allocation0 + $0x2] sm:$0x1]   ;;  %v165_v24 = vld [vmem:[#allocation0] sm:$0x1]   ;;  %s742_s29 = smov 94   ;;  %s743_s30 = smov 93  }
  0x12   :  { %39 = vrot.lane.b32.xlu0 %v38_v5, %s724_s11  ;;  %46 = vrot.lane.b32.xlu1 %v45_v6, %s725_s12  ;;  %v172_v25 = vld [vmem:[#allocation0 + $0x1] sm:$0x1]   ;;  %v179_v26 = vld [vmem:[#allocation0 + $0x2] sm:$0x1]   ;;  %s744_s2 = smov 91   ;;  %s745_s3 = smov 89  }
  0x13   :  { %v185_v27 = vld [vmem:[#allocation0] sm:$0x1]   ;;  %v192_v28 = vld [vmem:[#allocation0 + $0x1] sm:$0x1]   ;;  %s746_s4 = smov 88   ;;  %s747_s5 = smov 86  }
  0x14   :  { %v199_v29 = vld [vmem:[#allocation0 + $0x2] sm:$0x1]   ;;  %v205_v30 = vld [vmem:[#allocation0] sm:$0x1]   ;;  %s748_s6 = smov 84   ;;  %s749_s7 = smov 83  }
  0x15   :  { %v212_v31 = vld [vmem:[#allocation0 + $0x1] sm:$0x1]   ;;  %v219_v32 = vld [vmem:[#allocation0 + $0x2] sm:$0x1]   ;;  %s750_s0 = smov 81   ;;  %s751_s8 = smov 79  }
  0x16   :  { %53 = vrot.lane.b32.xlu0 %v52_v7, %s726_s13  ;;  %59 = vrot.lane.b32.xlu1 %v58_v8, %s727_s14  ;;  %v225_v33 = vld [vmem:[#allocation0] sm:$0x1]   ;;  %v232_v34 = vld [vmem:[#allocation0 + $0x1] sm:$0x1]   ;;  %s752_s9 = smov 78   ;;  %s753_s10 = smov 76  }
  0x17   :  { %v239_v35 = vld [vmem:[#allocation0 + $0x2] sm:$0x1]   ;;  %v245_v36 = vld [vmem:[#allocation0] sm:$0x1]   ;;  %s754_s11 = smov 74   ;;  %s755_s12 = smov 73  }
  0x18   :  { %v252_v37 = vld [vmem:[#allocation0 + $0x1] sm:$0x1]   ;;  %v259_v38 = vld [vmem:[#allocation0 + $0x2] sm:$0x1]   ;;  %s756_s13 = smov 71   ;;  %s757_s14 = smov 69  }
  0x19   :  { %v265_v39 = vld [vmem:[#allocation0] sm:$0x1]   ;;  %v272_v40 = vld [vmem:[#allocation0 + $0x1] sm:$0x1]   ;;  %v279_v41 = vld [vmem:[#allocation0 + $0x2] sm:$0x1]  }
  0x1a   :  { %66 = vrot.lane.b32.xlu0 %v65_v9, %s728_s15  ;;  %73 = vrot.lane.b32.xlu1 %v72_v10, %s729_s16  ;;  %s758_s15 = smov 68   ;;  %s759_s16 = smov 66   ;;  %v285_v42 = vld [vmem:[#allocation0] sm:$0x1]   ;;  %v292_v43 = vld [vmem:[#allocation0 + $0x1] sm:$0x1]  }
  0x1b   :  { %v299_v44 = vld [vmem:[#allocation0 + $0x2] sm:$0x1]   ;;  %v305_v45 = vld [vmem:[#allocation0] sm:$0x1]   ;;  %v312_v46 = vld [vmem:[#allocation0 + $0x1] sm:$0x1]  }
  0x1c   :  { %v319_v47 = vld [vmem:[#allocation0 + $0x2] sm:$0x1]   ;;  %v325_v48 = vld [vmem:[#allocation0] sm:$0x1]   ;;  %v332_v49 = vld [vmem:[#allocation0 + $0x1] sm:$0x1]  }
  0x1d   :  { %v339_v50 = vld [vmem:[#allocation0 + $0x2] sm:$0x1]   ;;  %v521_v52 = vld [vmem:[#allocation0 + $0x3] sm:$0x1]   ;;  %v532_v53 = vld [vmem:[#allocation0] sm:$0x1]  }
  0x1e   :  { %80 = vrot.lane.b32.xlu0 %v79_v11, %s730_s17  ;;  %86 = vrot.lane.b32.xlu1 %v85_v12, %s731_s18  ;;  %s760_s17 = smov 64   ;;  %s761_s18 = smov 63   ;;  %v519_v51 = vld [vmem:[#allocation0 + $0x2] sm:$0x1]   ;;  %v534_v54 = vld [vmem:[#allocation0 + $0x1] sm:$0x1]  }
  0x1f   :  { %v523_v55 = vsel %vm522_vm0, %v521_v52, %v519_v51  ;;  %v536_v56 = vsel %vm535_vm1, %v534_v54, %v532_v53  ;;  %v546_v57 = vld [vmem:[#allocation0 + $0x1] sm:$0x1]   ;;  %v548_v58 = vld [vmem:[#allocation0 + $0x2] sm:$0x1]   ;;  %v345_v60 = vld [vmem:[#allocation0] sm:$0x1]  }
  0x20   :  { %v550_v59 = vsel %vm549_vm2, %v548_v58, %v546_v57  ;;  %v352_v61 = vld [vmem:[#allocation0 + $0x1] sm:$0x1]   ;;  %v359_v62 = vld [vmem:[#allocation0 + $0x2] sm:$0x1]   ;;  %v365_v63 = vld [vmem:[#allocation0] sm:$0x1]  }
  0x21   :  { %v372_v0 = vld [vmem:[#allocation0 + $0x1] sm:$0x1]   ;;  %v379_v1 = vld [vmem:[#allocation0 + $0x2] sm:$0x1]   ;;  %v385_v2 = vld [vmem:[#allocation0] sm:$0x1]  }
  0x22   :  { %93 = vrot.lane.b32.xlu0 %v92_v13, %s732_s19  ;;  %100 = vrot.lane.b32.xlu1 %v99_v14, %s733_s20  ;;  %s762_s19 = smov 61   ;;  %s763_s20 = smov 59   ;;  %v392_v5 = vld [vmem:[#allocation0 + $0x1] sm:$0x1]   ;;  %v399_v6 = vld [vmem:[#allocation0 + $0x2] sm:$0x1]  }
  0x23   :  { %v405_v9 = vld [vmem:[#allocation0] sm:$0x1]   ;;  %v412_v10 = vld [vmem:[#allocation0 + $0x1] sm:$0x1]   ;;  %v419_v13 = vld [vmem:[#allocation0 + $0x2] sm:$0x1]  }
  0x24   :  { %v425_v14 = vld [vmem:[#allocation0] sm:$0x1]  }
  0x26   :  { %106 = vrot.lane.b32.xlu0 %v105_v15, %s734_s21  ;;  %113 = vrot.lane.b32.xlu1 %v112_v16, %s735_s22  ;;  %s764_s21 = smov 58   ;;  %s765_s22 = smov 56  }
  0x2a   :  { %120 = vrot.lane.b32.xlu0 %v119_v17, %s736_s23  ;;  %126 = vrot.lane.b32.xlu1 %v125_v18, %s737_s24  ;;  %s766_s23 = smov 54   ;;  %s767_s24 = smov 53   ;;  %v432_v17 = vld [vmem:[#allocation0 + $0x1] sm:$0x1]   ;;  %v439_v18 = vld [vmem:[#allocation0 + $0x2] sm:$0x1]  }
  0x2e   :  { %133 = vrot.lane.b32.xlu0 %v132_v19, %s738_s25  ;;  %140 = vrot.lane.b32.xlu1 %v139_v20, %s739_s26  ;;  %s768_s25 = smov 51   ;;  %s769_s26 = smov 49  }
  0x32   :  { %146 = vrot.lane.b32.xlu0 %v145_v21, %s740_s27  ;;  %153 = vrot.lane.b32.xlu1 %v152_v22, %s741_s28  ;;  %s770_s27 = smov 4   ;;  %s771_s28 = smov 3   ;;  %v445_v21 = vld [vmem:[#allocation0] sm:$0x1]   ;;  %v452_v22 = vld [vmem:[#allocation0 + $0x1] sm:$0x1]  }
  0x36   :  { %160 = vrot.lane.b32.xlu0 %v159_v23, %s742_s29  ;;  %166 = vrot.lane.b32.xlu1 %v165_v24, %s743_s30  ;;  %s772_s29 = smov 1   ;;  %s773_s30 = smov 48  }
  0x3a   :  { %173 = vrot.lane.b32.xlu0 %v172_v25, %s744_s2  ;;  %180 = vrot.lane.b32.xlu1 %v179_v26, %s745_s3  ;;  %s774_s2 = smov 46   ;;  %s775_s3 = smov 44   ;;  %v459_v25 = vld [vmem:[#allocation0 + $0x2] sm:$0x1]   ;;  %v465_v26 = vld [vmem:[#allocation0] sm:$0x1]  }
  0x3e   :  { %186 = vrot.lane.b32.xlu0 %v185_v27, %s746_s4  ;;  %193 = vrot.lane.b32.xlu1 %v192_v28, %s747_s5  ;;  %s776_s4 = smov 43   ;;  %s777_s5 = smov 41  }
  0x42   :  { %200 = vrot.lane.b32.xlu0 %v199_v29, %s748_s6  ;;  %206 = vrot.lane.b32.xlu1 %v205_v30, %s749_s7  ;;  %v472_v29 = vld [vmem:[#allocation0 + $0x1] sm:$0x1]   ;;  %v479_v30 = vld [vmem:[#allocation0 + $0x2] sm:$0x1]   ;;  %s796_s6 = smov 9   ;;  %s797_s7 = smov 8  }
  0x46   :  { %213 = vrot.lane.b32.xlu0 %v212_v31, %s750_s0  ;;  %220 = vrot.lane.b32.xlu1 %v219_v32, %s751_s8 }
  0x4a   :  { %226 = vrot.lane.b32.xlu0 %v225_v33, %s752_s9  ;;  %233 = vrot.lane.b32.xlu1 %v232_v34, %s753_s10  ;;  %s778_s9 = smov 39   ;;  %s779_s10 = smov 38   ;;  %v7_v33 = vld [vmem:[#allocation0] sm:$0x1]  }
  0x4b   :  { %9 = vst.msk [vmem:[%s1139_s1] sm:$0x1] %vm8_vm3, %v7_v33   ;;  %v485_v34 = vld [vmem:[#allocation0] sm:$0x1]  }
  0x4e   :  { %240 = vrot.lane.b32.xlu0 %v239_v35, %s754_s11  ;;  %246 = vrot.lane.b32.xlu1 %v245_v36, %s755_s12  ;;  %v492_v35 = vld [vmem:[#allocation0 + $0x1] sm:$0x1]   ;;  %s798_s11 = smov 6  }
  0x52   :  { %253 = vrot.lane.b32.xlu0 %v252_v37, %s756_s13  ;;  %260 = vrot.lane.b32.xlu1 %v259_v38, %s757_s14  ;;  %v499_v38 = vld [vmem:[#allocation0 + $0x2] sm:$0x1]  }
  0x56   :  { %266 = vrot.lane.b32.xlu0 %v265_v39, %s758_s15  ;;  %273 = vrot.lane.b32.xlu1 %v272_v40, %s759_s16  ;;  %s780_s15 = smov 36   ;;  %s781_s16 = smov 34   ;;  %v505_v39 = vld [vmem:[#allocation0] sm:$0x1]  }
  0x5a   :  { %280 = vrot.lane.b32.xlu0 %v279_v41, %s760_s17  ;;  %286 = vrot.lane.b32.xlu1 %v285_v42, %s761_s18  ;;  %v512_v42 = vld [vmem:[#allocation0 + $0x1] sm:$0x1]  }
  0x5e   :  { %293 = vrot.lane.b32.xlu0 %v292_v43, %s762_s19  ;;  %300 = vrot.lane.b32.xlu1 %v299_v44, %s763_s20 }
  0x62   :  { %306 = vrot.lane.b32.xlu0 %v305_v45, %s764_s21  ;;  %313 = vrot.lane.b32.xlu1 %v312_v46, %s765_s22  ;;  %s782_s21 = smov 33   ;;  %s783_s22 = smov 31  }
  0x66   :  { %320 = vrot.lane.b32.xlu0 %v319_v47, %s766_s23  ;;  %326 = vrot.lane.b32.xlu1 %v325_v48, %s767_s24  ;;  %s792_s23 = smov 16   ;;  %s793_s24 = smov 14  }
  0x6a   :  { %333 = vrot.lane.b32.xlu0 %v332_v49, %s768_s25  ;;  %340 = vrot.lane.b32.xlu1 %v339_v50, %s769_s26 }
  0x6e   :  { %524 = vrot.lane.b32.xlu0 %v523_v55, %s770_s27  ;;  %537 = vrot.lane.b32.xlu1 %v536_v56, %s771_s28  ;;  %s784_s27 = smov 29   ;;  %s785_s28 = smov 28  }
  0x72   :  { %551 = vrot.lane.b32.xlu0 %v550_v59, %s772_s29  ;;  %346 = vrot.lane.b32.xlu1 %v345_v60, %s773_s30  ;;  %s794_s29 = smov 13   ;;  %s795_s30 = smov 11  }
  0x76   :  { %353 = vrot.lane.b32.xlu0 %v352_v61, %s774_s2  ;;  %360 = vrot.lane.b32.xlu1 %v359_v62, %s775_s3 }
  0x7a   :  { %366 = vrot.lane.b32.xlu0 %v365_v63, %s776_s4  ;;  %373 = vrot.lane.b32.xlu1 %v372_v0, %s777_s5  ;;  %s786_s4 = smov 26   ;;  %s787_s5 = smov 24  }
  0x7c   :  { %v13_v3 = vpop.permute.xlu0 %12   ;;  %v27_v4 = vpop.permute.xlu1 %26  }
  0x7d   :  { %559 = vst.msk [vmem:[%s1139_s1 + $0x4d] sm:$0x1] %vm8_vm3, %v13_v3   ;;  %561 = vst.msk [vmem:[%s1139_s1 + $0x34] sm:$0x1] %vm8_vm3, %v27_v4  }
  0x7e   :  { %380 = vrot.lane.b32.xlu0 %v379_v1, %s778_s9  ;;  %386 = vrot.lane.b32.xlu1 %v385_v2, %s779_s10  ;;  %s788_s9 = smov 23   ;;  %s789_s10 = smov 21  }
  0x80   :  { %v20_v7 = vpop.permute.xlu0 %19   ;;  %v33_v8 = vpop.permute.xlu1 %32  }
  0x81   :  { %560 = vst.msk [vmem:[%s1139_s1 + $0x1a] sm:$0x1] %vm8_vm3, %v20_v7   ;;  %562 = vst.msk [vmem:[%s1139_s1 + $0x1] sm:$0x1] %vm8_vm3, %v33_v8  }
  0x82   :  { %393 = vrot.lane.b32.xlu0 %v392_v5, %s780_s15  ;;  %400 = vrot.lane.b32.xlu1 %v399_v6, %s781_s16  ;;  %s790_s15 = smov 19   ;;  %s791_s16 = smov 18  }
  0x84   :  { %v40_v11 = vpop.permute.xlu0 %39   ;;  %v47_v12 = vpop.permute.xlu1 %46  }
  0x85   :  { %563 = vst.msk [vmem:[%s1139_s1 + $0x4e] sm:$0x1] %vm8_vm3, %v40_v11   ;;  %564 = vst.msk [vmem:[%s1139_s1 + $0x1b] sm:$0x1] %vm8_vm3, %v47_v12  }
  0x86   :  { %406 = vrot.lane.b32.xlu0 %v405_v9, %s782_s21  ;;  %413 = vrot.lane.b32.xlu1 %v412_v10, %s783_s22 }
  0x88   :  { %v54_v15 = vpop.permute.xlu0 %53   ;;  %v60_v16 = vpop.permute.xlu1 %59  }
  0x89   :  { %565 = vst.msk [vmem:[%s1139_s1 + $0x35] sm:$0x1] %vm8_vm3, %v54_v15   ;;  %566 = vst.msk [vmem:[%s1139_s1 + $0x2] sm:$0x1] %vm8_vm3, %v60_v16  }
  0x8a   :  { %420 = vrot.lane.b32.xlu0 %v419_v13, %s784_s27  ;;  %426 = vrot.lane.b32.xlu1 %v425_v14, %s785_s28 }
  0x8c   :  { %v67_v19 = vpop.permute.xlu0 %66   ;;  %v74_v20 = vpop.permute.xlu1 %73  }
  0x8d   :  { %567 = vst.msk [vmem:[%s1139_s1 + $0x4f] sm:$0x1] %vm8_vm3, %v67_v19   ;;  %568 = vst.msk [vmem:[%s1139_s1 + $0x1c] sm:$0x1] %vm8_vm3, %v74_v20  }
  0x8e   :  { %433 = vrot.lane.b32.xlu0 %v432_v17, %s786_s4  ;;  %440 = vrot.lane.b32.xlu1 %v439_v18, %s787_s5 }
  0x90   :  { %v81_v23 = vpop.permute.xlu0 %80   ;;  %v87_v24 = vpop.permute.xlu1 %86  }
  0x91   :  { %569 = vst.msk [vmem:[%s1139_s1 + $0x36] sm:$0x1] %vm8_vm3, %v81_v23   ;;  %570 = vst.msk [vmem:[%s1139_s1 + $0x3] sm:$0x1] %vm8_vm3, %v87_v24  }
  0x92   :  { %446 = vrot.lane.b32.xlu0 %v445_v21, %s788_s9  ;;  %453 = vrot.lane.b32.xlu1 %v452_v22, %s789_s10 }
  0x94   :  { %v94_v27 = vpop.permute.xlu0 %93   ;;  %v101_v28 = vpop.permute.xlu1 %100  }
  0x95   :  { %571 = vst.msk [vmem:[%s1139_s1 + $0x1d] sm:$0x1] %vm8_vm3, %v94_v27   ;;  %572 = vst.msk [vmem:[%s1139_s1 + $0x37] sm:$0x1] %vm8_vm3, %v101_v28  }
  0x96   :  { %460 = vrot.lane.b32.xlu0 %v459_v25, %s790_s15  ;;  %466 = vrot.lane.b32.xlu1 %v465_v26, %s791_s16 }
  0x98   :  { %v107_v31 = vpop.permute.xlu0 %106   ;;  %v114_v32 = vpop.permute.xlu1 %113  }
  0x99   :  { %573 = vst.msk [vmem:[%s1139_s1 + $0x4] sm:$0x1] %vm8_vm3, %v107_v31   ;;  %574 = vst.msk [vmem:[%s1139_s1 + $0x1e] sm:$0x1] %vm8_vm3, %v114_v32  }
  0x9a   :  { %473 = vrot.lane.b32.xlu0 %v472_v29, %s792_s23  ;;  %480 = vrot.lane.b32.xlu1 %v479_v30, %s793_s24 }
  0x9c   :  { %v121_v36 = vpop.permute.xlu0 %120   ;;  %v127_v37 = vpop.permute.xlu1 %126  }
  0x9d   :  { %575 = vst.msk [vmem:[%s1139_s1 + $0x38] sm:$0x1] %vm8_vm3, %v121_v36   ;;  %576 = vst.msk [vmem:[%s1139_s1 + $0x5] sm:$0x1] %vm8_vm3, %v127_v37  }
  0x9e   :  { %486 = vrot.lane.b32.xlu0 %v485_v34, %s794_s29  ;;  %493 = vrot.lane.b32.xlu1 %v492_v35, %s795_s30 }
  0xa0   :  { %v134_v40 = vpop.permute.xlu0 %133   ;;  %v141_v41 = vpop.permute.xlu1 %140  }
  0xa1   :  { %577 = vst.msk [vmem:[%s1139_s1 + $0x1f] sm:$0x1] %vm8_vm3, %v134_v40   ;;  %578 = vst.msk [vmem:[%s1139_s1 + $0x39] sm:$0x1] %vm8_vm3, %v141_v41  }
  0xa2   :  { %500 = vrot.lane.b32.xlu0 %v499_v38, %s796_s6  ;;  %506 = vrot.lane.b32.xlu1 %v505_v39, %s797_s7 }
  0xa4   :  { %v147_v43 = vpop.permute.xlu0 %146   ;;  %v154_v44 = vpop.permute.xlu1 %153  }
  0xa5   :  { %579 = vst.msk [vmem:[%s1139_s1 + $0x6] sm:$0x1] %vm8_vm3, %v147_v43   ;;  %580 = vst.msk [vmem:[%s1139_s1 + $0x20] sm:$0x1] %vm8_vm3, %v154_v44  }
  0xa6   :  { %513 = vrot.lane.b32.xlu0 %v512_v42, %s798_s11 }
  0xa8   :  { %v161_v45 = vpop.permute.xlu0 %160   ;;  %v167_v46 = vpop.permute.xlu1 %166  }
  0xa9   :  { %581 = vst.msk [vmem:[%s1139_s1 + $0x3a] sm:$0x1] %vm8_vm3, %v161_v45   ;;  %582 = vst.msk [vmem:[%s1139_s1 + $0x7] sm:$0x1] %vm8_vm3, %v167_v46  }
  0xac   :  { %v174_v47 = vpop.permute.xlu0 %173   ;;  %v181_v48 = vpop.permute.xlu1 %180  }
  0xad   :  { %583 = vst.msk [vmem:[%s1139_s1 + $0x21] sm:$0x1] %vm8_vm3, %v174_v47   ;;  %584 = vst.msk [vmem:[%s1139_s1 + $0x3b] sm:$0x1] %vm8_vm3, %v181_v48  }
  0xb0   :  { %v187_v49 = vpop.permute.xlu0 %186   ;;  %v194_v50 = vpop.permute.xlu1 %193  }
  0xb1   :  { %585 = vst.msk [vmem:[%s1139_s1 + $0x8] sm:$0x1] %vm8_vm3, %v187_v49   ;;  %586 = vst.msk [vmem:[%s1139_s1 + $0x22] sm:$0x1] %vm8_vm3, %v194_v50  }
  0xb4   :  { %v201_v51 = vpop.permute.xlu0 %200   ;;  %v207_v52 = vpop.permute.xlu1 %206  }
  0xb5   :  { %587 = vst.msk [vmem:[%s1139_s1 + $0x3c] sm:$0x1] %vm8_vm3, %v201_v51   ;;  %588 = vst.msk [vmem:[%s1139_s1 + $0x9] sm:$0x1] %vm8_vm3, %v207_v52  }
  0xb8   :  { %v214_v53 = vpop.permute.xlu0 %213   ;;  %v221_v54 = vpop.permute.xlu1 %220  }
  0xb9   :  { %589 = vst.msk [vmem:[%s1139_s1 + $0x23] sm:$0x1] %vm8_vm3, %v214_v53   ;;  %590 = vst.msk [vmem:[%s1139_s1 + $0x3d] sm:$0x1] %vm8_vm3, %v221_v54  }
  0xbc   :  { %v227_v55 = vpop.permute.xlu0 %226   ;;  %v234_v56 = vpop.permute.xlu1 %233  }
  0xbd   :  { %591 = vst.msk [vmem:[%s1139_s1 + $0xa] sm:$0x1] %vm8_vm3, %v227_v55   ;;  %592 = vst.msk [vmem:[%s1139_s1 + $0x24] sm:$0x1] %vm8_vm3, %v234_v56  }
  0xc0   :  { %v241_v57 = vpop.permute.xlu0 %240   ;;  %v247_v58 = vpop.permute.xlu1 %246  }
  0xc1   :  { %593 = vst.msk [vmem:[%s1139_s1 + $0x3e] sm:$0x1] %vm8_vm3, %v241_v57   ;;  %594 = vst.msk [vmem:[%s1139_s1 + $0xb] sm:$0x1] %vm8_vm3, %v247_v58  }
  0xc4   :  { %v254_v59 = vpop.permute.xlu0 %253   ;;  %v261_v60 = vpop.permute.xlu1 %260  }
  0xc5   :  { %595 = vst.msk [vmem:[%s1139_s1 + $0x25] sm:$0x1] %vm8_vm3, %v254_v59   ;;  %596 = vst.msk [vmem:[%s1139_s1 + $0x3f] sm:$0x1] %vm8_vm3, %v261_v60  }
  0xc8   :  { %v267_v61 = vpop.permute.xlu0 %266   ;;  %v274_v62 = vpop.permute.xlu1 %273  }
  0xc9   :  { %597 = vst.msk [vmem:[%s1139_s1 + $0xc] sm:$0x1] %vm8_vm3, %v267_v61   ;;  %598 = vst.msk [vmem:[%s1139_s1 + $0x26] sm:$0x1] %vm8_vm3, %v274_v62  }
  0xcc   :  { %v281_v63 = vpop.permute.xlu0 %280   ;;  %v287_v0 = vpop.permute.xlu1 %286  }
  0xcd   :  { %599 = vst.msk [vmem:[%s1139_s1 + $0x40] sm:$0x1] %vm8_vm3, %v281_v63   ;;  %600 = vst.msk [vmem:[%s1139_s1 + $0xd] sm:$0x1] %vm8_vm3, %v287_v0  }
  0xd0   :  { %v294_v1 = vpop.permute.xlu0 %293   ;;  %v301_v2 = vpop.permute.xlu1 %300  }
  0xd1   :  { %601 = vst.msk [vmem:[%s1139_s1 + $0x27] sm:$0x1] %vm8_vm3, %v294_v1   ;;  %602 = vst.msk [vmem:[%s1139_s1 + $0x41] sm:$0x1] %vm8_vm3, %v301_v2  }
  0xd4   :  { %v307_v3 = vpop.permute.xlu0 %306   ;;  %v314_v4 = vpop.permute.xlu1 %313  }
  0xd5   :  { %603 = vst.msk [vmem:[%s1139_s1 + $0xe] sm:$0x1] %vm8_vm3, %v307_v3   ;;  %604 = vst.msk [vmem:[%s1139_s1 + $0x28] sm:$0x1] %vm8_vm3, %v314_v4  }
  0xd8   :  { %v321_v5 = vpop.permute.xlu0 %320   ;;  %v327_v6 = vpop.permute.xlu1 %326  }
  0xd9   :  { %605 = vst.msk [vmem:[%s1139_s1 + $0x42] sm:$0x1] %vm8_vm3, %v321_v5   ;;  %606 = vst.msk [vmem:[%s1139_s1 + $0xf] sm:$0x1] %vm8_vm3, %v327_v6  }
  0xdc   :  { %v334_v7 = vpop.permute.xlu0 %333   ;;  %v341_v8 = vpop.permute.xlu1 %340  }
  0xdd   :  { %607 = vst.msk [vmem:[%s1139_s1 + $0x29] sm:$0x1] %vm8_vm3, %v334_v7   ;;  %608 = vst.msk [vmem:[%s1139_s1 + $0x43] sm:$0x1] %vm8_vm3, %v341_v8  }
  0xe0   :  { %v525_v9 = vpop.permute.xlu0 %524   ;;  %v538_v10 = vpop.permute.xlu1 %537  }
  0xe1   :  { %635 = vst.msk [vmem:[%s1139_s1 + $0x4c] sm:$0x1] %vm526_vm4, %v525_v9  }
  0xe2   :  { %637 = vst.msk [vmem:[%s1139_s1 + $0x19] sm:$0x1] %vm539_vm5, %v538_v10  }
  0xe3   :  { %636 = vst.msk [vmem:[%s1139_s1 + $0x4c] sm:$0x1] %vm529_vm6, %v525_v9  }
  0xe4   :  { %638 = vst.msk [vmem:[%s1139_s1 + $0x19] sm:$0x1] %vm542_vm7, %v538_v10   ;;  %v552_v11 = vpop.permute.xlu0 %551   ;;  %v347_v12 = vpop.permute.xlu1 %346  }
  0xe5   :  { %639 = vst.msk [vmem:[%s1139_s1 + $0x33] sm:$0x1] %vm553_vm8, %v552_v11  }
  0xe6   :  { %609 = vst.msk [vmem:[%s1139_s1 + $0x10] sm:$0x1] %vm8_vm3, %v347_v12  }
  0xe7   :  { %640 = vst.msk [vmem:[%s1139_s1 + $0x33] sm:$0x1] %vm556_vm9, %v552_v11  }
  0xe8   :  { %v354_v13 = vpop.permute.xlu0 %353   ;;  %v361_v14 = vpop.permute.xlu1 %360  }
  0xe9   :  { %610 = vst.msk [vmem:[%s1139_s1 + $0x2a] sm:$0x1] %vm8_vm3, %v354_v13   ;;  %611 = vst.msk [vmem:[%s1139_s1 + $0x44] sm:$0x1] %vm8_vm3, %v361_v14  }
  0xec   :  { %v367_v15 = vpop.permute.xlu0 %366   ;;  %v374_v16 = vpop.permute.xlu1 %373  }
  0xed   :  { %612 = vst.msk [vmem:[%s1139_s1 + $0x11] sm:$0x1] %vm8_vm3, %v367_v15   ;;  %613 = vst.msk [vmem:[%s1139_s1 + $0x2b] sm:$0x1] %vm8_vm3, %v374_v16  }
  0xf0   :  { %v381_v17 = vpop.permute.xlu0 %380   ;;  %v387_v18 = vpop.permute.xlu1 %386  }
  0xf1   :  { %614 = vst.msk [vmem:[%s1139_s1 + $0x45] sm:$0x1] %vm8_vm3, %v381_v17   ;;  %615 = vst.msk [vmem:[%s1139_s1 + $0x12] sm:$0x1] %vm8_vm3, %v387_v18  }
  0xf4   :  { %v394_v19 = vpop.permute.xlu0 %393   ;;  %v401_v20 = vpop.permute.xlu1 %400  }
  0xf5   :  { %616 = vst.msk [vmem:[%s1139_s1 + $0x2c] sm:$0x1] %vm8_vm3, %v394_v19   ;;  %617 = vst.msk [vmem:[%s1139_s1 + $0x46] sm:$0x1] %vm8_vm3, %v401_v20  }
  0xf8   :  { %v407_v21 = vpop.permute.xlu0 %406   ;;  %v414_v22 = vpop.permute.xlu1 %413  }
  0xf9   :  { %618 = vst.msk [vmem:[%s1139_s1 + $0x13] sm:$0x1] %vm8_vm3, %v407_v21   ;;  %619 = vst.msk [vmem:[%s1139_s1 + $0x2d] sm:$0x1] %vm8_vm3, %v414_v22  }
  0xfc   :  { %v421_v23 = vpop.permute.xlu0 %420   ;;  %v427_v24 = vpop.permute.xlu1 %426  }
  0xfd   :  { %620 = vst.msk [vmem:[%s1139_s1 + $0x47] sm:$0x1] %vm8_vm3, %v421_v23   ;;  %621 = vst.msk [vmem:[%s1139_s1 + $0x14] sm:$0x1] %vm8_vm3, %v427_v24  }
 0x100   :  { %v434_v25 = vpop.permute.xlu0 %433   ;;  %v441_v26 = vpop.permute.xlu1 %440  }
 0x101   :  { %622 = vst.msk [vmem:[%s1139_s1 + $0x2e] sm:$0x1] %vm8_vm3, %v434_v25   ;;  %623 = vst.msk [vmem:[%s1139_s1 + $0x48] sm:$0x1] %vm8_vm3, %v441_v26  }
 0x104   :  { %v447_v27 = vpop.permute.xlu0 %446   ;;  %v454_v28 = vpop.permute.xlu1 %453  }
 0x105   :  { %624 = vst.msk [vmem:[%s1139_s1 + $0x15] sm:$0x1] %vm8_vm3, %v447_v27   ;;  %625 = vst.msk [vmem:[%s1139_s1 + $0x2f] sm:$0x1] %vm8_vm3, %v454_v28  }
 0x108   :  { %v461_v29 = vpop.permute.xlu0 %460   ;;  %v467_v30 = vpop.permute.xlu1 %466  }
 0x109   :  { %626 = vst.msk [vmem:[%s1139_s1 + $0x49] sm:$0x1] %vm8_vm3, %v461_v29   ;;  %627 = vst.msk [vmem:[%s1139_s1 + $0x16] sm:$0x1] %vm8_vm3, %v467_v30  }
 0x10c   :  { %v474_v31 = vpop.permute.xlu0 %473   ;;  %v481_v32 = vpop.permute.xlu1 %480  }
 0x10d   :  { %628 = vst.msk [vmem:[%s1139_s1 + $0x30] sm:$0x1] %vm8_vm3, %v474_v31   ;;  %629 = vst.msk [vmem:[%s1139_s1 + $0x4a] sm:$0x1] %vm8_vm3, %v481_v32  }
 0x110   :  { %v487_v33 = vpop.permute.xlu0 %486   ;;  %v494_v34 = vpop.permute.xlu1 %493  }
 0x111   :  { %630 = vst.msk [vmem:[%s1139_s1 + $0x17] sm:$0x1] %vm8_vm3, %v487_v33   ;;  %631 = vst.msk [vmem:[%s1139_s1 + $0x31] sm:$0x1] %vm8_vm3, %v494_v34  }
 0x114   :  { %v501_v35 = vpop.permute.xlu0 %500   ;;  %v507_v36 = vpop.permute.xlu1 %506  }
 0x115   :  { %632 = vst.msk [vmem:[%s1139_s1 + $0x4b] sm:$0x1] %vm8_vm3, %v501_v35   ;;  %633 = vst.msk [vmem:[%s1139_s1 + $0x18] sm:$0x1] %vm8_vm3, %v507_v36  }
 0x118   :  { %v514_v37 = vpop.permute.xlu0 %513  }
 0x119   :  { %634 = vst.msk [vmem:[%s1139_s1 + $0x32] sm:$0x1] %vm8_vm3, %v514_v37  }

// kernel: contentvec_forward.2
= control target key start
LH: loop header
LB: loop body
LE: loop exit
PB: predicated region body
PF: predicated region fallthrough
CT: control target
= control target key end

     0   :  { %vm61_vm0 = vcmask 1046528   ;;  %vm155_vm1 = vcmask 1041408   ;;  %s2045_s21 = smov 5   ;;  %vm111_vm2 = vcmask 39936   ;;  %vm124_vm3 = vcmask 80896   ;;  %s2568_s0 = inlined_call_operand.vmem [shape: f32[80,5], index: 0, kind: input, shape index: {}]   ;;  %s2569_s1 = inlined_call_operand.vmem [shape: f32[10,24], index: 1, kind: input, shape index: {}]   ;;  %s2570_s4 = inlined_call_operand.vmem [shape: f32[72,24], index: 4, kind: input, shape index: {}]   ;;  %s2571_s2 = inlined_call_operand.vmem [shape: f32[1,24], index: 2, kind: input, shape index: {}]   ;;  %s2572_s3 = inlined_call_operand.vmem [shape: f32[1,24], index: 3, kind: input, shape index: {}]   ;;  %s2573_s5 = inlined_call_operand.vmem [shape: f32[39,77], index: 5, kind: input, shape index: {}]   ;;  %s2574_s6 = inlined_call_operand.vmem [shape: f32[48,24], index: 6, kind: input, shape index: {}]   ;;  %s2575_s7 = inlined_call_operand.vmem [shape: f32[19,38], index: 7, kind: input, shape index: {}]   ;;  %s2576_s10 = inlined_call_operand.vmem [shape: f32[24,32], index: 10, kind: input, shape index: {}]   ;;  %s2577_s8 = inlined_call_operand.vmem [shape: f32[1,24], index: 8, kind: input, shape index: {}]   ;;  %s2578_s9 = inlined_call_operand.vmem [shape: f32[1,24], index: 9, kind: input, shape index: {}]   ;;  %s2579_s11 = inlined_call_operand.vmem [shape: f32[1,32], index: 11, kind: input, shape index: {}]   ;;  %s2580_s12 = inlined_call_operand.vmem [shape: f32[19,32], index: 12, kind: output, shape index: {}]  }
   0x1   :  { %v41_v0 = vld [vmem:[%s2568_s0] sm:$0xff]  ;;  %v42_v1 = vld [vmem:[%s2568_s0 + $0x8] sm:$0xff]  ;;  %v43_v2 = vld [vmem:[%s2568_s0 + $0x10] sm:$0xff]  ;;  %vm274_vm4 = vcmask 195584   ;;  %vm292_vm5 = vcmask 194560   ;;  %vm798_vm6 = vcmask 1045504  }
   0x2   :  { %v62_v3 = vrot.slane %v41_v0, 1  ;;  %v63_v4 = vrot.slane %v42_v1, 1  ;;  %v44_v5 = vld [vmem:[%s2568_s0 + $0x18] sm:$0xff]  ;;  %v65_v6 = vrot.slane %v43_v2, 1  ;;  %v45_v7 = vld [vmem:[%s2568_s0 + $0x20] sm:$0xff]  ;;  %v46_v10 = vld [vmem:[%s2568_s0 + $0x28] sm:$0xff] }
   0x3   :  { %v67_v8 = vrot.slane %v44_v5, 1  ;;  %v69_v9 = vrot.slane %v45_v7, 1  ;;  %v47_v12 = vld [vmem:[%s2568_s0 + $0x30] sm:$0xff]  ;;  %v123_v13 = vld [vmem:[%s2569_s1 + $0x8] sm:$0x3]  ;;  %v122_v14 = vld [vmem:[%s2569_s1] sm:$0xff] }
   0x4   :  { %v64_v11 = vsel %vm61_vm0, %v62_v3, %v63_v4  ;;  %1795 = vmatprep.subr.msk.mxu0 %vm155_vm1, %v123_v13  ;;  %v66_v16 = vsel %vm61_vm0, %v63_v4, %v65_v6  ;;  %v71_v17 = vrot.slane %v46_v10, 1  ;;  %v73_v19 = vrot.slane %v47_v12, 1  ;;  %v48_v20 = vld [vmem:[%s2568_s0 + $0x38] sm:$0xff]  ;;  %v49_v21 = vld [vmem:[%s2568_s0 + $0x40] sm:$0xff]  ;;  %v50_v26 = vld [vmem:[%s2568_s0 + $0x48] sm:$0xff] }
   0x5   :  { %81 = vrot.lane.b32.xlu0 %v64_v11, %s2045_s21  ;;  %v68_v15 = vsel %vm61_vm0, %v65_v6, %v67_v8  ;;  %1796 = vmatpush3.msk.msra.mxu0 %vm155_vm1, %v123_v13  ;;  %v70_v18 = vsel %vm61_vm0, %v67_v8, %v69_v9  ;;  %v75_v23 = vrot.slane %v48_v20, 1  ;;  %v77_v25 = vrot.slane %v49_v21, 1  ;;  %v492_v51 = vld [vmem:[%s2570_s4 + $0x10] sm:$0xff]  ;;  %v491_v52 = vld [vmem:[%s2570_s4 + $0x8] sm:$0xff]  ;;  %v494_v54 = vld [vmem:[%s2570_s4 + $0x20] sm:$0xff] }
   0x6   :  { %85 = vrot.lane.b32.xlu1 %v68_v15, %s2045_s21  ;;  %1797 = vmatprep.subr.mxu0 %v122_v14  ;;  %v72_v22 = vsel %vm61_vm0, %v69_v9, %v71_v17  ;;  %v74_v24 = vsel %vm61_vm0, %v71_v17, %v73_v19  ;;  %v79_v28 = vrot.slane %v50_v26, 1  ;;  %v495_v53 = vld [vmem:[%s2570_s4 + $0x28] sm:$0xff]  ;;  %v490_v55 = vld [vmem:[%s2570_s4] sm:$0xff]  ;;  %v493_v59 = vld [vmem:[%s2570_s4 + $0x18] sm:$0xff]  ;;  %vm2047_vm7 = vmmov 0  }
   0x7   :  { %1798 = vmatpush3.msra.mxu0 %v122_v14  ;;  %v76_v27 = vsel %vm61_vm0, %v73_v19, %v75_v23  ;;  %v78_v29 = vsel %vm61_vm0, %v75_v23, %v77_v25  ;;  %1814 = vmatprep.subr.mxu1 %v495_v53  ;;  %v2206_v15 = vld [vmem:[%s2570_s4 + $0x40] sm:$0xff]  ;;  %vm979_vm8 = vcmask 1044480   ;;  %vm963_vm9 = vcmask 629760  }
   0x8   :  { %v80_v30 = vsel %vm61_vm0, %v77_v25, %v79_v28  ;;  %1835 = vmatprep.subr.mxu0 %v492_v51  ;;  %1815 = vmatpush3.msra.mxu1 %v495_v53  ;;  %vm1341_vm10 = vcmask 310272   ;;  %vm1469_vm11 = vcmask 190464   ;;  %vm1621_vm12 = vcmask 261120  }
   0x9   :  { %83 = vrot.lane.b32.xlu0 %v66_v16, %s2045_s21  ;;  %1816 = vmatprep.subr.mxu1 %v494_v54  ;;  %vm1624_vm13 = vcmask 256000  }
   0xa   :  { %87 = vrot.lane.b32.xlu1 %v70_v18, %s2045_s21  ;;  %1817 = vmatpush3.msra.mxu1 %v494_v54 }
   0xb   :  { %1818 = vmatprep.subr.mxu1 %v493_v59 }
   0xc   :  { %1819 = vmatpush3.msra.mxu1 %v493_v59 }
   0xd   :  { %89 = vrot.lane.b32.xlu0 %v72_v22, %s2045_s21  ;;  %1856 = vmatprep.subr.mxu1 %v2206_v15 }
   0xe   :  { %91 = vrot.lane.b32.xlu1 %v74_v24, %s2045_s21 }
  0x11   :  { %93 = vrot.lane.b32.xlu0 %v76_v27, %s2045_s21 }
  0x12   :  { %95 = vrot.lane.b32.xlu1 %v78_v29, %s2045_s21 }
  0x15   :  { %97 = vrot.lane.b32.xlu0 %v80_v30, %s2045_s21 }
  0x16   :  { %99 = vrot.lane.b32.xlu1 %v79_v28, %s2045_s21 }
  0x77   :  { %v82_v31 = vpop.permute.xlu0 %81 }
  0x78   :  { %v112_v32 = vsel %vm111_vm2, %v41_v0, %v82_v31  ;;  %v86_v33 = vpop.permute.xlu1 %85 }
  0x79   :  { %1799 = vmatprep.mubr.msk.f32.mxu0 %vm124_vm3, %v112_v32  ;;  %v114_v34 = vsel %vm111_vm2, %v43_v2, %v86_v33 }
  0x7b   :  { %v84_v35 = vpop.permute.xlu0 %83 }
  0x7c   :  { %v113_v36 = vsel %vm111_vm2, %v42_v1, %v84_v35  ;;  %v88_v37 = vpop.permute.xlu1 %87 }
  0x7d   :  { %1800 = vmatmul.mubr.msk.f32.vlgmr.msra.gmra.mxu0 %vm124_vm3, %v113_v36  ;;  %v115_v38 = vsel %vm111_vm2, %v44_v5, %v88_v37 }
  0x7e   :  { %1802 = vmatprep.mubr.msk.f32.mxu0 %vm124_vm3, %v114_v34  ;;  %1836 = vmatpush3.msra.mxu0 %v492_v51 }
  0x7f   :  { %v90_v39 = vpop.permute.xlu0 %89  ;;  %1837 = vmatprep.subr.mxu0 %v491_v52 }
  0x80   :  { %v116_v40 = vsel %vm111_vm2, %v45_v7, %v90_v39  ;;  %v92_v41 = vpop.permute.xlu1 %91  ;;  %1838 = vmatpush3.msra.mxu0 %v491_v52 }
  0x81   :  { %1803 = vmatmul.mubr.msk.f32.gmra.mxu0 %vm124_vm3, %v115_v38  ;;  %v117_v42 = vsel %vm111_vm2, %v46_v10, %v92_v41  ;;  %1839 = vmatprep.subr.mxu0 %v490_v55 }
  0x82   :  { %1805 = vmatprep.mubr.msk.f32.mxu0 %vm124_vm3, %v116_v40  ;;  %1840 = vmatpush3.msra.mxu0 %v490_v55 }
  0x83   :  { %v94_v43 = vpop.permute.xlu0 %93 }
  0x84   :  { %v118_v44 = vsel %vm111_vm2, %v47_v12, %v94_v43  ;;  %v96_v45 = vpop.permute.xlu1 %95 }
  0x85   :  { %1806 = vmatmul.mubr.msk.f32.gmra.mxu0 %vm124_vm3, %v117_v42  ;;  %v119_v46 = vsel %vm111_vm2, %v48_v20, %v96_v45 }
  0x86   :  { %1808 = vmatprep.mubr.msk.f32.mxu0 %vm124_vm3, %v118_v44 }
  0x87   :  { %v98_v47 = vpop.permute.xlu0 %97 }
  0x88   :  { %v120_v48 = vsel %vm111_vm2, %v49_v21, %v98_v47  ;;  %v100_v49 = vpop.permute.xlu1 %99 }
  0x89   :  { %1809 = vmatmul.mubr.msk.f32.gmra.mxu0 %vm124_vm3, %v119_v46  ;;  %v121_v50 = vsel %vm111_vm2, %v50_v26, %v100_v49 }
  0x8a   :  { %1811 = vmatprep.mubr.msk.f32.mxu0 %vm124_vm3, %v120_v48 }
  0x8d   :  { %1812 = vmatmul.mubr.msk.f32.gmra.mxu0 %vm124_vm3, %v121_v50 }
 0x13d   :  { %v1801_v56 = vpop.f32.mrf.mxu0 }
 0x13e   :  { %v276_v61 = vsel %vm274_vm4, %v1801_v56, 0.0 }
 0x13f   :  { %v225_v57 = vpop.f32.mrf.mxu0 }
 0x140   :  { %v275_v58 = vsel %vm274_vm4, %v225_v57, 0.0 }
 0x141   :  { %v1804_v60 = vpop.f32.mrf.mxu0  ;;  %v277_v62 = vadd.f32 %v276_v61, %v275_v58 }
 0x142   :  { %v280_v3 = vsel %vm274_vm4, %v1804_v60, 0.0 }
 0x143   :  { %v235_v63 = vpop.f32.mrf.mxu0 }
 0x144   :  { %v278_v0 = vsel %vm274_vm4, %v235_v63, 0.0 }
 0x145   :  { %v279_v1 = vadd.f32 %v278_v0, %v277_v62  ;;  %v1807_v2 = vpop.f32.mrf.mxu0 }
 0x146   :  { %v284_v9 = vsel %vm274_vm4, %v1807_v2, 0.0 }
 0x147   :  { %v245_v4 = vpop.f32.mrf.mxu0  ;;  %v281_v5 = vadd.f32 %v280_v3, %v279_v1 }
 0x148   :  { %v282_v6 = vsel %vm274_vm4, %v245_v4, 0.0 }
 0x149   :  { %v283_v7 = vadd.f32 %v282_v6, %v281_v5  ;;  %v1810_v8 = vpop.f32.mrf.mxu0 }
 0x14a   :  { %v288_v16 = vsel %vm274_vm4, %v1810_v8, 0.0 }
 0x14b   :  { %v255_v10 = vpop.f32.mrf.mxu0  ;;  %v285_v11 = vadd.f32 %v284_v9, %v283_v7 }
 0x14c   :  { %v286_v12 = vsel %vm274_vm4, %v255_v10, 0.0 }
 0x14d   :  { %v287_v13 = vadd.f32 %v286_v12, %v285_v11  ;;  %v1813_v14 = vpop.f32.mrf.mxu0 }
 0x14e   :  { %v293_v21 = vsel %vm292_vm5, %v1813_v14, 0.0 }
 0x14f   :  { %v265_v17 = vpop.f32.mrf.mxu0  ;;  %v289_v18 = vadd.f32 %v288_v16, %v287_v13 }
 0x150   :  { %v290_v19 = vsel %vm274_vm4, %v265_v17, 0.0 }
 0x151   :  { %v291_v20 = vadd.f32 %v290_v19, %v289_v18 }
 0x153   :  { %v294_v22 = vadd.f32 %v293_v21, %v291_v20 }
 0x155   :  { %v295_v23 = vrot.slane %v294_v22, 4 }
 0x157   :  { %v296_v24 = vadd.f32 %v295_v23, %v294_v22  ;;  %v1642_v22 = vld [vmem:[%s2572_s3] ss:$0 sm:$0xff] }
 0x159   :  { %v297_v25 = vrot.slane %v296_v24, 2 }
 0x15b   :  { %v298_v26 = vadd.f32 %v297_v25, %v296_v24 }
 0x15d   :  { %v299_v27 = vrot.slane %v298_v26, 1 }
 0x15f   :  { %v300_v28 = vadd.f32 %v299_v27, %v298_v26 }
 0x161   :  { %v302_v29 = vmul.f32 0.012658228, %v300_v28 }
 0x163   :  { %v2212_v30 = vsub.f32 %v225_v57, %v302_v29  ;;  %v304_v31 = vsub.f32 %v1801_v56, %v302_v29  ;;  %v305_v32 = vsub.f32 %v235_v63, %v302_v29  ;;  %v306_v33 = vsub.f32 %v1804_v60, %v302_v29 }
 0x164   :  { %v307_v36 = vsub.f32 %v245_v4, %v302_v29  ;;  %v308_v38 = vsub.f32 %v1807_v2, %v302_v29  ;;  %v309_v43 = vsub.f32 %v255_v10, %v302_v29  ;;  %v310_v47 = vsub.f32 %v1810_v8, %v302_v29 }
 0x165   :  { %v313_v34 = vmul.f32 %v2212_v30, %v2212_v30  ;;  %v314_v35 = vmul.f32 %v304_v31, %v304_v31  ;;  %v315_v37 = vmul.f32 %v305_v32, %v305_v32  ;;  %v316_v39 = vmul.f32 %v306_v33, %v306_v33 }
 0x166   :  { %v317_v44 = vmul.f32 %v307_v36, %v307_v36  ;;  %v318_v48 = vmul.f32 %v308_v38, %v308_v38  ;;  %v311_v51 = vsub.f32 %v265_v17, %v302_v29  ;;  %v319_v52 = vmul.f32 %v309_v43, %v309_v43 }
 0x167   :  { %v323_v40 = vsel %vm274_vm4, %v313_v34, 0.0  ;;  %v324_v41 = vsel %vm274_vm4, %v314_v35, 0.0  ;;  %v326_v45 = vsel %vm274_vm4, %v315_v37, 0.0  ;;  %v328_v49 = vsel %vm274_vm4, %v316_v39, 0.0 }
 0x168   :  { %v325_v42 = vadd.f32 %v324_v41, %v323_v40  ;;  %v330_v53 = vsel %vm274_vm4, %v317_v44, 0.0  ;;  %v312_v55 = vsub.f32 %v1813_v14, %v302_v29  ;;  %v320_v56 = vmul.f32 %v310_v47, %v310_v47  ;;  %v1641_v14 = vld [vmem:[%s2571_s2] ss:$0 sm:$0xff] }
 0x169   :  { %v332_v57 = vsel %vm274_vm4, %v318_v48, 0.0  ;;  %v321_v59 = vmul.f32 %v311_v51, %v311_v51  ;;  %v334_v60 = vsel %vm274_vm4, %v319_v52, 0.0 }
 0x16a   :  { %v327_v46 = vadd.f32 %v326_v45, %v325_v42  ;;  %v322_v62 = vmul.f32 %v312_v55, %v312_v55  ;;  %v336_v63 = vsel %vm274_vm4, %v320_v56, 0.0 }
 0x16b   :  { %v338_v1 = vsel %vm274_vm4, %v321_v59, 0.0 }
 0x16c   :  { %v329_v50 = vadd.f32 %v328_v49, %v327_v46  ;;  %v340_v3 = vsel %vm292_vm5, %v322_v62, 0.0 }
 0x16e   :  { %v331_v54 = vadd.f32 %v330_v53, %v329_v50 }
 0x170   :  { %v333_v58 = vadd.f32 %v332_v57, %v331_v54 }
 0x172   :  { %v335_v61 = vadd.f32 %v334_v60, %v333_v58 }
 0x174   :  { %v337_v0 = vadd.f32 %v336_v63, %v335_v61 }
 0x176   :  { %v339_v2 = vadd.f32 %v338_v1, %v337_v0 }
 0x178   :  { %v341_v4 = vadd.f32 %v340_v3, %v339_v2 }
 0x17a   :  { %v342_v5 = vrot.slane %v341_v4, 4 }
 0x17c   :  { %v343_v6 = vadd.f32 %v342_v5, %v341_v4 }
 0x17e   :  { %v344_v7 = vrot.slane %v343_v6, 2 }
 0x180   :  { %v345_v8 = vadd.f32 %v344_v7, %v343_v6 }
 0x182   :  { %v346_v9 = vrot.slane %v345_v8, 1 }
 0x184   :  { %v347_v10 = vadd.f32 %v346_v9, %v345_v8 }
 0x186   :  { %v348_v11 = vmul.f32 0.012658228, %v347_v10 }
 0x188   :  { %v349_v12 = vadd.f32 1e-05, %v348_v11 }
 0x18a   :  { %2001 = vrsqrt.f32 %v349_v12 }
 0x197   :  { %v2002_v13 = vpop.eup %2001 }
 0x198   :  { %v352_v16 = vmul.f32 %v2002_v13, %v304_v31  ;;  %v353_v17 = vmul.f32 %v2002_v13, %v305_v32  ;;  %v354_v18 = vmul.f32 %v2002_v13, %v306_v33  ;;  %v355_v19 = vmul.f32 %v2002_v13, %v307_v36 }
 0x199   :  { %v356_v20 = vmul.f32 %v2002_v13, %v308_v38  ;;  %v357_v21 = vmul.f32 %v2002_v13, %v309_v43  ;;  %v358_v23 = vmul.f32 %v2002_v13, %v310_v47  ;;  %v359_v24 = vmul.f32 %v2002_v13, %v311_v51 }
 0x19a   :  { %v369_v25 = vmul.f32 %v1641_v14, %v352_v16  ;;  %v360_v26 = vmul.f32 %v2002_v13, %v312_v55  ;;  %v371_v27 = vmul.f32 %v1641_v14, %v354_v18  ;;  %v372_v28 = vmul.f32 %v1641_v14, %v355_v19 }
 0x19b   :  { %v373_v29 = vmul.f32 %v1641_v14, %v356_v20  ;;  %v374_v34 = vmul.f32 %v1641_v14, %v357_v21  ;;  %v351_v31 = vmul.f32 %v2002_v13, %v2212_v30  ;;  %v370_v32 = vmul.f32 %v1641_v14, %v353_v17 }
 0x19c   :  { %v2232_v35 = vadd.f32 %v1642_v22, %v369_v25  ;;  %v375_v36 = vmul.f32 %v1641_v14, %v358_v23  ;;  %v376_v37 = vmul.f32 %v1641_v14, %v359_v24  ;;  %v377_v40 = vmul.f32 %v1641_v14, %v360_v26 }
 0x19d   :  { %v2235_v33 = vadd.f32 %v1642_v22, %v373_v29  ;;  %v368_v38 = vmul.f32 %v1641_v14, %v351_v31  ;;  %v2238_v41 = vadd.f32 %v1642_v22, %v370_v32  ;;  %v2240_v42 = vadd.f32 %v1642_v22, %v371_v27 }
 0x19e   :  { %v406_v39 = vmul.f32 0.044715, %v2232_v35  ;;  %v2242_v43 = vadd.f32 %v1642_v22, %v372_v28  ;;  %v2244_v44 = vadd.f32 %v1642_v22, %v374_v34  ;;  %v2252_v49 = vadd.f32 %v1642_v22, %v375_v36 }
 0x19f   :  { %v2246_v45 = vadd.f32 %v1642_v22, %v368_v38  ;;  %v410_v46 = vmul.f32 0.044715, %v2235_v33  ;;  %v407_v47 = vmul.f32 0.044715, %v2238_v41  ;;  %v408_v48 = vmul.f32 0.044715, %v2240_v42 }
 0x1a0   :  { %v416_v30 = vmul.f32 %v406_v39, %v2232_v35  ;;  %v2254_v50 = vadd.f32 %v1642_v22, %v376_v37  ;;  %v409_v55 = vmul.f32 0.044715, %v2242_v43  ;;  %v2262_v57 = vadd.f32 %v1642_v22, %v377_v40 }
 0x1a1   :  { %v405_v51 = vmul.f32 0.044715, %v2246_v45  ;;  %v417_v53 = vmul.f32 %v407_v47, %v2238_v41  ;;  %v418_v54 = vmul.f32 %v408_v48, %v2240_v42  ;;  %v420_v56 = vmul.f32 %v410_v46, %v2235_v33 }
 0x1a2   :  { %v426_v52 = vmul.f32 %v416_v30, %v2232_v35  ;;  %v411_v60 = vmul.f32 0.044715, %v2244_v44  ;;  %v419_v63 = vmul.f32 %v409_v55, %v2242_v43  ;;  %v412_v4 = vmul.f32 0.044715, %v2252_v49 }
 0x1a3   :  { %v415_v58 = vmul.f32 %v405_v51, %v2246_v45  ;;  %v427_v61 = vmul.f32 %v417_v53, %v2238_v41  ;;  %v428_v62 = vmul.f32 %v418_v54, %v2240_v42  ;;  %v430_v0 = vmul.f32 %v420_v56, %v2235_v33 }
 0x1a4   :  { %v436_v59 = vadd.f32 %v426_v52, %v2232_v35  ;;  %v421_v3 = vmul.f32 %v411_v60, %v2244_v44  ;;  %v429_v7 = vmul.f32 %v419_v63, %v2242_v43  ;;  %v422_v11 = vmul.f32 %v412_v4, %v2252_v49 }
 0x1a5   :  { %v425_v1 = vmul.f32 %v415_v58, %v2246_v45  ;;  %v437_v5 = vadd.f32 %v427_v61, %v2238_v41  ;;  %v438_v6 = vadd.f32 %v428_v62, %v2240_v42  ;;  %v440_v8 = vadd.f32 %v430_v0, %v2235_v33 }
 0x1a6   :  { %v446_v2 = vmul.f32 0.7978846, %v436_v59  ;;  %v431_v10 = vmul.f32 %v421_v3, %v2244_v44  ;;  %v439_v14 = vadd.f32 %v429_v7, %v2242_v43  ;;  %v432_v18 = vmul.f32 %v422_v11, %v2252_v49 }
 0x1a7   :  { %v435_v9 = vadd.f32 %v425_v1, %v2246_v45  ;;  %v447_v12 = vmul.f32 0.7978846, %v437_v5  ;;  %v448_v13 = vmul.f32 0.7978846, %v438_v6  ;;  %v450_v20 = vmul.f32 0.7978846, %v440_v8 }
 0x1a8   :  { %2003 = vtanh.f32 %v446_v2  ;;  %v441_v17 = vadd.f32 %v431_v10, %v2244_v44  ;;  %v449_v19 = vmul.f32 0.7978846, %v439_v14  ;;  %v413_v21 = vmul.f32 0.044715, %v2254_v50 }
 0x1a9   :  { %v445_v16 = vmul.f32 0.7978846, %v435_v9  ;;  %2005 = vtanh.f32 %v447_v12  ;;  %v442_v23 = vadd.f32 %v432_v18, %v2252_v49  ;;  %v414_v24 = vmul.f32 0.044715, %v2262_v57 }
 0x1aa   :  { %v451_v22 = vmul.f32 0.7978846, %v441_v17  ;;  %v423_v25 = vmul.f32 %v413_v21, %v2254_v50  ;;  %v396_v38 = vmul.f32 0.5, %v2232_v35  ;;  %v397_v47 = vmul.f32 0.5, %v2238_v41 }
 0x1ab   :  { %2007 = vtanh.f32 %v445_v16  ;;  %v452_v26 = vmul.f32 0.7978846, %v442_v23  ;;  %v424_v27 = vmul.f32 %v414_v24, %v2262_v57  ;;  %v395_v52 = vmul.f32 0.5, %v2246_v45  ;;  %v497_v16 = vld [vmem:[%s2570_s4 + $0x38] sm:$0xff] }
 0x1ac   :  { %2009 = vtanh.f32 %v448_v13  ;;  %v433_v28 = vmul.f32 %v423_v25, %v2254_v50  ;;  %v398_v35 = vmul.f32 0.5, %v2240_v42  ;;  %v399_v61 = vmul.f32 0.5, %v2242_v43 }
 0x1ad   :  { %2011 = vtanh.f32 %v449_v19  ;;  %v434_v29 = vmul.f32 %v424_v27, %v2262_v57  ;;  %v400_v45 = vmul.f32 0.5, %v2235_v33  ;;  %v401_v4 = vmul.f32 0.5, %v2244_v44 }
 0x1ae   :  { %2013 = vtanh.f32 %v450_v20  ;;  %v443_v34 = vadd.f32 %v433_v28, %v2254_v50  ;;  %v402_v9 = vmul.f32 0.5, %v2252_v49  ;;  %v403_v17 = vmul.f32 0.5, %v2254_v50 }
 0x1af   :  { %2015 = vtanh.f32 %v451_v22  ;;  %v444_v31 = vadd.f32 %v434_v29, %v2262_v57  ;;  %v404_v19 = vmul.f32 0.5, %v2262_v57 }
 0x1b0   :  { %2017 = vtanh.f32 %v452_v26  ;;  %v453_v32 = vmul.f32 0.7978846, %v443_v34 }
 0x1b1   :  { %v454_v36 = vmul.f32 0.7978846, %v444_v31 }
 0x1b2   :  { %2019 = vtanh.f32 %v453_v32 }
 0x1b3   :  { %2021 = vtanh.f32 %v454_v36 }
 0x1b5   :  { %v2004_v37 = vpop.eup %2003 }
 0x1b6   :  { %v466_v39 = vadd.f32 1.0, %v2004_v37  ;;  %v2006_v40 = vpop.eup %2005 }
 0x1b7   :  { %v467_v48 = vadd.f32 1.0, %v2006_v40 }
 0x1b8   :  { %v2294_v30 = vmul.f32 %v466_v39, %v396_v38  ;;  %v2008_v46 = vpop.eup %2007 }
 0x1b9   :  { %v2010_v51 = vpop.eup %2009  ;;  %v465_v53 = vadd.f32 1.0, %v2008_v46  ;;  %v2298_v55 = vmul.f32 %v467_v48, %v397_v47 }
 0x1ba   :  { %v2012_v54 = vpop.eup %2011  ;;  %v510_v56 = vrot.slane %v2294_v30, 1  ;;  %v468_v58 = vadd.f32 1.0, %v2010_v51  ;;  %v800_v32 = vrot.slane %v2294_v30, 2 }
 0x1bb   :  { %v2014_v59 = vpop.eup %2013  ;;  %v2302_v60 = vmul.f32 %v465_v53, %v395_v52  ;;  %v469_v62 = vadd.f32 1.0, %v2012_v54  ;;  %v512_v63 = vrot.slane %v2298_v55, 1  ;;  %v802_v36 = vrot.slane %v2298_v55, 2 }
 0x1bc   :  { %v2016_v41 = vpop.eup %2015  ;;  %v2306_v0 = vmul.f32 %v468_v58, %v398_v35  ;;  %v470_v1 = vadd.f32 1.0, %v2014_v59  ;;  %v2046_v59 = vmov 0.0  }
 0x1bd   :  { %v2018_v2 = vpop.eup %2017  ;;  %1841 = vmatprep.mubr.msk.f32.mxu0 %vm274_vm4, %v2302_v60  ;;  %v509_v42 = vrot.slane %v2302_v60, 1  ;;  %v2312_v3 = vmul.f32 %v469_v62, %v399_v61  ;;  %v471_v43 = vadd.f32 1.0, %v2016_v41  ;;  %v513_v5 = vsel %vm61_vm0, %v510_v56, %v512_v63  ;;  %1877 = vmatprep.subr.mxu0 %v2046_v59 }
 0x1be   :  { %1842 = vmatmul.mubr.msk.f32.vlgmr.msra.gmra.mxu0 %vm274_vm4, %v2294_v30  ;;  %v514_v6 = vrot.slane %v2306_v0, 1  ;;  %v2319_v33 = vmul.f32 %v470_v1, %v400_v45  ;;  %v472_v7 = vadd.f32 1.0, %v2018_v2  ;;  %v799_v31 = vrot.slane %v2302_v60, 2 }
 0x1bf   :  { %1844 = vmatprep.mubr.msk.f32.mxu0 %vm274_vm4, %v2298_v55  ;;  %v511_v8 = vsel %vm61_vm0, %v509_v42, %v510_v56  ;;  %v516_v44 = vrot.slane %v2312_v3, 1  ;;  %v2327_v10 = vmul.f32 %v471_v43, %v401_v4  ;;  %v2020_v11 = vpop.eup %2019  ;;  %v804_v38 = vrot.slane %v2306_v0, 2 }
 0x1c0   :  { %1820 = vmatprep.mubr.msk.f32.mxu1 %vm274_vm4, %v511_v8  ;;  %v515_v12 = vsel %vm61_vm0, %v512_v63, %v514_v6  ;;  %v518_v13 = vrot.slane %v2319_v33, 1  ;;  %v2332_v14 = vmul.f32 %v472_v7, %v402_v9  ;;  %v2022_v49 = vpop.eup %2021  ;;  %v473_v18 = vadd.f32 1.0, %v2020_v11 }
 0x1c1   :  { %1821 = vmatmul.mubr.msk.f32.vlgmr.msra.gmra.mxu1 %vm274_vm4, %v513_v5  ;;  %v474_v20 = vadd.f32 1.0, %v2022_v49  ;;  %v517_v21 = vsel %vm61_vm0, %v514_v6, %v516_v44  ;;  %v520_v22 = vrot.slane %v2327_v10, 1  ;;  %v801_v37 = vsel %vm798_vm6, %v799_v31, %v800_v32 }
 0x1c2   :  { %1823 = vmatprep.mubr.msk.f32.mxu1 %vm274_vm4, %v515_v12  ;;  %1845 = vmatmul.mubr.msk.f32.gmra.mxu0 %vm274_vm4, %v2306_v0  ;;  %v483_v23 = vmul.f32 %v473_v18, %v403_v17  ;;  %v519_v24 = vsel %vm61_vm0, %v516_v44, %v518_v13  ;;  %v522_v50 = vrot.slane %v2332_v14, 1  ;;  %v803_v39 = vsel %vm798_vm6, %v800_v32, %v802_v36 }
 0x1c3   :  { %1847 = vmatprep.mubr.msk.f32.mxu0 %vm274_vm4, %v2312_v3  ;;  %1857 = vmatpush3.msra.mxu1 %v2206_v15  ;;  %v484_v25 = vmul.f32 %v474_v20, %v404_v19  ;;  %v496_v15 = vld [vmem:[%s2570_s4 + $0x30] sm:$0xff]  ;;  %v521_v57 = vsel %vm61_vm0, %v518_v13, %v520_v22  ;;  %v806_v40 = vrot.slane %v2312_v3, 2  ;;  %v805_v30 = vsel %vm798_vm6, %v802_v36, %v804_v38 }
 0x1c4   :  { %1858 = vmatprep.subr.mxu1 %v497_v16  ;;  %v524_v26 = vrot.slane %v483_v23, 1  ;;  %v523_v27 = vsel %vm61_vm0, %v520_v22, %v522_v50  ;;  %v808_v46 = vrot.slane %v2319_v33, 2  ;;  %v810_v48 = vrot.slane %v2327_v10, 2 }
 0x1c5   :  { %1824 = vmatmul.mubr.msk.f32.gmra.mxu1 %vm274_vm4, %v517_v21  ;;  %v526_v28 = vrot.slane %v484_v25, 1  ;;  %v807_v47 = vsel %vm798_vm6, %v804_v38, %v806_v40  ;;  %v812_v52 = vrot.slane %v2332_v14, 2  ;;  %v814_v54 = vrot.slane %v483_v23, 2 }
 0x1c6   :  { %1826 = vmatprep.mubr.msk.f32.mxu1 %vm274_vm4, %v519_v24  ;;  %1848 = vmatmul.mubr.msk.f32.gmra.mxu0 %vm274_vm4, %v2319_v33  ;;  %v525_v29 = vsel %vm61_vm0, %v522_v50, %v524_v26  ;;  %v809_v51 = vsel %vm798_vm6, %v806_v40, %v808_v46  ;;  %v811_v53 = vsel %vm798_vm6, %v808_v46, %v810_v48  ;;  %v816_v56 = vrot.slane %v484_v25, 2  ;;  %v485_v40 = vld [vmem:[%s2573_s5] sm:$0xff]  ;;  %v487_v46 = vld [vmem:[%s2573_s5 + $0x10] sm:$0xff] }
 0x1c7   :  { %1850 = vmatprep.mubr.msk.f32.mxu0 %vm274_vm4, %v2327_v10  ;;  %1859 = vmatpush3.msra.mxu1 %v497_v16  ;;  %v527_v34 = vsel %vm61_vm0, %v524_v26, %v526_v28  ;;  %v813_v55 = vsel %vm798_vm6, %v810_v48, %v812_v52  ;;  %v815_v35 = vsel %vm798_vm6, %v812_v52, %v814_v54  ;;  %v489_v48 = vld [vmem:[%s2573_s5 + $0x20] sm:$0x7f]  ;;  %v1122_v52 = vld [vmem:[%s2574_s6 + $0x8] sm:$0xff] }
 0x1c8   :  { %1860 = vmatprep.subr.mxu1 %v496_v15  ;;  %v817_v58 = vsel %vm798_vm6, %v814_v54, %v816_v56  ;;  %v1125_v54 = vld [vmem:[%s2574_s6 + $0x20] sm:$0xff] }
 0x1c9   :  { %1827 = vmatmul.mubr.msk.f32.gmra.mxu1 %vm274_vm4, %v521_v57 }
 0x1ca   :  { %1829 = vmatprep.mubr.msk.f32.mxu1 %vm274_vm4, %v523_v27  ;;  %1851 = vmatmul.mubr.msk.f32.gmra.mxu0 %vm274_vm4, %v2332_v14 }
 0x1cb   :  { %1853 = vmatprep.mubr.msk.f32.mxu0 %vm274_vm4, %v483_v23  ;;  %1861 = vmatpush3.msra.mxu1 %v496_v15 }
 0x1cc   :  { %1912 = vmatprep.subr.mxu1 %v2046_v59 }
 0x1cd   :  { %1830 = vmatmul.mubr.msk.f32.gmra.mxu1 %vm274_vm4, %v525_v29 }
 0x1ce   :  { %1832 = vmatprep.mubr.msk.f32.mxu1 %vm274_vm4, %v527_v34  ;;  %1854 = vmatmul.mubr.msk.f32.gmra.mxu0 %vm274_vm4, %v484_v25 }
 0x1cf   :  { %1897 = vmatprep.mubr.msk.f32.mxu0 %vm2047_vm7, %v2046_v59 }
 0x1d1   :  { %1833 = vmatmul.mubr.msk.f32.gmra.mxu1 %vm274_vm4, %v526_v28 }
 0x1d2   :  { %1862 = vmatprep.mubr.msk.f32.mxu1 %vm274_vm4, %v801_v37 }
 0x1d5   :  { %1863 = vmatmul.mubr.msk.f32.vlgmr.msra.gmra.mxu1 %vm274_vm4, %v803_v39 }
 0x1d6   :  { %1865 = vmatprep.mubr.msk.f32.mxu1 %vm274_vm4, %v805_v30  ;;  %v486_v30 = vld [vmem:[%s2573_s5 + $0x8] sm:$0xff] }
 0x1d9   :  { %1866 = vmatmul.mubr.msk.f32.gmra.mxu1 %vm274_vm4, %v807_v47  ;;  %v488_v47 = vld [vmem:[%s2573_s5 + $0x18] sm:$0xff] }
 0x1da   :  { %1868 = vmatprep.mubr.msk.f32.mxu1 %vm274_vm4, %v809_v51  ;;  %v1123_v51 = vld [vmem:[%s2574_s6 + $0x10] sm:$0xff] }
 0x1dd   :  { %1869 = vmatmul.mubr.msk.f32.gmra.mxu1 %vm274_vm4, %v811_v53  ;;  %v1126_v53 = vld [vmem:[%s2574_s6 + $0x28] sm:$0xff] }
 0x1de   :  { %1871 = vmatprep.mubr.msk.f32.mxu1 %vm274_vm4, %v813_v55  ;;  %1913 = vmatpush3.msra.mxu1 %v1126_v53  ;;  %v1121_v55 = vld [vmem:[%s2574_s6] sm:$0xff] }
 0x1df   :  { %1914 = vmatprep.subr.mxu1 %v2046_v59 }
 0x1e0   :  { %1915 = vmatpush3.msra.mxu1 %v1125_v54 }
 0x1e1   :  { %1872 = vmatmul.mubr.msk.f32.gmra.mxu1 %vm274_vm4, %v815_v35  ;;  %1916 = vmatprep.subr.mxu1 %v2046_v59 }
 0x1e2   :  { %1874 = vmatprep.mubr.msk.f32.mxu1 %vm274_vm4, %v817_v58 }
 0x1e5   :  { %1875 = vmatmul.mubr.msk.f32.gmra.mxu1 %vm274_vm4, %v816_v56  ;;  %v1124_v56 = vld [vmem:[%s2574_s6 + $0x18] sm:$0xff] }
 0x1e6   :  { %1918 = vmatprep.mubr.msk.f32.mxu1 %vm2047_vm7, %v2046_v59  ;;  %1917 = vmatpush3.msra.mxu1 %v1124_v56 }
 0x1e7   :  { %1988 = vmatprep.subr.mxu1 %v2046_v59 }
 0x27e   :  { %v1843_v60 = vpop.f32.mrf.mxu0 }
 0x280   :  { %v749_v41 = vpop.f32.mrf.mxu0 }
 0x281   :  { %v1822_v61 = vpop.f32.mrf.mxu1 }
 0x282   :  { %v1846_v45 = vpop.f32.mrf.mxu0  ;;  %v755_v32 = vadd.f32 %v1843_v60, %v1822_v61 }
 0x283   :  { %v614_v62 = vpop.f32.mrf.mxu1 }
 0x284   :  { %v759_v42 = vpop.f32.mrf.mxu0  ;;  %v750_v37 = vadd.f32 %v749_v41, %v614_v62 }
 0x285   :  { %v1825_v63 = vpop.f32.mrf.mxu1 }
 0x286   :  { %v1849_v43 = vpop.f32.mrf.mxu0  ;;  %v765_v28 = vadd.f32 %v1846_v45, %v1825_v63 }
 0x287   :  { %v624_v0 = vpop.f32.mrf.mxu1 }
 0x288   :  { %v769_v33 = vpop.f32.mrf.mxu0  ;;  %v760_v34 = vadd.f32 %v759_v42, %v624_v0 }
 0x289   :  { %v1828_v1 = vpop.f32.mrf.mxu1 }
 0x28a   :  { %v1852_v9 = vpop.f32.mrf.mxu0  ;;  %v775_v15 = vadd.f32 %v1849_v43, %v1828_v1 }
 0x28b   :  { %v634_v2 = vpop.f32.mrf.mxu1 }
 0x28c   :  { %v779_v11 = vpop.f32.mrf.mxu0  ;;  %v770_v26 = vadd.f32 %v769_v33, %v634_v2 }
 0x28d   :  { %v1831_v3 = vpop.f32.mrf.mxu1 }
 0x28e   :  { %v1855_v14 = vpop.f32.mrf.mxu0  ;;  %v785_v23 = vadd.f32 %v1852_v9, %v1831_v3 }
 0x28f   :  { %v644_v4 = vpop.f32.mrf.mxu1 }
 0x290   :  { %v789_v18 = vpop.f32.mrf.mxu0  ;;  %v780_v50 = vadd.f32 %v779_v11, %v644_v4 }
 0x291   :  { %v1834_v5 = vpop.f32.mrf.mxu1 }
 0x292   :  { %v795_v17 = vadd.f32 %v1855_v14, %v1834_v5 }
 0x293   :  { %v654_v6 = vpop.f32.mrf.mxu1 }
 0x294   :  { %v790_v20 = vadd.f32 %v789_v18, %v654_v6 }
 0x295   :  { %v1864_v7 = vpop.f32.mrf.mxu1 }
 0x296   :  { %v954_v38 = vadd.f32 %v1864_v7, %v755_v32 }
 0x297   :  { %v904_v8 = vpop.f32.mrf.mxu1 }
 0x298   :  { %v953_v39 = vadd.f32 %v904_v8, %v750_v37 }
 0x299   :  { %v1867_v44 = vpop.f32.mrf.mxu1 }
 0x29a   :  { %v956_v31 = vadd.f32 %v1867_v44, %v765_v28 }
 0x29b   :  { %v914_v10 = vpop.f32.mrf.mxu1 }
 0x29c   :  { %v955_v36 = vadd.f32 %v914_v10, %v760_v34 }
 0x29d   :  { %v1870_v12 = vpop.f32.mrf.mxu1 }
 0x29e   :  { %v958_v27 = vadd.f32 %v1870_v12, %v775_v15 }
 0x29f   :  { %v924_v13 = vpop.f32.mrf.mxu1 }
 0x2a0   :  { %v957_v29 = vadd.f32 %v924_v13, %v770_v26 }
 0x2a1   :  { %v1873_v16 = vpop.f32.mrf.mxu1 }
 0x2a2   :  { %v960_v25 = vadd.f32 %v1873_v16, %v785_v23 }
 0x2a3   :  { %v934_v49 = vpop.f32.mrf.mxu1 }
 0x2a4   :  { %v959_v57 = vadd.f32 %v934_v49, %v780_v50 }
 0x2a5   :  { %v1876_v19 = vpop.f32.mrf.mxu1 }
 0x2a6   :  { %v962_v21 = vadd.f32 %v1876_v19, %v795_v17 }
 0x2a7   :  { %v944_v22 = vpop.f32.mrf.mxu1 }
 0x2a8   :  { %v961_v24 = vadd.f32 %v944_v22, %v790_v20  ;;  %1878 = vmatpush3.msk.msra.mxu0 %vm979_vm8, %v962_v21 }
 0x2a9   :  { %1879 = vmatprep.subr.mxu0 %v2046_v59 }
 0x2aa   :  { %1880 = vmatpush3.msra.mxu0 %v961_v24 }
 0x2ab   :  { %1881 = vmatprep.subr.mxu0 %v2046_v59 }
 0x2ac   :  { %1882 = vmatpush3.msra.mxu0 %v960_v25 }
 0x2ad   :  { %1883 = vmatprep.subr.mxu0 %v2046_v59 }
 0x2ae   :  { %1884 = vmatpush3.msra.mxu0 %v959_v57 }
 0x2af   :  { %1885 = vmatprep.subr.mxu0 %v2046_v59 }
 0x2b0   :  { %1886 = vmatpush3.msra.mxu0 %v958_v27 }
 0x2b1   :  { %1887 = vmatprep.subr.mxu0 %v2046_v59 }
 0x2b2   :  { %1888 = vmatpush3.msra.mxu0 %v957_v29 }
 0x2b3   :  { %1889 = vmatprep.subr.mxu0 %v2046_v59 }
 0x2b4   :  { %1890 = vmatpush3.msra.mxu0 %v956_v31 }
 0x2b5   :  { %1891 = vmatprep.subr.mxu0 %v2046_v59 }
 0x2b6   :  { %1892 = vmatpush3.msra.mxu0 %v955_v36 }
 0x2b7   :  { %1893 = vmatprep.subr.mxu0 %v2046_v59 }
 0x2b8   :  { %1894 = vmatpush3.msra.mxu0 %v954_v38 }
 0x2b9   :  { %1895 = vmatprep.subr.mxu0 %v2046_v59 }
 0x2ba   :  { %1896 = vmatpush3.msra.mxu0 %v953_v39 }
 0x2bb   :  { %1898 = vmatmul.mubr.msk.f32.vlgmr.msra.gmra.mxu0 %vm963_vm9, %v485_v40  ;;  %1933 = vmatprep.subr.mxu0 %v2046_v59 }
 0x2bc   :  { %1900 = vmatprep.mubr.msk.f32.mxu0 %vm2047_vm7, %v2046_v59  ;;  %1934 = vmatpush3.msra.mxu0 %v1123_v51 }
 0x2bd   :  { %1935 = vmatprep.subr.mxu0 %v2046_v59 }
 0x2be   :  { %1936 = vmatpush3.msra.mxu0 %v1122_v52 }
 0x2bf   :  { %1901 = vmatmul.mubr.msk.f32.gmra.mxu0 %vm963_vm9, %v486_v30  ;;  %1937 = vmatprep.subr.mxu0 %v2046_v59 }
 0x2c0   :  { %1903 = vmatprep.mubr.msk.f32.mxu0 %vm2047_vm7, %v2046_v59  ;;  %1938 = vmatpush3.msra.mxu0 %v1121_v55 }
 0x2c1   :  { %1954 = vmatprep.subr.mxu0 %v2046_v59 }
 0x2c3   :  { %1904 = vmatmul.mubr.msk.f32.gmra.mxu0 %vm963_vm9, %v487_v46 }
 0x2c4   :  { %1906 = vmatprep.mubr.msk.f32.mxu0 %vm2047_vm7, %v2046_v59 }
 0x2c7   :  { %1907 = vmatmul.mubr.msk.f32.gmra.mxu0 %vm963_vm9, %v488_v47 }
 0x2c8   :  { %1909 = vmatprep.mubr.msk.f32.mxu0 %vm2047_vm7, %v2046_v59 }
 0x2cb   :  { %1910 = vmatmul.mubr.msk.f32.gmra.mxu0 %vm963_vm9, %v489_v48 }
 0x2cc   :  { %1939 = vmatprep.mubr.msk.f32.mxu0 %vm2047_vm7, %v2046_v59 }
 0x37b   :  { %v1049_v35 = vpop.f32.mrf.mxu0 }
 0x37c   :  { %v1078_v58 = vmul.f32 0.044715, %v1049_v35  ;;  %v1073_v23 = vmul.f32 0.5, %v1049_v35 }
 0x37d   :  { %v1899_v60 = vpop.f32.mrf.mxu0 }
 0x37e   :  { %v1083_v61 = vmul.f32 %v1078_v58, %v1049_v35 }
 0x37f   :  { %v1054_v62 = vpop.f32.mrf.mxu0 }
 0x380   :  { %v1088_v41 = vmul.f32 %v1083_v61, %v1049_v35  ;;  %v1079_v63 = vmul.f32 0.044715, %v1054_v62  ;;  %v1074_v57 = vmul.f32 0.5, %v1054_v62 }
 0x381   :  { %v1902_v0 = vpop.f32.mrf.mxu0 }
 0x382   :  { %v1093_v45 = vadd.f32 %v1088_v41, %v1049_v35  ;;  %v1084_v1 = vmul.f32 %v1079_v63, %v1054_v62 }
 0x383   :  { %v1059_v2 = vpop.f32.mrf.mxu0 }
 0x384   :  { %v1098_v42 = vmul.f32 0.7978846, %v1093_v45  ;;  %v1089_v3 = vmul.f32 %v1084_v1, %v1054_v62  ;;  %v1080_v4 = vmul.f32 0.044715, %v1059_v2  ;;  %v1075_v34 = vmul.f32 0.5, %v1059_v2 }
 0x385   :  { %v1905_v43 = vpop.f32.mrf.mxu0 }
 0x386   :  { %2023 = vtanh.f32 %v1098_v42  ;;  %v1094_v5 = vadd.f32 %v1089_v3, %v1054_v62  ;;  %v1085_v6 = vmul.f32 %v1080_v4, %v1059_v2 }
 0x387   :  { %v1064_v33 = vpop.f32.mrf.mxu0 }
 0x388   :  { %v1099_v7 = vmul.f32 0.7978846, %v1094_v5  ;;  %v1090_v8 = vmul.f32 %v1085_v6, %v1059_v2  ;;  %v1081_v9 = vmul.f32 0.044715, %v1064_v33  ;;  %v1076_v39 = vmul.f32 0.5, %v1064_v33 }
 0x389   :  { %v1908_v44 = vpop.f32.mrf.mxu0 }
 0x38a   :  { %2025 = vtanh.f32 %v1099_v7  ;;  %v1095_v10 = vadd.f32 %v1090_v8, %v1059_v2  ;;  %v1086_v11 = vmul.f32 %v1081_v9, %v1064_v33 }
 0x38b   :  { %v1069_v12 = vpop.f32.mrf.mxu0 }
 0x38c   :  { %v1100_v13 = vmul.f32 0.7978846, %v1095_v10  ;;  %v1091_v14 = vmul.f32 %v1086_v11, %v1064_v33  ;;  %v1082_v16 = vmul.f32 0.044715, %v1069_v12  ;;  %v1077_v51 = vmul.f32 0.5, %v1069_v12 }
 0x38d   :  { %v1911_v49 = vpop.f32.mrf.mxu0 }
 0x38e   :  { %2027 = vtanh.f32 %v1100_v13  ;;  %v1096_v17 = vadd.f32 %v1091_v14, %v1064_v33  ;;  %v1087_v18 = vmul.f32 %v1082_v16, %v1069_v12  ;;  %v1118_v14 = vld [vmem:[%s2575_s7] sm:$0xff]  ;;  %v1119_v16 = vld [vmem:[%s2575_s7 + $0x8] sm:$0xff]  ;;  %v1120_v49 = vld [vmem:[%s2575_s7 + $0x10] sm:$0x7] }
 0x390   :  { %v1101_v19 = vmul.f32 0.7978846, %v1096_v17  ;;  %v1092_v20 = vmul.f32 %v1087_v18, %v1069_v12 }
 0x392   :  { %2029 = vtanh.f32 %v1101_v19  ;;  %v1097_v21 = vadd.f32 %v1092_v20, %v1069_v12 }
 0x393   :  { %v2024_v22 = vpop.eup %2023 }
 0x394   :  { %v1108_v24 = vadd.f32 1.0, %v2024_v22  ;;  %v1102_v50 = vmul.f32 0.7978846, %v1097_v21 }
 0x396   :  { %v1113_v25 = vmul.f32 %v1108_v24, %v1073_v23  ;;  %2031 = vtanh.f32 %v1102_v50 }
 0x397   :  { %v2026_v15 = vpop.eup %2025 }
 0x398   :  { %1940 = vmatmul.mubr.msk.f32.vlgmr.msra.gmra.mxu0 %vm274_vm4, %v1113_v25  ;;  %v1109_v26 = vadd.f32 1.0, %v2026_v15  ;;  %v1132_v29 = vrot.slane %v1113_v25, 1 }
 0x399   :  { %1942 = vmatprep.mubr.msk.f32.mxu0 %vm2047_vm7, %v2046_v59 }
 0x39a   :  { %v1114_v27 = vmul.f32 %v1109_v26, %v1074_v57 }
 0x39b   :  { %v2028_v28 = vpop.eup %2027 }
 0x39c   :  { %v1133_v31 = vrot.slane %v1114_v27, 1  ;;  %1943 = vmatmul.mubr.msk.f32.gmra.mxu0 %vm274_vm4, %v1114_v27  ;;  %v1110_v32 = vadd.f32 1.0, %v2028_v28 }
 0x39d   :  { %1945 = vmatprep.mubr.msk.f32.mxu0 %vm2047_vm7, %v2046_v59 }
 0x39e   :  { %v1134_v36 = vsel %vm61_vm0, %v1132_v29, %v1133_v31  ;;  %v1115_v37 = vmul.f32 %v1110_v32, %v1075_v34 }
 0x39f   :  { %v2030_v38 = vpop.eup %2029  ;;  %1919 = vmatmul.mubr.msk.f32.vlgmr.msra.gmra.mxu1 %vm274_vm4, %v1134_v36 }
 0x3a0   :  { %1946 = vmatmul.mubr.msk.f32.gmra.mxu0 %vm274_vm4, %v1115_v37  ;;  %1921 = vmatprep.mubr.msk.f32.mxu1 %vm2047_vm7, %v2046_v59  ;;  %v1135_v40 = vrot.slane %v1115_v37, 1  ;;  %v1111_v30 = vadd.f32 1.0, %v2030_v38 }
 0x3a1   :  { %1948 = vmatprep.mubr.msk.f32.mxu0 %vm2047_vm7, %v2046_v59 }
 0x3a2   :  { %v1136_v46 = vsel %vm61_vm0, %v1133_v31, %v1135_v40  ;;  %v1116_v47 = vmul.f32 %v1111_v30, %v1076_v39 }
 0x3a3   :  { %v2032_v48 = vpop.eup %2031  ;;  %1922 = vmatmul.mubr.msk.f32.gmra.mxu1 %vm274_vm4, %v1136_v46 }
 0x3a4   :  { %1949 = vmatmul.mubr.msk.f32.gmra.mxu0 %vm274_vm4, %v1116_v47  ;;  %1924 = vmatprep.mubr.msk.f32.mxu1 %vm2047_vm7, %v2046_v59  ;;  %v1137_v52 = vrot.slane %v1116_v47, 1  ;;  %v1112_v53 = vadd.f32 1.0, %v2032_v48 }
 0x3a5   :  { %1951 = vmatprep.mubr.msk.f32.mxu0 %vm2047_vm7, %v2046_v59 }
 0x3a6   :  { %v1138_v54 = vsel %vm61_vm0, %v1135_v40, %v1137_v52  ;;  %v1117_v55 = vmul.f32 %v1112_v53, %v1077_v51 }
 0x3a7   :  { %1925 = vmatmul.mubr.msk.f32.gmra.mxu1 %vm274_vm4, %v1138_v54 }
 0x3a8   :  { %1952 = vmatmul.mubr.msk.f32.gmra.mxu0 %vm274_vm4, %v1117_v55  ;;  %1927 = vmatprep.mubr.msk.f32.mxu1 %vm2047_vm7, %v2046_v59  ;;  %v1139_v56 = vrot.slane %v1117_v55, 1 }
 0x3a9   :  { %1964 = vmatprep.mubr.msk.f32.mxu0 %vm2047_vm7, %v2046_v59 }
 0x3aa   :  { %v1140_v35 = vsel %vm61_vm0, %v1137_v52, %v1139_v56 }
 0x3ab   :  { %1928 = vmatmul.mubr.msk.f32.gmra.mxu1 %vm274_vm4, %v1140_v35 }
 0x3ac   :  { %1930 = vmatprep.mubr.msk.f32.mxu1 %vm2047_vm7, %v2046_v59 }
 0x3af   :  { %1931 = vmatmul.mubr.msk.f32.gmra.mxu1 %vm274_vm4, %v1139_v56 }
 0x3b0   :  { %1967 = vmatprep.mubr.msk.f32.mxu1 %vm2047_vm7, %v2046_v59 }
 0x458   :  { %v1317_v58 = vpop.f32.mrf.mxu0 }
 0x45a   :  { %v1941_v60 = vpop.f32.mrf.mxu0 }
 0x45c   :  { %v1322_v61 = vpop.f32.mrf.mxu0 }
 0x45e   :  { %v1944_v62 = vpop.f32.mrf.mxu0 }
 0x45f   :  { %v1217_v41 = vpop.f32.mrf.mxu1 }
 0x460   :  { %v1327_v63 = vpop.f32.mrf.mxu0  ;;  %v1318_v13 = vadd.f32 %v1317_v58, %v1217_v41 }
 0x461   :  { %v1920_v0 = vpop.f32.mrf.mxu1 }
 0x462   :  { %v1947_v45 = vpop.f32.mrf.mxu0 }
 0x463   :  { %v1222_v1 = vpop.f32.mrf.mxu1 }
 0x464   :  { %v1332_v2 = vpop.f32.mrf.mxu0  ;;  %v1323_v12 = vadd.f32 %v1322_v61, %v1222_v1 }
 0x465   :  { %v1923_v42 = vpop.f32.mrf.mxu1 }
 0x466   :  { %v1950_v3 = vpop.f32.mrf.mxu0 }
 0x467   :  { %v1227_v4 = vpop.f32.mrf.mxu1 }
 0x468   :  { %v1337_v43 = vpop.f32.mrf.mxu0  ;;  %v1328_v11 = vadd.f32 %v1327_v63, %v1227_v4 }
 0x469   :  { %v1926_v5 = vpop.f32.mrf.mxu1 }
 0x46a   :  { %v1953_v6 = vpop.f32.mrf.mxu0 }
 0x46b   :  { %v1232_v33 = vpop.f32.mrf.mxu1 }
 0x46c   :  { %v1333_v10 = vadd.f32 %v1332_v2, %v1232_v33  ;;  %v1524_v33 = vld [vmem:[%s2576_s10 + $0x10] sm:$0xff] }
 0x46d   :  { %v1929_v7 = vpop.f32.mrf.mxu1 }
 0x46e   :  { %v1523_v7 = vld [vmem:[%s2576_s10 + $0x8] sm:$0xff] }
 0x46f   :  { %v1237_v8 = vpop.f32.mrf.mxu1 }
 0x470   :  { %v1338_v9 = vadd.f32 %v1337_v43, %v1237_v8  ;;  %v1522_v8 = vld [vmem:[%s2576_s10] sm:$0xff] }
 0x471   :  { %v1932_v44 = vpop.f32.mrf.mxu1 }
 0x472   :  { %1955 = vmatpush3.msk.msra.mxu0 %vm798_vm6, %v1338_v9  ;;  %1993 = vmatpush3.msk.msra.mxu1 %vm798_vm6, %v1338_v9 }
 0x473   :  { %1956 = vmatprep.subr.mxu0 %v2046_v59  ;;  %1989 = vmatprep.subr.mxu1 %v2046_v59 }
 0x474   :  { %1957 = vmatpush3.msra.mxu0 %v1333_v10  ;;  %1994 = vmatpush3.msra.mxu1 %v1333_v10 }
 0x475   :  { %1958 = vmatprep.subr.mxu0 %v2046_v59  ;;  %1990 = vmatprep.subr.mxu1 %v2046_v59 }
 0x476   :  { %1959 = vmatpush3.msra.mxu0 %v1328_v11  ;;  %1995 = vmatpush3.msra.mxu1 %v1328_v11 }
 0x477   :  { %1960 = vmatprep.subr.mxu0 %v2046_v59  ;;  %1991 = vmatprep.subr.mxu1 %v2046_v59 }
 0x478   :  { %1961 = vmatpush3.msra.mxu0 %v1323_v12  ;;  %1996 = vmatpush3.msra.mxu1 %v1323_v12 }
 0x479   :  { %1962 = vmatprep.subr.mxu0 %v2046_v59  ;;  %1992 = vmatprep.subr.mxu1 %v2046_v59 }
 0x47a   :  { %1963 = vmatpush3.msra.mxu0 %v1318_v13  ;;  %1997 = vmatpush3.msra.mxu1 %v1318_v13 }
 0x47b   :  { %1965 = vmatmul.mubr.msk.f32.vlgmr.msra.gmra.mxu0 %vm1341_vm10, %v1118_v14  ;;  %1968 = vmatmul.mubr.msk.f32.vlgmr.msra.gmra.mxu1 %vm1341_vm10, %v1119_v16 }
 0x47c   :  { %1970 = vmatprep.mubr.msk.f32.mxu1 %vm2047_vm7, %v2046_v59  ;;  %1973 = vmatprep.subr.mxu1 %v2046_v59 }
 0x47d   :  { %1974 = vmatpush3.msra.mxu1 %v1524_v33 }
 0x47e   :  { %1975 = vmatprep.subr.mxu1 %v2046_v59 }
 0x47f   :  { %1971 = vmatmul.mubr.msk.f32.gmra.mxu1 %vm1341_vm10, %v1120_v49 }
 0x480   :  { %1979 = vmatprep.mubr.msk.f32.mxu1 %vm2047_vm7, %v2046_v59  ;;  %1976 = vmatpush3.msra.mxu1 %v1523_v7 }
 0x481   :  { %1977 = vmatprep.subr.mxu1 %v2046_v59 }
 0x482   :  { %1978 = vmatpush3.msra.mxu1 %v1522_v8 }
 0x53b   :  { %v1420_v17 = vpop.f32.mrf.mxu0  ;;  %v1425_v18 = vpop.f32.mrf.mxu1 }
 0x53c   :  { %v1437_v19 = vmul.f32 0.044715, %v1420_v17  ;;  %v1438_v20 = vmul.f32 0.044715, %v1425_v18  ;;  %v1435_v40 = vmul.f32 0.5, %v1425_v18  ;;  %v1434_v46 = vmul.f32 0.5, %v1420_v17 }
 0x53d   :  { %v1969_v21 = vpop.f32.mrf.mxu1  ;;  %v1966_v22 = vpop.f32.mrf.mxu0 }
 0x53e   :  { %v1440_v23 = vmul.f32 %v1437_v19, %v1420_v17  ;;  %v1441_v24 = vmul.f32 %v1438_v20, %v1425_v18  ;;  %v1693_v19 = vld [vmem:[%s2577_s8] ss:$0 sm:$0xff] }
 0x53f   :  { %v1430_v50 = vpop.f32.mrf.mxu1  ;;  %v1694_v22 = vld [vmem:[%s2578_s9] ss:$0 sm:$0xff] }
 0x540   :  { %v1443_v25 = vmul.f32 %v1440_v23, %v1420_v17  ;;  %v1444_v15 = vmul.f32 %v1441_v24, %v1425_v18  ;;  %v1439_v57 = vmul.f32 0.044715, %v1430_v50  ;;  %v1436_v54 = vmul.f32 0.5, %v1430_v50 }
 0x541   :  { %v1972_v26 = vpop.f32.mrf.mxu1 }
 0x542   :  { %v1446_v27 = vadd.f32 %v1443_v25, %v1420_v17  ;;  %v1447_v28 = vadd.f32 %v1444_v15, %v1425_v18  ;;  %v1442_v29 = vmul.f32 %v1439_v57, %v1430_v50 }
 0x544   :  { %v1445_v34 = vmul.f32 %v1442_v29, %v1430_v50  ;;  %v1450_v31 = vmul.f32 0.7978846, %v1447_v28  ;;  %v1449_v32 = vmul.f32 0.7978846, %v1446_v27  ;;  %v1695_v28 = vld [vmem:[%s2579_s11] ss:$0 sm:$0xff] }
 0x546   :  { %v1448_v36 = vadd.f32 %v1445_v34, %v1430_v50  ;;  %2033 = vtanh.f32 %v1450_v31 }
 0x547   :  { %2035 = vtanh.f32 %v1449_v32 }
 0x548   :  { %v1451_v37 = vmul.f32 0.7978846, %v1448_v36 }
 0x54a   :  { %2037 = vtanh.f32 %v1451_v37 }
 0x553   :  { %v2034_v38 = vpop.eup %2033 }
 0x554   :  { %v2036_v39 = vpop.eup %2035  ;;  %v1456_v30 = vadd.f32 1.0, %v2034_v38 }
 0x555   :  { %v1455_v47 = vadd.f32 1.0, %v2036_v39 }
 0x556   :  { %v1459_v48 = vmul.f32 %v1456_v30, %v1435_v40 }
 0x557   :  { %v2038_v51 = vpop.eup %2037  ;;  %v1458_v52 = vmul.f32 %v1455_v47, %v1434_v46 }
 0x558   :  { %v1466_v53 = vsel %vm274_vm4, %v1459_v48, 0.0  ;;  %v1457_v55 = vadd.f32 1.0, %v2038_v51 }
 0x559   :  { %1467 = vadd.xlane.f32.xlu1 %v1466_v53  ;;  %v1463_v56 = vsel %vm274_vm4, %v1458_v52, 0.0 }
 0x55a   :  { %1464 = vadd.xlane.f32.xlu0 %v1463_v56  ;;  %v1460_v35 = vmul.f32 %v1457_v55, %v1436_v54 }
 0x55c   :  { %v1470_v58 = vsel %vm1469_vm11, %v1460_v35, 0.0 }
 0x55e   :  { %1471 = vadd.xlane.f32.xlu0 %v1470_v58 }
 0x5e2   :  { %v1468_v60 = vpop.xlane.xlu1 %1467 }
 0x5e3   :  { %v1475_v61 = vmul.f32 0.041666668, %v1468_v60  ;;  %v1465_v62 = vpop.xlane.xlu0 %1464 }
 0x5e4   :  { %v1474_v41 = vmul.f32 0.041666668, %v1465_v62 }
 0x5e5   :  { %v1478_v63 = vsub.f32 %v1459_v48, %v1475_v61 }
 0x5e6   :  { %v1477_v0 = vsub.f32 %v1458_v52, %v1474_v41 }
 0x5e7   :  { %v1472_v45 = vpop.xlane.xlu0 %1471  ;;  %v1481_v1 = vmul.f32 %v1478_v63, %v1478_v63 }
 0x5e8   :  { %v1476_v2 = vmul.f32 0.041666668, %v1472_v45  ;;  %v1480_v42 = vmul.f32 %v1477_v0, %v1477_v0 }
 0x5e9   :  { %v1486_v3 = vsel %vm274_vm4, %v1481_v1, 0.0 }
 0x5ea   :  { %v1479_v4 = vsub.f32 %v1460_v35, %v1476_v2  ;;  %1487 = vadd.xlane.f32.xlu1 %v1486_v3  ;;  %v1483_v43 = vsel %vm274_vm4, %v1480_v42, 0.0 }
 0x5eb   :  { %1484 = vadd.xlane.f32.xlu0 %v1483_v43 }
 0x5ec   :  { %v1482_v5 = vmul.f32 %v1479_v4, %v1479_v4 }
 0x5ee   :  { %v1489_v6 = vsel %vm1469_vm11, %v1482_v5, 0.0 }
 0x5ef   :  { %1490 = vadd.xlane.f32.xlu0 %v1489_v6 }
 0x673   :  { %v1488_v9 = vpop.xlane.xlu1 %1487 }
 0x674   :  { %v1493_v44 = vmul.f32 0.041666668, %v1488_v9  ;;  %v1485_v10 = vpop.xlane.xlu0 %1484 }
 0x675   :  { %v1492_v11 = vmul.f32 0.041666668, %v1485_v10 }
 0x676   :  { %v1496_v12 = vadd.f32 1e-05, %v1493_v44 }
 0x677   :  { %v1495_v13 = vadd.f32 1e-05, %v1492_v11 }
 0x678   :  { %2039 = vrsqrt.f32 %v1496_v12  ;;  %v1491_v14 = vpop.xlane.xlu0 %1490 }
 0x679   :  { %2041 = vrsqrt.f32 %v1495_v13  ;;  %v1494_v16 = vmul.f32 0.041666668, %v1491_v14 }
 0x67b   :  { %v1497_v49 = vadd.f32 1e-05, %v1494_v16 }
 0x67d   :  { %2043 = vrsqrt.f32 %v1497_v49 }
 0x685   :  { %v2040_v17 = vpop.eup %2039 }
 0x686   :  { %v2042_v18 = vpop.eup %2041  ;;  %v1502_v21 = vmul.f32 %v2040_v17, %v1478_v63 }
 0x687   :  { %v1501_v20 = vmul.f32 %v2042_v18, %v1477_v0 }
 0x688   :  { %v1511_v25 = vmul.f32 %v1693_v19, %v1502_v21 }
 0x689   :  { %v1510_v23 = vmul.f32 %v1693_v19, %v1501_v20 }
 0x68a   :  { %v2044_v24 = vpop.eup %2043  ;;  %v1520_v57 = vadd.f32 %v1694_v22, %v1511_v25 }
 0x68b   :  { %v1519_v50 = vadd.f32 %v1694_v22, %v1510_v23  ;;  %v1503_v15 = vmul.f32 %v2044_v24, %v1479_v4 }
 0x68d   :  { %1980 = vmatmul.mubr.msk.f32.vlgmr.msra.gmra.mxu1 %vm274_vm4, %v1519_v50  ;;  %v1512_v26 = vmul.f32 %v1693_v19, %v1503_v15 }
 0x68e   :  { %1982 = vmatprep.mubr.msk.f32.mxu1 %vm2047_vm7, %v2046_v59 }
 0x68f   :  { %v1521_v27 = vadd.f32 %v1694_v22, %v1512_v26 }
 0x691   :  { %1983 = vmatmul.mubr.msk.f32.gmra.mxu1 %vm274_vm4, %v1520_v57 }
 0x692   :  { %1985 = vmatprep.mubr.msk.f32.mxu1 %vm2047_vm7, %v2046_v59 }
 0x695   :  { %1986 = vmatmul.mubr.msk.f32.gmra.mxu1 %vm274_vm4, %v1521_v27 }
 0x74d   :  { %v1607_v29 = vpop.f32.mrf.mxu1 }
 0x74e   :  { %v1608_v34 = vadd.f32 %v1695_v28, %v1607_v29 }
 0x74f   :  { %v1981_v31 = vpop.f32.mrf.mxu1 }
 0x750   :  { %1622 = vst.msk [vmem:[%s2580_s12] sm:$0xff] %vm1621_vm12, %v1608_v34 }
 0x751   :  { %v1612_v32 = vpop.f32.mrf.mxu1 }
 0x752   :  { %v1613_v36 = vadd.f32 %v1695_v28, %v1612_v32 }
 0x753   :  { %v1984_v37 = vpop.f32.mrf.mxu1 }
 0x754   :  { %1623 = vst.msk [vmem:[%s2580_s12 + $0x8] sm:$0xff] %vm1621_vm12, %v1613_v36 }
 0x755   :  { %v1617_v59 = vpop.f32.mrf.mxu1 }
 0x756   :  { %v1618_v38 = vadd.f32 %v1695_v28, %v1617_v59 }
 0x757   :  { %v1987_v39 = vpop.f32.mrf.mxu1 }
 0x758   :  { %1625 = vst.msk [vmem:[%s2580_s12 + $0x10] sm:$0x7] %vm1624_vm13, %v1618_v38 }

// kernel: contentvec_forward.3
= control target key start
LH: loop header
LB: loop body
LE: loop exit
PB: predicated region body
PF: predicated region fallthrough
CT: control target
= control target key end

     0   :  { %vm62_vm0 = vcmask 1041408   ;;  %vm71_vm1 = vcmask 1044480   ;;  %v5367_v6 = vmov 0.0   ;;  %vm5368_vm2 = vmmov 0   ;;  %s5369_s25 = smov 112   ;;  %s5371_s18 = smov 96   ;;  %s6709_s0 = inlined_call_operand.vmem [shape: f32[19,32], index: 0, kind: input, shape index: {}]   ;;  %s6710_s1 = inlined_call_operand.vmem [shape: f32[160,16], index: 1, kind: input, shape index: {}]   ;;  %s6711_s2 = inlined_call_operand.vmem [shape: f32[1,32], index: 2, kind: input, shape index: {}]   ;;  %s6712_s5 = inlined_call_operand.vmem [shape: f32[2,32,96], index: 5, kind: input, shape index: {}]   ;;  %s6713_s3 = inlined_call_operand.vmem [shape: f32[1,32], index: 3, kind: input, shape index: {}]   ;;  %s6714_s4 = inlined_call_operand.vmem [shape: f32[1,32], index: 4, kind: input, shape index: {}]   ;;  %s6715_s6 = inlined_call_operand.vmem [shape: f32[2,1,96], index: 6, kind: input, shape index: {}]   ;;  %s6716_s7 = inlined_call_operand.vmem [shape: f32[2,32,32], index: 7, kind: input, shape index: {}]   ;;  %s6717_s8 = inlined_call_operand.vmem [shape: f32[2,1,32], index: 8, kind: input, shape index: {}]   ;;  %s6718_s11 = inlined_call_operand.vmem [shape: f32[2,32,64], index: 11, kind: input, shape index: {}]   ;;  %s6719_s9 = inlined_call_operand.vmem [shape: f32[2,1,32], index: 9, kind: input, shape index: {}]   ;;  %s6720_s10 = inlined_call_operand.vmem [shape: f32[2,1,32], index: 10, kind: input, shape index: {}]   ;;  %s6721_s13 = inlined_call_operand.vmem [shape: f32[2,64,32], index: 13, kind: input, shape index: {}]   ;;  %s6722_s12 = inlined_call_operand.vmem [shape: f32[2,1,64], index: 12, kind: input, shape index: {}]   ;;  %s6723_s14 = inlined_call_operand.vmem [shape: f32[2,1,32], index: 14, kind: input, shape index: {}]   ;;  %s6724_s15 = inlined_call_operand.vmem [shape: f32[2,1,32], index: 15, kind: input, shape index: {}]   ;;  %s6725_s16 = inlined_call_operand.vmem [shape: f32[2,1,32], index: 16, kind: input, shape index: {}]   ;;  %s6726_s17 = inlined_call_operand.vmem [shape: f32[19,32], index: 17, kind: output, shape index: {}]  }
   0x1   :  { %6737 = sst [smem:[#allocation3_spill]] %s6709_s0  ;;  %4681 = vmatprep.subr.mxu0 %v5367_v6  ;;  %5203 = vmatprep.subr.mxu1 %v5367_v6  ;;  %vm79_vm3 = vcmask 1046528   ;;  %vm85_vm4 = vcmask 130048   ;;  %vm260_vm5 = vcmask 1045504   ;;  %vm453_vm6 = vcmask 1043456   ;;  %s5374_s20 = smov 80  }
   0x2   :  { %6738 = sst [smem:[#allocation4_spill]] %s6710_s1  ;;  %4685 = vmatprep.mubr.msk.f32.mxu0 %vm5368_vm2, %v5367_v6  ;;  %4701 = vmatprep.mubr.msk.f32.mxu1 %vm5368_vm2, %v5367_v6  ;;  %vm550_vm7 = vcmask 124928   ;;  %vm1043_vm8 = vcmask 261248   ;;  %vm1046_vm9 = vcmask 256128   ;;  %vm1093_vm10 = vcmask 261120   ;;  %s5372_s1 = smov 88  }
   0x3   :  { %s6739_s26 = sld [smem:[#allocation3_spill]]  ;;  %vm1100_vm11 = vcmask 256000   ;;  %s5375_s21 = smov 72   ;;  %vm1265_vm12 = vcmask 64512   ;;  %vm1413_vm13 = vcmask 1042432   ;;  %vm1361_vm14 = vcmask 154624  }
   0x4   :  { %s6740_s19 = sld [smem:[#allocation4_spill]]  ;;  %s5376_s22 = smov 104   ;;  %vm1368_vm15 = vcmask 149504  }
   0x5   :  { %s5377_s23 = smov 64   ;;  %s6733_s24 = smov 56  }
   0x6   :  { %s6729_s27 = smov 40   ;;  %s5381_s28 = smov 8  }
   0x7   :  { %s6735_s29 = smov 24  }
   0x9   :  { %v5476_v0 = vld [vmem:[%s6739_s26 + $0x8] sm:$0xff]  ;;  %v5481_v1 = vld [vmem:[%s6739_s26 + $0x10] sm:$0x7]  ;;  %v5486_v2 = vld [vmem:[%s6739_s26] sm:$0xff]  ;;  %s6731_s26 = smov 48  }
   0xa   :  { %v64_v3 = vrot.slane %v5476_v0, 6  ;;  %v66_v4 = vrot.slane %v5481_v1, 6  ;;  %v63_v5 = vrot.slane %v5486_v2, 6  ;;  %v76_v7 = vld [vmem:[%s6740_s19 + $0x28] sm:$0xff]  ;;  %v75_v8 = vld [vmem:[%s6740_s19 + $0x20] sm:$0xff]  ;;  %v555_v41 = vld [vmem:[%s6740_s19 + $0x38] sm:$0xff] }
   0xb   :  { %4682 = vmatpush3.msra.mxu0 %v76_v7  ;;  %v74_v9 = vld [vmem:[%s6740_s19 + $0x8] sm:$0xff]  ;;  %v73_v16 = vld [vmem:[%s6740_s19] sm:$0xff]  ;;  %v554_v42 = vld [vmem:[%s6740_s19 + $0x30] sm:$0xff] }
   0xc   :  { %v67_v10 = vsel %vm62_vm0, %v64_v3, %v66_v4  ;;  %v5506_v11 = vsel %vm62_vm0, %v63_v5, %v64_v3  ;;  %v5509_v12 = vsel %vm62_vm0, 0.0, %v63_v5  ;;  %4683 = vmatprep.subr.mxu0 %v5367_v6  ;;  %5205 = vmatpush3.msra.mxu1 %v74_v9  ;;  %v356_v22 = vld [vmem:[%s6740_s19 + $0x68] sm:$0xff]  ;;  %v355_v25 = vld [vmem:[%s6740_s19 + $0x60] sm:$0xff]  ;;  %v553_v43 = vld [vmem:[%s6740_s19 + $0x18] sm:$0xff]  ;;  %vm1498_vm0 = vcmask 59392  }
   0xd   :  { %v5513_v13 = vsel %vm71_vm1, %v67_v10, 0.0  ;;  %v80_v14 = vrot.slane %v5509_v12, 1  ;;  %v81_v15 = vrot.slane %v5506_v11, 1  ;;  %4684 = vmatpush3.msra.mxu0 %v75_v8  ;;  %5204 = vmatprep.subr.mxu1 %v5367_v6  ;;  %v261_v20 = vrot.slane %v5509_v12, 2  ;;  %v259_v29 = vld [vmem:[%s6740_s19 + $0x48] sm:$0xff]  ;;  %v258_v34 = vld [vmem:[%s6740_s19 + $0x40] sm:$0xff] }
   0xe   :  { %v83_v17 = vrot.slane %v5513_v13, 1  ;;  %4694 = vmatprep.subr.mxu0 %v5367_v6  ;;  %5206 = vmatpush3.msra.mxu1 %v73_v16  ;;  %v262_v21 = vrot.slane %v5506_v11, 2  ;;  %v264_v24 = vrot.slane %v5513_v13, 2  ;;  %v357_v26 = vrot.slane %v5509_v12, 3  ;;  %v452_v36 = vld [vmem:[%s6740_s19 + $0x88] sm:$0xff]  ;;  %v451_v39 = vld [vmem:[%s6740_s19 + $0x80] sm:$0xff] }
   0xf   :  { %v82_v18 = vsel %vm79_vm3, %v80_v14, %v81_v15  ;;  %4720 = vmatprep.subr.mxu1 %v5367_v6  ;;  %4702 = vmatmul.mubr.msk.f32.vlgmr.msra.gmra.mxu1 %vm85_vm4, %v5506_v11  ;;  %v358_v27 = vrot.slane %v5506_v11, 3  ;;  %v360_v31 = vrot.slane %v5513_v13, 3  ;;  %v454_v32 = vrot.slane %v5509_v12, 4  ;;  %v552_v44 = vld [vmem:[%s6740_s19 + $0x10] sm:$0xff]  ;;  %v741_v45 = vld [vmem:[%s6740_s19 + $0x58] sm:$0xff] }
  0x10   :  { %560 = vrot.lane.b32.xlu1 %v83_v17, %s5369_s25  ;;  %556 = vrot.lane.b32.xlu0 %v82_v18, %s5369_s25  ;;  %v84_v19 = vsel %vm79_vm3, %v81_v15, %v83_v17  ;;  %v263_v23 = vsel %vm260_vm5, %v261_v20, %v262_v21  ;;  %v265_v28 = vsel %vm260_vm5, %v262_v21, %v264_v24  ;;  %v455_v33 = vrot.slane %v5506_v11, 4  ;;  %v740_v48 = vld [vmem:[%s6740_s19 + $0x50] sm:$0xff]  ;;  %v838_v51 = vld [vmem:[%s6740_s19 + $0x78] sm:$0xff] }
  0x11   :  { %4686 = vmatmul.mubr.msk.f32.vlgmr.msra.gmra.mxu0 %vm85_vm4, %v82_v18  ;;  %4704 = vmatprep.mubr.msk.f32.mxu1 %vm5368_vm2, %v5367_v6  ;;  %v359_v30 = vsel %vm71_vm1, %v357_v26, %v358_v27  ;;  %v361_v35 = vsel %vm71_vm1, %v358_v27, %v360_v31  ;;  %v457_v38 = vrot.slane %v5513_v13, 4  ;;  %v837_v54 = vld [vmem:[%s6740_s19 + $0x70] sm:$0xff]  ;;  %v935_v55 = vld [vmem:[%s6740_s19 + $0x98] sm:$0xff]  ;;  %vm1748_vm1 = vcmask 130112  }
  0x12   :  { %4688 = vmatprep.mubr.msk.f32.mxu0 %vm5368_vm2, %v5367_v6  ;;  %4695 = vmatpush3.msra.mxu0 %v74_v9  ;;  %v456_v37 = vsel %vm453_vm6, %v454_v32, %v455_v33  ;;  %v934_v58 = vld [vmem:[%s6740_s19 + $0x90] sm:$0xff]  ;;  %s5370_s19 = smov 16   ;;  %vm2001_vm3 = vcmask 195712   ;;  %vm1751_vm5 = vcmask 124992  }
  0x13   :  { %4696 = vmatprep.subr.mxu0 %v5367_v6  ;;  %4705 = vmatmul.mubr.msk.f32.gmra.mxu1 %vm85_vm4, %v5513_v13  ;;  %v458_v40 = vsel %vm453_vm6, %v455_v33, %v457_v38  ;;  %vm2004_vm6 = vcmask 190592  }
  0x14   :  { %648 = vrot.lane.b32.xlu1 %v5509_v12, %s5369_s25  ;;  %558 = vrot.lane.b32.xlu0 %v84_v19, %s5369_s25 }
  0x15   :  { %4689 = vmatmul.mubr.msk.f32.gmra.mxu0 %vm85_vm4, %v84_v19  ;;  %4721 = vmatpush3.msra.mxu1 %v356_v22 }
  0x16   :  { %4691 = vmatprep.mubr.msk.f32.mxu0 %vm5368_vm2, %v5367_v6  ;;  %4697 = vmatpush3.msra.mxu0 %v73_v16 }
  0x17   :  { %4707 = vmatprep.subr.mxu0 %v5367_v6  ;;  %4722 = vmatprep.subr.mxu1 %v5367_v6 }
  0x18   :  { %650 = vrot.lane.b32.xlu1 %v5506_v11, %s5369_s25  ;;  %742 = vrot.lane.b32.xlu0 %v263_v23, %s5369_s25 }
  0x19   :  { %4692 = vmatmul.mubr.msk.f32.gmra.mxu0 %vm85_vm4, %v83_v17  ;;  %4723 = vmatpush3.msra.mxu1 %v355_v25 }
  0x1a   :  { %4698 = vmatprep.mubr.msk.f32.mxu0 %vm5368_vm2, %v5367_v6  ;;  %4724 = vmatprep.mubr.msk.f32.mxu1 %vm5368_vm2, %v5367_v6 }
  0x1b   :  { %4746 = vmatprep.subr.mxu1 %v5367_v6  ;;  %4725 = vmatmul.mubr.msk.f32.vlgmr.msra.gmra.mxu1 %vm85_vm4, %v359_v30 }
  0x1c   :  { %652 = vrot.lane.b32.xlu1 %v5513_v13, %s5369_s25  ;;  %744 = vrot.lane.b32.xlu0 %v265_v28, %s5369_s25 }
  0x1d   :  { %4699 = vmatmul.mubr.msk.f32.vlgmr.msra.gmra.mxu0 %vm85_vm4, %v5509_v12  ;;  %4727 = vmatprep.mubr.msk.f32.mxu1 %vm5368_vm2, %v5367_v6 }
  0x1e   :  { %4708 = vmatpush3.msra.mxu0 %v259_v29  ;;  %4711 = vmatprep.mubr.msk.f32.mxu0 %vm5368_vm2, %v5367_v6 }
  0x1f   :  { %4709 = vmatprep.subr.mxu0 %v5367_v6  ;;  %4728 = vmatmul.mubr.msk.f32.gmra.mxu1 %vm85_vm4, %v361_v35 }
  0x20   :  { %839 = vrot.lane.b32.xlu1 %v359_v30, %s5369_s25  ;;  %746 = vrot.lane.b32.xlu0 %v264_v24, %s5369_s25 }
  0x21   :  { %4710 = vmatpush3.msra.mxu0 %v258_v34  ;;  %4730 = vmatprep.mubr.msk.f32.mxu1 %vm5368_vm2, %v5367_v6 }
  0x22   :  { %4712 = vmatmul.mubr.msk.f32.vlgmr.msra.gmra.mxu0 %vm85_vm4, %v263_v23  ;;  %4733 = vmatprep.subr.mxu0 %v5367_v6 }
  0x23   :  { %4714 = vmatprep.mubr.msk.f32.mxu0 %vm5368_vm2, %v5367_v6  ;;  %4734 = vmatpush3.msra.mxu0 %v452_v36 }
  0x24   :  { %841 = vrot.lane.b32.xlu1 %v361_v35, %s5369_s25  ;;  %936 = vrot.lane.b32.xlu0 %v456_v37, %s5369_s25 }
  0x25   :  { %4735 = vmatprep.subr.mxu0 %v5367_v6  ;;  %4731 = vmatmul.mubr.msk.f32.gmra.mxu1 %vm85_vm4, %v360_v31 }
  0x26   :  { %4715 = vmatmul.mubr.msk.f32.gmra.mxu0 %vm85_vm4, %v265_v28  ;;  %4747 = vmatpush3.msra.mxu1 %v555_v41 }
  0x27   :  { %4717 = vmatprep.mubr.msk.f32.mxu0 %vm5368_vm2, %v5367_v6  ;;  %4736 = vmatpush3.msra.mxu0 %v451_v39 }
  0x28   :  { %843 = vrot.lane.b32.xlu1 %v360_v31, %s5369_s25  ;;  %938 = vrot.lane.b32.xlu0 %v458_v40, %s5369_s25 }
  0x29   :  { %4759 = vmatprep.subr.mxu0 %v5367_v6  ;;  %4748 = vmatprep.subr.mxu1 %v5367_v6 }
  0x2a   :  { %4718 = vmatmul.mubr.msk.f32.gmra.mxu0 %vm85_vm4, %v264_v24  ;;  %4749 = vmatpush3.msra.mxu1 %v554_v42 }
  0x2b   :  { %4737 = vmatprep.mubr.msk.f32.mxu0 %vm5368_vm2, %v5367_v6  ;;  %4750 = vmatprep.mubr.msk.f32.mxu1 %vm5368_vm2, %v5367_v6 }
  0x2c   :  { %940 = vrot.lane.b32.xlu0 %v457_v38, %s5369_s25  ;;  %4772 = vmatprep.subr.mxu1 %v5367_v6 }
  0x2e   :  { %4738 = vmatmul.mubr.msk.f32.vlgmr.msra.gmra.mxu0 %vm85_vm4, %v456_v37 }
  0x2f   :  { %4740 = vmatprep.mubr.msk.f32.mxu0 %vm5368_vm2, %v5367_v6  ;;  %4760 = vmatpush3.msra.mxu0 %v553_v43 }
  0x30   :  { %4761 = vmatprep.subr.mxu0 %v5367_v6 }
  0x31   :  { %4762 = vmatpush3.msra.mxu0 %v552_v44 }
  0x32   :  { %4741 = vmatmul.mubr.msk.f32.gmra.mxu0 %vm85_vm4, %v458_v40  ;;  %4785 = vmatprep.subr.mxu0 %v5367_v6 }
  0x33   :  { %4743 = vmatprep.mubr.msk.f32.mxu0 %vm5368_vm2, %v5367_v6 }
  0x36   :  { %4744 = vmatmul.mubr.msk.f32.gmra.mxu0 %vm85_vm4, %v457_v38 }
  0x37   :  { %4763 = vmatprep.mubr.msk.f32.mxu0 %vm5368_vm2, %v5367_v6 }
  0x82   :  { %v561_v46 = vpop.permute.xlu1 %560  ;;  %v557_v47 = vpop.permute.xlu0 %556 }
  0x83   :  { %4751 = vmatmul.mubr.msk.f32.vlgmr.msra.gmra.mxu1 %vm85_vm4, %v557_v47 }
  0x84   :  { %4773 = vmatpush3.msra.mxu1 %v741_v45  ;;  %4753 = vmatprep.mubr.msk.f32.mxu1 %vm5368_vm2, %v5367_v6 }
  0x85   :  { %4774 = vmatprep.subr.mxu1 %v5367_v6 }
  0x86   :  { %v649_v49 = vpop.permute.xlu1 %648  ;;  %v559_v50 = vpop.permute.xlu0 %558  ;;  %4775 = vmatpush3.msra.mxu1 %v740_v48 }
  0x87   :  { %4754 = vmatmul.mubr.msk.f32.gmra.mxu1 %vm85_vm4, %v559_v50  ;;  %4764 = vmatmul.mubr.msk.f32.vlgmr.msra.gmra.mxu0 %vm85_vm4, %v649_v49 }
  0x88   :  { %4756 = vmatprep.mubr.msk.f32.mxu1 %vm5368_vm2, %v5367_v6  ;;  %4766 = vmatprep.mubr.msk.f32.mxu0 %vm5368_vm2, %v5367_v6 }
  0x89   :  { %4786 = vmatpush3.msra.mxu0 %v838_v51  ;;  %4798 = vmatprep.subr.mxu1 %v5367_v6 }
  0x8a   :  { %v651_v52 = vpop.permute.xlu1 %650  ;;  %v743_v53 = vpop.permute.xlu0 %742  ;;  %4787 = vmatprep.subr.mxu0 %v5367_v6 }
  0x8b   :  { %4757 = vmatmul.mubr.msk.f32.gmra.mxu1 %vm85_vm4, %v561_v46  ;;  %4767 = vmatmul.mubr.msk.f32.gmra.mxu0 %vm85_vm4, %v651_v52 }
  0x8c   :  { %4776 = vmatprep.mubr.msk.f32.mxu1 %vm5368_vm2, %v5367_v6  ;;  %4769 = vmatprep.mubr.msk.f32.mxu0 %vm5368_vm2, %v5367_v6 }
  0x8d   :  { %4788 = vmatpush3.msra.mxu0 %v837_v54 }
  0x8e   :  { %v653_v56 = vpop.permute.xlu1 %652  ;;  %v745_v57 = vpop.permute.xlu0 %744  ;;  %4811 = vmatprep.subr.mxu0 %v5367_v6 }
  0x8f   :  { %4770 = vmatmul.mubr.msk.f32.gmra.mxu0 %vm85_vm4, %v653_v56  ;;  %4777 = vmatmul.mubr.msk.f32.vlgmr.msra.gmra.mxu1 %vm85_vm4, %v743_v53 }
  0x90   :  { %4799 = vmatpush3.msra.mxu1 %v935_v55  ;;  %4779 = vmatprep.mubr.msk.f32.mxu1 %vm5368_vm2, %v5367_v6 }
  0x91   :  { %4789 = vmatprep.mubr.msk.f32.mxu0 %vm5368_vm2, %v5367_v6  ;;  %4800 = vmatprep.subr.mxu1 %v5367_v6 }
  0x92   :  { %v840_v59 = vpop.permute.xlu1 %839  ;;  %4801 = vmatpush3.msra.mxu1 %v934_v58  ;;  %v747_v60 = vpop.permute.xlu0 %746 }
  0x93   :  { %4780 = vmatmul.mubr.msk.f32.gmra.mxu1 %vm85_vm4, %v745_v57  ;;  %4790 = vmatmul.mubr.msk.f32.vlgmr.msra.gmra.mxu0 %vm85_vm4, %v840_v59 }
  0x94   :  { %4782 = vmatprep.mubr.msk.f32.mxu1 %vm5368_vm2, %v5367_v6  ;;  %4792 = vmatprep.mubr.msk.f32.mxu0 %vm5368_vm2, %v5367_v6 }
  0x95   :  { %4828 = vmatprep.subr.mxu1 %v5367_v6 }
  0x96   :  { %v842_v61 = vpop.permute.xlu1 %841  ;;  %v937_v62 = vpop.permute.xlu0 %936 }
  0x97   :  { %4783 = vmatmul.mubr.msk.f32.gmra.mxu1 %vm85_vm4, %v747_v60  ;;  %4793 = vmatmul.mubr.msk.f32.gmra.mxu0 %vm85_vm4, %v842_v61 }
  0x98   :  { %4802 = vmatprep.mubr.msk.f32.mxu1 %vm5368_vm2, %v5367_v6  ;;  %4795 = vmatprep.mubr.msk.f32.mxu0 %vm5368_vm2, %v5367_v6 }
  0x9a   :  { %v844_v63 = vpop.permute.xlu1 %843  ;;  %v939_v3 = vpop.permute.xlu0 %938 }
  0x9b   :  { %4796 = vmatmul.mubr.msk.f32.gmra.mxu0 %vm85_vm4, %v844_v63  ;;  %4803 = vmatmul.mubr.msk.f32.vlgmr.msra.gmra.mxu1 %vm85_vm4, %v937_v62 }
  0x9c   :  { %4805 = vmatprep.mubr.msk.f32.mxu1 %vm5368_vm2, %v5367_v6  ;;  %4819 = vmatprep.mubr.msk.f32.mxu0 %vm5368_vm2, %v5367_v6 }
  0x9e   :  { %v941_v4 = vpop.permute.xlu0 %940 }
  0x9f   :  { %4806 = vmatmul.mubr.msk.f32.gmra.mxu1 %vm85_vm4, %v939_v3 }
  0xa0   :  { %4808 = vmatprep.mubr.msk.f32.mxu1 %vm5368_vm2, %v5367_v6 }
  0xa3   :  { %4809 = vmatmul.mubr.msk.f32.gmra.mxu1 %vm85_vm4, %v941_v4 }
  0xa4   :  { %4834 = vmatprep.mubr.msk.f32.mxu1 %vm5368_vm2, %v5367_v6 }
  0xcf   :  { %v249_v7 = vpop.f32.mrf.mxu1 }
  0xd1   :  { %v158_v5 = vpop.f32.mrf.mxu0  ;;  %v4703_v9 = vpop.f32.mrf.mxu1 }
  0xd3   :  { %v4687_v8 = vpop.f32.mrf.mxu0  ;;  %v254_v11 = vpop.f32.mrf.mxu1 }
  0xd5   :  { %v163_v10 = vpop.f32.mrf.mxu0  ;;  %v4706_v13 = vpop.f32.mrf.mxu1 }
  0xd6   :  { %v250_v28 = vadd.f32 %v249_v7, %v163_v10 }
  0xd7   :  { %v4690_v12 = vpop.f32.mrf.mxu0 }
  0xd9   :  { %v168_v14 = vpop.f32.mrf.mxu0 }
  0xda   :  { %v255_v33 = vadd.f32 %v254_v11, %v168_v14 }
  0xdb   :  { %v4693_v15 = vpop.f32.mrf.mxu0  ;;  %v434_v17 = vpop.f32.mrf.mxu1 }
  0xdd   :  { %v244_v16 = vpop.f32.mrf.mxu0  ;;  %v4726_v19 = vpop.f32.mrf.mxu1 }
  0xde   :  { %v245_v22 = vadd.f32 %v244_v16, %v158_v5 }
  0xdf   :  { %v4700_v18 = vpop.f32.mrf.mxu0  ;;  %v439_v20 = vpop.f32.mrf.mxu1 }
  0xe1   :  { %v4729_v23 = vpop.f32.mrf.mxu1 }
  0xe2   :  { %v338_v21 = vpop.f32.mrf.mxu0 }
  0xe3   :  { %v352_v27 = vadd.f32 %v338_v21, %v245_v22 }
  0xe4   :  { %v4713_v24 = vpop.f32.mrf.mxu0 }
  0xe5   :  { %v444_v26 = vpop.f32.mrf.mxu1  ;;  %v448_v34 = vadd.f32 %v434_v17, %v352_v27 }
  0xe6   :  { %v343_v25 = vpop.f32.mrf.mxu0 }
  0xe7   :  { %v4732_v30 = vpop.f32.mrf.mxu1  ;;  %v353_v32 = vadd.f32 %v343_v25, %v250_v28 }
  0xe8   :  { %v4716_v29 = vpop.f32.mrf.mxu0 }
  0xe9   :  { %v449_v39 = vadd.f32 %v439_v20, %v353_v32  ;;  %v4320_v32 = vld [vmem:[%s6711_s2] ss:$0 sm:$0xff]  ;;  %s5373_s2 = smov 120  }
  0xea   :  { %v348_v31 = vpop.f32.mrf.mxu0 }
  0xeb   :  { %v354_v37 = vadd.f32 %v348_v31, %v255_v33 }
  0xec   :  { %v4719_v35 = vpop.f32.mrf.mxu0 }
  0xed   :  { %v450_v43 = vadd.f32 %v444_v26, %v354_v37 }
  0xee   :  { %v531_v36 = vpop.f32.mrf.mxu0 }
  0xef   :  { %v545_v38 = vadd.f32 %v531_v36, %v448_v34 }
  0xf0   :  { %v4739_v40 = vpop.f32.mrf.mxu0 }
  0xf1   :  { %548 = vst.msk [vmem:[#allocation2] sm:$0xff] %vm85_vm4, %v545_v38 }
  0xf2   :  { %v536_v41 = vpop.f32.mrf.mxu0 }
  0xf3   :  { %v546_v42 = vadd.f32 %v536_v41, %v449_v39 }
  0xf4   :  { %v4742_v44 = vpop.f32.mrf.mxu0 }
  0xf5   :  { %549 = vst.msk [vmem:[#allocation2 + $0x8] sm:$0xff] %vm85_vm4, %v546_v42  ;;  %vm2254_vm4 = vcmask 261312  }
  0xf6   :  { %v541_v45 = vpop.f32.mrf.mxu0 }
  0xf7   :  { %v547_v46 = vadd.f32 %v541_v45, %v450_v43 }
  0xf8   :  { %v4745_v47 = vpop.f32.mrf.mxu0 }
  0xf9   :  { %551 = vst.msk [vmem:[#allocation2 + $0x10] sm:$0x7] %vm550_vm7, %v547_v46  ;;  %vm2257_vm7 = vcmask 256192  }
 0x143   :  { %v634_v48 = vpop.f32.mrf.mxu1 }
 0x145   :  { %v4752_v49 = vpop.f32.mrf.mxu1 }
 0x147   :  { %v639_v50 = vpop.f32.mrf.mxu1  ;;  %v726_v51 = vpop.f32.mrf.mxu0 }
 0x148   :  { %v727_v5 = vadd.f32 %v726_v51, %v634_v48 }
 0x149   :  { %v4755_v52 = vpop.f32.mrf.mxu1  ;;  %v4765_v53 = vpop.f32.mrf.mxu0 }
 0x14b   :  { %v644_v54 = vpop.f32.mrf.mxu1  ;;  %v731_v55 = vpop.f32.mrf.mxu0 }
 0x14c   :  { %v732_v12 = vadd.f32 %v731_v55, %v639_v50 }
 0x14d   :  { %v4758_v56 = vpop.f32.mrf.mxu1  ;;  %v4768_v57 = vpop.f32.mrf.mxu0 }
 0x14f   :  { %v736_v58 = vpop.f32.mrf.mxu0  ;;  %v820_v59 = vpop.f32.mrf.mxu1 }
 0x150   :  { %v834_v9 = vadd.f32 %v820_v59, %v727_v5  ;;  %v737_v20 = vadd.f32 %v736_v58, %v644_v54 }
 0x151   :  { %v4771_v60 = vpop.f32.mrf.mxu0  ;;  %v4778_v61 = vpop.f32.mrf.mxu1 }
 0x153   :  { %v825_v62 = vpop.f32.mrf.mxu1  ;;  %v917_v63 = vpop.f32.mrf.mxu0 }
 0x154   :  { %v931_v13 = vadd.f32 %v917_v63, %v834_v9  ;;  %v835_v16 = vadd.f32 %v825_v62, %v732_v12 }
 0x155   :  { %v4781_v3 = vpop.f32.mrf.mxu1  ;;  %v4791_v4 = vpop.f32.mrf.mxu0 }
 0x157   :  { %v830_v7 = vpop.f32.mrf.mxu1  ;;  %v922_v8 = vpop.f32.mrf.mxu0 }
 0x158   :  { %v932_v21 = vadd.f32 %v922_v8, %v835_v16  ;;  %v836_v23 = vadd.f32 %v830_v7, %v737_v20 }
 0x159   :  { %v4784_v10 = vpop.f32.mrf.mxu1  ;;  %v4794_v11 = vpop.f32.mrf.mxu0 }
 0x15b   :  { %v927_v14 = vpop.f32.mrf.mxu0  ;;  %v1014_v15 = vpop.f32.mrf.mxu1 }
 0x15c   :  { %v1028_v17 = vadd.f32 %v1014_v15, %v931_v13  ;;  %v933_v26 = vadd.f32 %v927_v14, %v836_v23 }
 0x15d   :  { %v4804_v18 = vpop.f32.mrf.mxu1  ;;  %v4797_v19 = vpop.f32.mrf.mxu0 }
 0x15e   :  { %1034 = vrot.lane.b32.xlu1 %v1028_v17, %s5370_s19 }
 0x15f   :  { %v1019_v22 = vpop.f32.mrf.mxu1 }
 0x160   :  { %v1029_v24 = vadd.f32 %v1019_v22, %v932_v21 }
 0x161   :  { %v4807_v25 = vpop.f32.mrf.mxu1 }
 0x162   :  { %1036 = vrot.lane.b32.xlu0 %v1029_v24, %s5370_s19  ;;  %v1156_v25 = vld [vmem:[%s6712_s5 + $0x18] sm:$0xff] }
 0x163   :  { %v1024_v27 = vpop.f32.mrf.mxu1  ;;  %4812 = vmatpush3.msra.mxu0 %v1156_v25 }
 0x164   :  { %v1030_v28 = vadd.f32 %v1024_v27, %v933_v26  ;;  %4813 = vmatprep.subr.mxu0 %v5367_v6  ;;  %v1155_v26 = vld [vmem:[%s6712_s5 + $0x10] sm:$0xff]  ;;  %v1154_v27 = vld [vmem:[%s6712_s5 + $0x8] sm:$0xff] }
 0x165   :  { %v4810_v29 = vpop.f32.mrf.mxu1  ;;  %4814 = vmatpush3.msra.mxu0 %v1155_v26 }
 0x166   :  { %1038 = vrot.lane.b32.xlu1 %v1030_v28, %s5370_s19  ;;  %4815 = vmatprep.subr.mxu0 %v5367_v6  ;;  %v1153_v28 = vld [vmem:[%s6712_s5] sm:$0xff] }
 0x167   :  { %4816 = vmatpush3.msra.mxu0 %v1154_v27 }
 0x168   :  { %4817 = vmatprep.subr.mxu0 %v5367_v6 }
 0x169   :  { %4818 = vmatpush3.msra.mxu0 %v1153_v28 }
 0x16a   :  { %4843 = vmatprep.subr.mxu0 %v5367_v6 }
 0x1d0   :  { %v1035_v30 = vpop.permute.xlu1 %1034 }
 0x1d1   :  { %1044 = vst.msk [vmem:[#allocation2] sm:$0xff] %vm1043_vm8, %v1035_v30 }
 0x1d4   :  { %v1037_v31 = vpop.permute.xlu0 %1036 }
 0x1d5   :  { %1045 = vst.msk [vmem:[#allocation2 + $0x8] sm:$0xff] %vm1043_vm8, %v1037_v31  ;;  %vm2566_vm8 = vcmask 523264  }
 0x1d8   :  { %v1039_v33 = vpop.permute.xlu1 %1038  ;;  %v1048_v34 = vld [vmem:[#allocation2] sm:$0xff] }
 0x1d9   :  { %1047 = vst.msk [vmem:[#allocation2 + $0x10] sm:$0x7] %vm1046_vm9, %v1039_v33  ;;  %v1058_v35 = vadd.f32 %v4320_v32, %v1048_v34 }
 0x1db   :  { %v1064_v36 = vmul.f32 0.044715, %v1058_v35  ;;  %v1061_v56 = vmul.f32 0.5, %v1058_v35 }
 0x1dc   :  { %v1049_v37 = vld [vmem:[#allocation2 + $0x8] sm:$0xff] }
 0x1dd   :  { %v1067_v38 = vmul.f32 %v1064_v36, %v1058_v35  ;;  %v1059_v39 = vadd.f32 %v4320_v32, %v1049_v37 }
 0x1df   :  { %v1070_v40 = vmul.f32 %v1067_v38, %v1058_v35  ;;  %v1065_v41 = vmul.f32 0.044715, %v1059_v39  ;;  %v1062_v61 = vmul.f32 0.5, %v1059_v39 }
 0x1e0   :  { %v1050_v42 = vld [vmem:[#allocation2 + $0x10] sm:$0x7] }
 0x1e1   :  { %v1073_v43 = vadd.f32 %v1070_v40, %v1058_v35  ;;  %v1068_v44 = vmul.f32 %v1065_v41, %v1059_v39  ;;  %v1060_v45 = vadd.f32 %v4320_v32, %v1050_v42  ;;  %v4322_v41 = vld [vmem:[%s6714_s4] ss:$0 sm:$0xff] }
 0x1e3   :  { %v1076_v46 = vmul.f32 0.7978846, %v1073_v43  ;;  %v1071_v47 = vmul.f32 %v1068_v44, %v1059_v39  ;;  %v1066_v48 = vmul.f32 0.044715, %v1060_v45  ;;  %v1063_v7 = vmul.f32 0.5, %v1060_v45 }
 0x1e5   :  { %5223 = vtanh.f32 %v1076_v46  ;;  %v1074_v49 = vadd.f32 %v1071_v47, %v1059_v39  ;;  %v1069_v50 = vmul.f32 %v1066_v48, %v1060_v45  ;;  %v4321_v39 = vld [vmem:[%s6713_s3] ss:$0 sm:$0xff] }
 0x1e7   :  { %v1077_v51 = vmul.f32 0.7978846, %v1074_v49  ;;  %v1072_v52 = vmul.f32 %v1069_v50, %v1060_v45 }
 0x1e9   :  { %5225 = vtanh.f32 %v1077_v51  ;;  %v1075_v53 = vadd.f32 %v1072_v52, %v1060_v45 }
 0x1eb   :  { %v1078_v54 = vmul.f32 0.7978846, %v1075_v53 }
 0x1ed   :  { %5227 = vtanh.f32 %v1078_v54  ;;  %v4323_v54 = vld [vmem:[%s6715_s6] ss:$0 sm:$0xff] }
 0x1f2   :  { %v5224_v55 = vpop.eup %5223 }
 0x1f3   :  { %v1082_v57 = vadd.f32 1.0, %v5224_v55 }
 0x1f5   :  { %v1085_v58 = vmul.f32 %v1082_v57, %v1061_v56 }
 0x1f6   :  { %v5226_v59 = vpop.eup %5225 }
 0x1f7   :  { %v1088_v60 = vadd.f32 %v1085_v58, %v5486_v2  ;;  %v1083_v62 = vadd.f32 1.0, %v5226_v59 }
 0x1f9   :  { %v1094_v63 = vsel %vm1093_vm10, %v1088_v60, 0.0  ;;  %v1086_v3 = vmul.f32 %v1083_v62, %v1062_v61 }
 0x1fa   :  { %v5228_v4 = vpop.eup %5227  ;;  %1095 = vadd.xlane.f32.xlu0 %v1094_v63 }
 0x1fb   :  { %v1089_v5 = vadd.f32 %v1086_v3, %v5476_v0  ;;  %v1084_v8 = vadd.f32 1.0, %v5228_v4 }
 0x1fd   :  { %v1097_v9 = vsel %vm1093_vm10, %v1089_v5, 0.0  ;;  %v1087_v10 = vmul.f32 %v1084_v8, %v1063_v7 }
 0x1fe   :  { %1098 = vadd.xlane.f32.xlu1 %v1097_v9 }
 0x1ff   :  { %v1090_v11 = vadd.f32 %v1087_v10, %v5481_v1 }
 0x201   :  { %v1101_v2 = vsel %vm1100_vm11, %v1090_v11, 0.0 }
 0x202   :  { %1102 = vadd.xlane.f32.xlu0 %v1101_v2 }
 0x283   :  { %v1096_v12 = vpop.xlane.xlu0 %1095 }
 0x284   :  { %v1105_v13 = vmul.f32 0.03125, %v1096_v12 }
 0x286   :  { %v1108_v14 = vsub.f32 %v1088_v60, %v1105_v13 }
 0x287   :  { %v1099_v15 = vpop.xlane.xlu1 %1098 }
 0x288   :  { %v1106_v16 = vmul.f32 0.03125, %v1099_v15  ;;  %v1111_v17 = vmul.f32 %v1108_v14, %v1108_v14 }
 0x28a   :  { %v1109_v18 = vsub.f32 %v1089_v5, %v1106_v16  ;;  %v1114_v0 = vsel %vm1093_vm10, %v1111_v17, 0.0 }
 0x28b   :  { %1115 = vadd.xlane.f32.xlu0 %v1114_v0  ;;  %v1103_v19 = vpop.xlane.xlu0 %1102 }
 0x28c   :  { %v1107_v20 = vmul.f32 0.03125, %v1103_v19  ;;  %v1112_v21 = vmul.f32 %v1109_v18, %v1109_v18 }
 0x28e   :  { %v1110_v22 = vsub.f32 %v1090_v11, %v1107_v20  ;;  %v1117_v23 = vsel %vm1093_vm10, %v1112_v21, 0.0 }
 0x28f   :  { %1118 = vadd.xlane.f32.xlu1 %v1117_v23 }
 0x290   :  { %v1113_v1 = vmul.f32 %v1110_v22, %v1110_v22 }
 0x292   :  { %v1120_v24 = vsel %vm1100_vm11, %v1113_v1, 0.0 }
 0x293   :  { %1121 = vadd.xlane.f32.xlu0 %v1120_v24 }
 0x314   :  { %v1116_v29 = vpop.xlane.xlu0 %1115 }
 0x315   :  { %v1123_v30 = vmul.f32 0.03125, %v1116_v29 }
 0x317   :  { %v1126_v31 = vadd.f32 1e-05, %v1123_v30 }
 0x318   :  { %v1119_v32 = vpop.xlane.xlu1 %1118 }
 0x319   :  { %5229 = vrsqrt.f32 %v1126_v31  ;;  %v1124_v33 = vmul.f32 0.03125, %v1119_v32 }
 0x31b   :  { %v1127_v34 = vadd.f32 1e-05, %v1124_v33 }
 0x31c   :  { %v1122_v35 = vpop.xlane.xlu0 %1121 }
 0x31d   :  { %5231 = vrsqrt.f32 %v1127_v34  ;;  %v1125_v36 = vmul.f32 0.03125, %v1122_v35 }
 0x31f   :  { %v1128_v37 = vadd.f32 1e-05, %v1125_v36 }
 0x321   :  { %5233 = vrsqrt.f32 %v1128_v37 }
 0x326   :  { %v5230_v38 = vpop.eup %5229 }
 0x327   :  { %v1132_v40 = vmul.f32 %v5230_v38, %v1108_v14 }
 0x329   :  { %v1141_v42 = vmul.f32 %v4321_v39, %v1132_v40 }
 0x32a   :  { %v5232_v43 = vpop.eup %5231 }
 0x32b   :  { %v5759_v44 = vadd.f32 %v4322_v41, %v1141_v42  ;;  %v1133_v45 = vmul.f32 %v5232_v43, %v1109_v18 }
 0x32d   :  { %4820 = vmatmul.mubr.msk.f32.vlgmr.msra.gmra.mxu0 %vm1093_vm10, %v5759_v44  ;;  %v1142_v46 = vmul.f32 %v4321_v39, %v1133_v45 }
 0x32e   :  { %v5234_v47 = vpop.eup %5233  ;;  %4822 = vmatprep.mubr.msk.f32.mxu0 %vm5368_vm2, %v5367_v6 }
 0x32f   :  { %v5765_v48 = vadd.f32 %v4322_v41, %v1142_v46  ;;  %v1134_v49 = vmul.f32 %v5234_v47, %v1110_v22 }
 0x331   :  { %4823 = vmatmul.mubr.msk.f32.gmra.mxu0 %vm1093_vm10, %v5765_v48  ;;  %v1143_v50 = vmul.f32 %v4321_v39, %v1134_v49 }
 0x332   :  { %4825 = vmatprep.mubr.msk.f32.mxu0 %vm5368_vm2, %v5367_v6 }
 0x333   :  { %v5771_v51 = vadd.f32 %v4322_v41, %v1143_v50 }
 0x335   :  { %4826 = vmatmul.mubr.msk.f32.gmra.mxu0 %vm1093_vm10, %v5771_v51 }
 0x336   :  { %4849 = vmatprep.mubr.msk.f32.mxu0 %vm5368_vm2, %v5367_v6 }
 0x3ed   :  { %v1239_v52 = vpop.f32.mrf.mxu0 }
 0x3ee   :  { %v5784_v59 = vadd.f32 %v4323_v54, %v1239_v52 }
 0x3ef   :  { %v4821_v53 = vpop.f32.mrf.mxu0 }
 0x3f0   :  { %v1253_v62 = vmul.f32 0.35355338, %v5784_v59 }
 0x3f1   :  { %v1244_v55 = vpop.f32.mrf.mxu0 }
 0x3f2   :  { %v5780_v56 = vadd.f32 %v4323_v54, %v1244_v55 }
 0x3f3   :  { %v4824_v57 = vpop.f32.mrf.mxu0 }
 0x3f4   :  { %1261 = vrot.lane.b32.xlu0 %v5780_v56, %s5371_s18  ;;  %v1254_v63 = vmul.f32 0.35355338, %v5780_v56 }
 0x3f5   :  { %v1249_v58 = vpop.f32.mrf.mxu0 }
 0x3f6   :  { %v5786_v60 = vadd.f32 %v4323_v54, %v1249_v58 }
 0x3f7   :  { %v4827_v61 = vpop.f32.mrf.mxu0 }
 0x3f8   :  { %1508 = vrot.lane.b32.xlu0 %v5780_v56, %s5372_s1  ;;  %1263 = vrot.lane.b32.xlu1 %v5786_v60, %s5371_s18  ;;  %v1255_v3 = vmul.f32 0.35355338, %v5786_v60 }
 0x3fc   :  { %1500 = vrot.lane.b32.xlu0 %v1253_v62, %s5373_s2  ;;  %1259 = vrot.lane.b32.xlu1 %v5784_v59, %s5371_s18 }
 0x400   :  { %1502 = vrot.lane.b32.xlu0 %v1254_v63, %s5373_s2  ;;  %1510 = vrot.lane.b32.xlu1 %v5786_v60, %s5372_s1 }
 0x404   :  { %1506 = vrot.lane.b32.xlu1 %v5784_v59, %s5372_s1  ;;  %1504 = vrot.lane.b32.xlu0 %v1255_v3, %s5373_s2 }
 0x408   :  { %1763 = vrot.lane.b32.xlu1 %v5786_v60, %s5374_s20  ;;  %1753 = vrot.lane.b32.xlu0 %v1253_v62, %s5369_s25 }
 0x40c   :  { %1761 = vrot.lane.b32.xlu1 %v5780_v56, %s5374_s20  ;;  %1755 = vrot.lane.b32.xlu0 %v1254_v63, %s5369_s25 }
 0x410   :  { %1759 = vrot.lane.b32.xlu1 %v5784_v59, %s5374_s20  ;;  %1757 = vrot.lane.b32.xlu0 %v1255_v3, %s5369_s25 }
 0x414   :  { %2016 = vrot.lane.b32.xlu1 %v5786_v60, %s5375_s21  ;;  %2006 = vrot.lane.b32.xlu0 %v1253_v62, %s5376_s22 }
 0x418   :  { %2014 = vrot.lane.b32.xlu1 %v5780_v56, %s5375_s21  ;;  %2010 = vrot.lane.b32.xlu0 %v1255_v3, %s5376_s22 }
 0x41c   :  { %2012 = vrot.lane.b32.xlu1 %v5784_v59, %s5375_s21  ;;  %1400 = vrot.lane.b32.xlu0 %v5786_v60, %s5377_s23 }
 0x420   :  { %2008 = vrot.lane.b32.xlu1 %v1254_v63, %s5376_s22  ;;  %1396 = vrot.lane.b32.xlu0 %v5784_v59, %s5377_s23 }
 0x424   :  { %1398 = vrot.lane.b32.xlu1 %v5780_v56, %s5377_s23  ;;  %1641 = vrot.lane.b32.xlu0 %v5786_v60, %s6733_s24 }
 0x428   :  { %1639 = vrot.lane.b32.xlu1 %v5780_v56, %s6733_s24  ;;  %1637 = vrot.lane.b32.xlu0 %v5784_v59, %s6733_s24 }
 0x466   :  { %v1262_v4 = vpop.permute.xlu0 %1261 }
 0x46a   :  { %v1509_v5 = vpop.permute.xlu0 %1508  ;;  %v1264_v7 = vpop.permute.xlu1 %1263 }
 0x46b   :  { %4829 = vmatpush3.xpose.msk.msra.mxu1 %vm1265_vm12, %v1264_v7 }
 0x46c   :  { %4830 = vmatprep.subr.mxu1 %v5367_v6 }
 0x46e   :  { %v1501_v8 = vpop.permute.xlu0 %1500  ;;  %v1260_v9 = vpop.permute.xlu1 %1259 }
 0x46f   :  { %4831 = vmatpush3.xpose.msk.msra.mxu1 %vm1265_vm12, %v1262_v4 }
 0x470   :  { %4832 = vmatprep.subr.mxu1 %v5367_v6 }
 0x472   :  { %v1503_v10 = vpop.permute.xlu0 %1502  ;;  %v1511_v11 = vpop.permute.xlu1 %1510 }
 0x473   :  { %4833 = vmatpush3.xpose.msk.msra.mxu1 %vm1265_vm12, %v1260_v9 }
 0x474   :  { %4858 = vmatprep.subr.mxu1 %v5367_v6 }
 0x476   :  { %4835 = vmatmul.mubr.msk.f32.vlgmr.msra.gmra.mxu1 %vm1265_vm12, %v1253_v62  ;;  %v1507_v2 = vpop.permute.xlu1 %1506  ;;  %v1505_v12 = vpop.permute.xlu0 %1504 }
 0x477   :  { %4859 = vmatpush3.xpose.msk.msra.mxu1 %vm1265_vm12, %v1511_v11  ;;  %4837 = vmatprep.mubr.msk.f32.mxu1 %vm5368_vm2, %v5367_v6 }
 0x478   :  { %4860 = vmatprep.subr.mxu1 %v5367_v6 }
 0x47a   :  { %4838 = vmatmul.mubr.msk.f32.gmra.mxu1 %vm1265_vm12, %v1254_v63  ;;  %v1764_v13 = vpop.permute.xlu1 %1763  ;;  %v1754_v14 = vpop.permute.xlu0 %1753 }
 0x47b   :  { %4861 = vmatpush3.xpose.msk.msra.mxu1 %vm1265_vm12, %v1509_v5  ;;  %4840 = vmatprep.mubr.msk.f32.mxu1 %vm5368_vm2, %v5367_v6 }
 0x47c   :  { %4862 = vmatprep.subr.mxu1 %v5367_v6 }
 0x47e   :  { %v1762_v15 = vpop.permute.xlu1 %1761  ;;  %v1756_v16 = vpop.permute.xlu0 %1755  ;;  %4841 = vmatmul.mubr.msk.f32.gmra.mxu1 %vm1265_vm12, %v1255_v3 }
 0x47f   :  { %4863 = vmatpush3.xpose.msk.msra.mxu1 %vm1265_vm12, %v1507_v2  ;;  %4864 = vmatprep.mubr.msk.f32.mxu1 %vm5368_vm2, %v5367_v6 }
 0x480   :  { %4888 = vmatprep.subr.mxu1 %v5367_v6 }
 0x482   :  { %v1760_v17 = vpop.permute.xlu1 %1759  ;;  %v1758_v18 = vpop.permute.xlu0 %1757  ;;  %4865 = vmatmul.mubr.msk.f32.vlgmr.msra.gmra.mxu1 %vm1265_vm12, %v1501_v8 }
 0x483   :  { %4889 = vmatpush3.xpose.msk.msra.mxu1 %vm1265_vm12, %v1764_v13  ;;  %4867 = vmatprep.mubr.msk.f32.mxu1 %vm5368_vm2, %v5367_v6 }
 0x484   :  { %4890 = vmatprep.subr.mxu1 %v5367_v6 }
 0x486   :  { %v2017_v0 = vpop.permute.xlu1 %2016  ;;  %v2007_v19 = vpop.permute.xlu0 %2006  ;;  %4868 = vmatmul.mubr.msk.f32.gmra.mxu1 %vm1265_vm12, %v1503_v10 }
 0x487   :  { %4891 = vmatpush3.xpose.msk.msra.mxu1 %vm1265_vm12, %v1762_v15  ;;  %4870 = vmatprep.mubr.msk.f32.mxu1 %vm5368_vm2, %v5367_v6 }
 0x488   :  { %4892 = vmatprep.subr.mxu1 %v5367_v6 }
 0x48a   :  { %v2015_v20 = vpop.permute.xlu1 %2014  ;;  %v2011_v21 = vpop.permute.xlu0 %2010  ;;  %4871 = vmatmul.mubr.msk.f32.gmra.mxu1 %vm1265_vm12, %v1505_v12 }
 0x48b   :  { %4893 = vmatpush3.xpose.msk.msra.mxu1 %vm1265_vm12, %v1760_v17  ;;  %4894 = vmatprep.mubr.msk.f32.mxu1 %vm5368_vm2, %v5367_v6 }
 0x48c   :  { %4918 = vmatprep.subr.mxu1 %v5367_v6 }
 0x48e   :  { %v2013_v22 = vpop.permute.xlu1 %2012  ;;  %v1401_v23 = vpop.permute.xlu0 %1400  ;;  %4895 = vmatmul.mubr.msk.f32.vlgmr.msra.gmra.mxu1 %vm1265_vm12, %v1754_v14 }
 0x48f   :  { %4844 = vmatpush3.msk.msra.mxu0 %vm1413_vm13, %v1401_v23  ;;  %4919 = vmatpush3.xpose.msk.msra.mxu1 %vm1265_vm12, %v2017_v0 }
 0x490   :  { %4897 = vmatprep.mubr.msk.f32.mxu1 %vm5368_vm2, %v5367_v6  ;;  %4920 = vmatprep.subr.mxu1 %v5367_v6 }
 0x491   :  { %4845 = vmatprep.subr.mxu0 %v5367_v6 }
 0x492   :  { %v2009_v1 = vpop.permute.xlu1 %2008  ;;  %4898 = vmatmul.mubr.msk.f32.gmra.mxu1 %vm1265_vm12, %v1756_v16  ;;  %v1397_v25 = vpop.permute.xlu0 %1396 }
 0x493   :  { %4921 = vmatpush3.xpose.msk.msra.mxu1 %vm1265_vm12, %v2015_v20  ;;  %4900 = vmatprep.mubr.msk.f32.mxu1 %vm5368_vm2, %v5367_v6 }
 0x494   :  { %4922 = vmatprep.subr.mxu1 %v5367_v6 }
 0x496   :  { %v1399_v24 = vpop.permute.xlu1 %1398  ;;  %4901 = vmatmul.mubr.msk.f32.gmra.mxu1 %vm1265_vm12, %v1758_v18  ;;  %v5934_v8 = vpop.permute.xlu0 %1641 }
 0x497   :  { %4846 = vmatpush3.msra.mxu0 %v1399_v24  ;;  %4923 = vmatpush3.xpose.msk.msra.mxu1 %vm1265_vm12, %v2013_v22 }
 0x498   :  { %4847 = vmatprep.subr.mxu0 %v5367_v6  ;;  %4924 = vmatprep.mubr.msk.f32.mxu1 %vm5368_vm2, %v5367_v6 }
 0x499   :  { %4848 = vmatpush3.msra.mxu0 %v1397_v25  ;;  %4948 = vmatprep.subr.mxu1 %v5367_v6 }
 0x49a   :  { %4925 = vmatmul.mubr.msk.f32.vlgmr.msra.gmra.mxu1 %vm1265_vm12, %v2007_v19  ;;  %4873 = vmatprep.subr.mxu0 %v5367_v6  ;;  %v5936_v9 = vpop.permute.xlu1 %1639  ;;  %v5938_v10 = vpop.permute.xlu0 %1637 }
 0x49b   :  { %4927 = vmatprep.mubr.msk.f32.mxu1 %vm5368_vm2, %v5367_v6 }
 0x49e   :  { %4928 = vmatmul.mubr.msk.f32.gmra.mxu1 %vm1265_vm12, %v2009_v1 }
 0x49f   :  { %4930 = vmatprep.mubr.msk.f32.mxu1 %vm5368_vm2, %v5367_v6 }
 0x4a2   :  { %4931 = vmatmul.mubr.msk.f32.gmra.mxu1 %vm1265_vm12, %v2011_v21 }
 0x4a3   :  { %4956 = vmatprep.mubr.msk.f32.mxu1 %vm5368_vm2, %v5367_v6 }
 0x536   :  { %v1347_v26 = vpop.f32.mrf.mxu1 }
 0x537   :  { %v1362_v27 = vsel %vm1361_vm14, %v1347_v26, -inf }
 0x538   :  { %1363 = vmax.xlane.f32.xlu1 %v1362_v27  ;;  %v4836_v28 = vpop.f32.mrf.mxu1 }
 0x53a   :  { %v1352_v29 = vpop.f32.mrf.mxu1 }
 0x53b   :  { %v1365_v30 = vsel %vm1361_vm14, %v1352_v29, -inf }
 0x53c   :  { %v4839_v31 = vpop.f32.mrf.mxu1  ;;  %1366 = vmax.xlane.f32.xlu0 %v1365_v30 }
 0x53e   :  { %v1357_v32 = vpop.f32.mrf.mxu1 }
 0x53f   :  { %v1369_v33 = vsel %vm1368_vm15, %v1357_v32, -inf }
 0x540   :  { %1370 = vmax.xlane.f32.xlu0 %v1369_v33  ;;  %v4842_v34 = vpop.f32.mrf.mxu1 }
 0x542   :  { %v1590_v35 = vpop.f32.mrf.mxu1 }
 0x543   :  { %v1604_v36 = vsel %vm1361_vm14, %v1590_v35, -inf }
 0x544   :  { %1605 = vmax.xlane.f32.xlu1 %v1604_v36  ;;  %v4866_v37 = vpop.f32.mrf.mxu1 }
 0x546   :  { %v1595_v38 = vpop.f32.mrf.mxu1 }
 0x547   :  { %v1607_v39 = vsel %vm1361_vm14, %v1595_v38, -inf }
 0x548   :  { %1608 = vmax.xlane.f32.xlu0 %v1607_v39  ;;  %v4869_v40 = vpop.f32.mrf.mxu1 }
 0x54a   :  { %v1600_v41 = vpop.f32.mrf.mxu1 }
 0x54b   :  { %v1610_v42 = vsel %vm1368_vm15, %v1600_v41, -inf }
 0x54c   :  { %1611 = vmax.xlane.f32.xlu1 %v1610_v42  ;;  %v4872_v43 = vpop.f32.mrf.mxu1 }
 0x54e   :  { %v5904_v45 = vpop.f32.mrf.mxu1 }
 0x54f   :  { %v1857_v46 = vsel %vm1361_vm14, %v5904_v45, -inf }
 0x550   :  { %1858 = vmax.xlane.f32.xlu0 %v1857_v46  ;;  %v4896_v47 = vpop.f32.mrf.mxu1 }
 0x552   :  { %v5908_v49 = vpop.f32.mrf.mxu1 }
 0x553   :  { %v1860_v50 = vsel %vm1361_vm14, %v5908_v49, -inf }
 0x554   :  { %1861 = vmax.xlane.f32.xlu1 %v1860_v50  ;;  %v4899_v52 = vpop.f32.mrf.mxu1 }
 0x556   :  { %v5912_v53 = vpop.f32.mrf.mxu1 }
 0x557   :  { %v1863_v54 = vsel %vm1368_vm15, %v5912_v53, -inf }
 0x558   :  { %1864 = vmax.xlane.f32.xlu0 %v1863_v54  ;;  %v4902_v55 = vpop.f32.mrf.mxu1 }
 0x55a   :  { %v5916_v57 = vpop.f32.mrf.mxu1 }
 0x55b   :  { %v2110_v58 = vsel %vm1361_vm14, %v5916_v57, -inf }
 0x55c   :  { %2111 = vmax.xlane.f32.xlu1 %v2110_v58  ;;  %v4926_v61 = vpop.f32.mrf.mxu1 }
 0x55e   :  { %v5920_v62 = vpop.f32.mrf.mxu1 }
 0x55f   :  { %v2113_v63 = vsel %vm1361_vm14, %v5920_v62, -inf }
 0x560   :  { %2114 = vmax.xlane.f32.xlu0 %v2113_v63  ;;  %v4929_v3 = vpop.f32.mrf.mxu1 }
 0x562   :  { %v5924_v4 = vpop.f32.mrf.mxu1 }
 0x563   :  { %v2116_v7 = vsel %vm1368_vm15, %v5924_v4, -inf }
 0x564   :  { %v4932_v5 = vpop.f32.mrf.mxu1 }
 0x56d   :  { %1892 = vrot.lane.b32.xlu1 %v5780_v56, %s6731_s26 }
 0x576   :  { %1894 = vrot.lane.b32.xlu0 %v5786_v60, %s6731_s26 }
 0x591   :  { %2117 = vmax.xlane.f32.xlu1 %v2116_v7 }
 0x5a2   :  { %1890 = vrot.lane.b32.xlu1 %v5784_v59, %s6731_s26  ;;  %s6744_s26 = smov 24  }
 0x5c1   :  { %v1364_v11 = vpop.xlane.xlu1 %1363 }
 0x5c2   :  { %v1372_v2 = vsub.f32 %v1347_v26, %v1364_v11 }
 0x5c4   :  { %v1375_v12 = vmul.f32 1.442695, %v1372_v2 }
 0x5c5   :  { %v1367_v13 = vpop.xlane.xlu0 %1366 }
 0x5c6   :  { %5235 = vpow2.f32 %v1375_v12  ;;  %v1373_v14 = vsub.f32 %v1352_v29, %v1367_v13 }
 0x5c8   :  { %v1377_v15 = vmul.f32 1.442695, %v1373_v14 }
 0x5c9   :  { %v1371_v16 = vpop.xlane.xlu0 %1370 }
 0x5ca   :  { %5237 = vpow2.f32 %v1377_v15  ;;  %v1374_v17 = vsub.f32 %v1357_v32, %v1371_v16 }
 0x5cc   :  { %v1379_v18 = vmul.f32 1.442695, %v1374_v17 }
 0x5cd   :  { %v1606_v0 = vpop.xlane.xlu1 %1605 }
 0x5ce   :  { %5239 = vpow2.f32 %v1379_v18  ;;  %v1613_v19 = vsub.f32 %v1590_v35, %v1606_v0 }
 0x5d0   :  { %v1616_v20 = vmul.f32 1.442695, %v1613_v19 }
 0x5d1   :  { %v1609_v21 = vpop.xlane.xlu0 %1608 }
 0x5d2   :  { %5241 = vpow2.f32 %v1616_v20  ;;  %v1614_v22 = vsub.f32 %v1595_v38, %v1609_v21 }
 0x5d3   :  { %v5940_v23 = vpop.eup %5235 }
 0x5d4   :  { %v1618_v1 = vmul.f32 1.442695, %v1614_v22  ;;  %v1381_v24 = vsel %vm1361_vm14, %v5940_v23, 0.0 }
 0x5d5   :  { %v1612_v25 = vpop.xlane.xlu1 %1611  ;;  %1382 = vadd.xlane.f32.xlu0 %v1381_v24 }
 0x5d6   :  { %5243 = vpow2.f32 %v1618_v1  ;;  %v1615_v26 = vsub.f32 %v1600_v41, %v1612_v25 }
 0x5d7   :  { %v5944_v27 = vpop.eup %5237 }
 0x5d8   :  { %v1620_v28 = vmul.f32 1.442695, %v1615_v26  ;;  %v1384_v29 = vsel %vm1361_vm14, %v5944_v27, 0.0 }
 0x5d9   :  { %v1859_v30 = vpop.xlane.xlu0 %1858  ;;  %1385 = vadd.xlane.f32.xlu1 %v1384_v29 }
 0x5da   :  { %5245 = vpow2.f32 %v1620_v28  ;;  %v1866_v31 = vsub.f32 %v5904_v45, %v1859_v30 }
 0x5db   :  { %v5949_v32 = vpop.eup %5239 }
 0x5dc   :  { %v1869_v33 = vmul.f32 1.442695, %v1866_v31  ;;  %v1387_v34 = vsel %vm1368_vm15, %v5949_v32, 0.0 }
 0x5dd   :  { %v1862_v35 = vpop.xlane.xlu1 %1861  ;;  %1388 = vadd.xlane.f32.xlu0 %v1387_v34 }
 0x5de   :  { %5247 = vpow2.f32 %v1869_v33  ;;  %v1867_v36 = vsub.f32 %v5908_v49, %v1862_v35 }
 0x5df   :  { %v5954_v37 = vpop.eup %5241 }
 0x5e0   :  { %v1871_v38 = vmul.f32 1.442695, %v1867_v36  ;;  %v1622_v39 = vsel %vm1361_vm14, %v5954_v37, 0.0 }
 0x5e1   :  { %1623 = vadd.xlane.f32.xlu1 %v1622_v39  ;;  %v1865_v42 = vpop.xlane.xlu0 %1864 }
 0x5e2   :  { %5249 = vpow2.f32 %v1871_v38  ;;  %v1868_v7 = vsub.f32 %v5912_v53, %v1865_v42 }
 0x5e3   :  { %v5958_v40 = vpop.eup %5243 }
 0x5e4   :  { %v1625_v41 = vsel %vm1361_vm14, %v5958_v40, 0.0  ;;  %v1873_v11 = vmul.f32 1.442695, %v1868_v7 }
 0x5e5   :  { %v2112_v43 = vpop.xlane.xlu1 %2111  ;;  %1626 = vadd.xlane.f32.xlu0 %v1625_v41 }
 0x5e6   :  { %v2119_v45 = vsub.f32 %v5916_v57, %v2112_v43 }
 0x5e7   :  { %v5963_v46 = vpop.eup %5245 }
 0x5e8   :  { %v2122_v47 = vmul.f32 1.442695, %v2119_v45  ;;  %v1628_v49 = vsel %vm1368_vm15, %v5963_v46, 0.0 }
 0x5e9   :  { %v2115_v50 = vpop.xlane.xlu0 %2114  ;;  %1629 = vadd.xlane.f32.xlu1 %v1628_v49  ;;  %v1893_v12 = vpop.permute.xlu1 %1892 }
 0x5ea   :  { %5251 = vpow2.f32 %v2122_v47  ;;  %v2120_v52 = vsub.f32 %v5920_v62, %v2115_v50 }
 0x5eb   :  { %v5968_v54 = vpop.eup %5247 }
 0x5ec   :  { %v2124_v55 = vmul.f32 1.442695, %v2120_v52  ;;  %v1875_v58 = vsel %vm1361_vm14, %v5968_v54, 0.0 }
 0x5ed   :  { %1876 = vadd.xlane.f32.xlu1 %v1875_v58 }
 0x5ee   :  { %5253 = vpow2.f32 %v2124_v55 }
 0x5ef   :  { %v5972_v57 = vpop.eup %5249  ;;  %5255 = vpow2.f32 %v1873_v11 }
 0x5f0   :  { %v1878_v61 = vsel %vm1361_vm14, %v5972_v57, 0.0 }
 0x5f1   :  { %1879 = vadd.xlane.f32.xlu1 %v1878_v61 }
 0x5f7   :  { %v5976_v63 = vpop.eup %5251 }
 0x5f8   :  { %v2128_v3 = vsel %vm1361_vm14, %v5976_v63, 0.0 }
 0x5f9   :  { %2129 = vadd.xlane.f32.xlu1 %v2128_v3 }
 0x5fb   :  { %v5980_v62 = vpop.eup %5253  ;;  %2147 = vrot.lane.b32.xlu0 %v5786_v60, %s6729_s27 }
 0x5fc   :  { %v2131_v5 = vsel %vm1361_vm14, %v5980_v62, 0.0  ;;  %v5989_v2 = vpop.eup %5255 }
 0x5fd   :  { %2132 = vadd.xlane.f32.xlu1 %v2131_v5  ;;  %v1881_v13 = vsel %vm1368_vm15, %v5989_v2, 0.0 }
 0x60e   :  { %2145 = vrot.lane.b32.xlu1 %v5780_v56, %s6729_s27  ;;  %v1895_v56 = vpop.permute.xlu0 %1894 }
 0x61a   :  { %1882 = vadd.xlane.f32.xlu0 %v1881_v13  ;;  %v2118_v14 = vpop.xlane.xlu1 %2117 }
 0x61b   :  { %v2121_v60 = vsub.f32 %v5924_v4, %v2118_v14 }
 0x61d   :  { %v2126_v15 = vmul.f32 1.442695, %v2121_v60 }
 0x61e   :  { %v1891_v17 = vpop.permute.xlu1 %1890 }
 0x61f   :  { %5257 = vpow2.f32 %v2126_v15  ;;  %v2265_v15 = vld [vmem:[%s6716_s7 + $0x18] sm:$0xff] }
 0x620   :  { %4949 = vmatpush3.msra.mxu1 %v2265_v15 }
 0x621   :  { %4950 = vmatprep.subr.mxu1 %v5367_v6 }
 0x62c   :  { %v5994_v16 = vpop.eup %5257 }
 0x62d   :  { %v2134_v53 = vsel %vm1368_vm15, %v5994_v16, 0.0 }
 0x62e   :  { %2135 = vadd.xlane.f32.xlu0 %v2134_v53 }
 0x644   :  { %2143 = vrot.lane.b32.xlu0 %v5784_v59, %s6729_s27 }
 0x65e   :  { %v1383_v18 = vpop.xlane.xlu0 %1382 }
 0x65f   :  { %5259 = vrcp.f32 %v1383_v18  ;;  %v2262_v18 = vld [vmem:[%s6716_s7] sm:$0xff] }
 0x662   :  { %v1386_v0 = vpop.xlane.xlu1 %1385 }
 0x663   :  { %5261 = vrcp.f32 %v1386_v0 }
 0x666   :  { %v1389_v19 = vpop.xlane.xlu0 %1388 }
 0x667   :  { %5263 = vrcp.f32 %v1389_v19 }
 0x66a   :  { %v1624_v4 = vpop.xlane.xlu1 %1623 }
 0x66b   :  { %5265 = vrcp.f32 %v1624_v4 }
 0x66c   :  { %v5260_v20 = vpop.eup %5259 }
 0x66d   :  { %v1393_v21 = vmul.f32 %v5260_v20, %v5940_v23 }
 0x66e   :  { %v1627_v22 = vpop.xlane.xlu0 %1626 }
 0x66f   :  { %5267 = vrcp.f32 %v1627_v22  ;;  %4850 = vmatmul.mubr.msk.f32.vlgmr.msra.gmra.mxu0 %vm1361_vm14, %v1393_v21 }
 0x670   :  { %v5262_v1 = vpop.eup %5261  ;;  %4874 = vmatpush3.msk.msra.mxu0 %vm1413_vm13, %v5934_v8  ;;  %4852 = vmatprep.mubr.msk.f32.mxu0 %vm5368_vm2, %v5367_v6 }
 0x671   :  { %4875 = vmatprep.subr.mxu0 %v5367_v6  ;;  %v1394_v59 = vmul.f32 %v5262_v1, %v5944_v27 }
 0x672   :  { %4876 = vmatpush3.msra.mxu0 %v5936_v9  ;;  %v1630_v24 = vpop.xlane.xlu1 %1629  ;;  %v2148_v35 = vpop.permute.xlu0 %2147 }
 0x673   :  { %4877 = vmatprep.subr.mxu0 %v5367_v6  ;;  %5269 = vrcp.f32 %v1630_v24  ;;  %4853 = vmatmul.mubr.msk.f32.gmra.mxu0 %vm1361_vm14, %v1394_v59 }
 0x674   :  { %v5264_v23 = vpop.eup %5263  ;;  %4878 = vmatpush3.msra.mxu0 %v5938_v10  ;;  %4855 = vmatprep.mubr.msk.f32.mxu0 %vm5368_vm2, %v5367_v6 }
 0x675   :  { %v1395_v8 = vmul.f32 %v5264_v23, %v5949_v32  ;;  %4903 = vmatprep.subr.mxu0 %v5367_v6 }
 0x676   :  { %v1877_v25 = vpop.xlane.xlu1 %1876 }
 0x677   :  { %5271 = vrcp.f32 %v1877_v25  ;;  %4856 = vmatmul.mubr.msk.f32.gmra.mxu0 %vm1361_vm14, %v1395_v8 }
 0x678   :  { %v5266_v9 = vpop.eup %5265  ;;  %4879 = vmatprep.mubr.msk.f32.mxu0 %vm5368_vm2, %v5367_v6 }
 0x679   :  { %v1634_v26 = vmul.f32 %v5266_v9, %v5954_v37 }
 0x67a   :  { %v1880_v27 = vpop.xlane.xlu1 %1879 }
 0x67b   :  { %5273 = vrcp.f32 %v1880_v27  ;;  %4880 = vmatmul.mubr.msk.f32.vlgmr.msra.gmra.mxu0 %vm1361_vm14, %v1634_v26 }
 0x67c   :  { %v5268_v10 = vpop.eup %5267  ;;  %4904 = vmatpush3.msk.msra.mxu0 %vm1413_vm13, %v1895_v56  ;;  %4882 = vmatprep.mubr.msk.f32.mxu0 %vm5368_vm2, %v5367_v6  ;;  %v2263_v56 = vld [vmem:[%s6716_s7 + $0x8] sm:$0xff] }
 0x67d   :  { %4905 = vmatprep.subr.mxu0 %v5367_v6  ;;  %v1635_v28 = vmul.f32 %v5268_v10, %v5958_v40 }
 0x67e   :  { %4906 = vmatpush3.msra.mxu0 %v1893_v12 }
 0x67f   :  { %4907 = vmatprep.subr.mxu0 %v5367_v6  ;;  %4883 = vmatmul.mubr.msk.f32.gmra.mxu0 %vm1361_vm14, %v1635_v28 }
 0x680   :  { %v5270_v29 = vpop.eup %5269  ;;  %4908 = vmatpush3.msra.mxu0 %v1891_v17  ;;  %4885 = vmatprep.mubr.msk.f32.mxu0 %vm5368_vm2, %v5367_v6 }
 0x681   :  { %v1636_v30 = vmul.f32 %v5270_v29, %v5963_v46  ;;  %4933 = vmatprep.subr.mxu0 %v5367_v6 }
 0x682   :  { %v2130_v31 = vpop.xlane.xlu1 %2129 }
 0x683   :  { %4886 = vmatmul.mubr.msk.f32.gmra.mxu0 %vm1361_vm14, %v1636_v30  ;;  %v4367_v30 = vld [vmem:[%s6717_s8] ss:$0 sm:$0xff] }
 0x684   :  { %v5272_v32 = vpop.eup %5271  ;;  %4909 = vmatprep.mubr.msk.f32.mxu0 %vm5368_vm2, %v5367_v6 }
 0x685   :  { %v1887_v33 = vmul.f32 %v5272_v32, %v5968_v54 }
 0x686   :  { %v2133_v34 = vpop.xlane.xlu1 %2132 }
 0x687   :  { %4910 = vmatmul.mubr.msk.f32.vlgmr.msra.gmra.mxu0 %vm1361_vm14, %v1887_v33 }
 0x688   :  { %v5274_v36 = vpop.eup %5273  ;;  %4934 = vmatpush3.msk.msra.mxu0 %vm1413_vm13, %v2148_v35  ;;  %4912 = vmatprep.mubr.msk.f32.mxu0 %vm5368_vm2, %v5367_v6 }
 0x689   :  { %4935 = vmatprep.subr.mxu0 %v5367_v6  ;;  %v1888_v37 = vmul.f32 %v5274_v36, %v5972_v57 }
 0x68a   :  { %v2146_v38 = vpop.permute.xlu1 %2145 }
 0x68b   :  { %4913 = vmatmul.mubr.msk.f32.gmra.mxu0 %vm1361_vm14, %v1888_v37 }
 0x68c   :  { %4936 = vmatpush3.msra.mxu0 %v2146_v38  ;;  %4915 = vmatprep.mubr.msk.f32.mxu0 %vm5368_vm2, %v5367_v6 }
 0x68d   :  { %4937 = vmatprep.subr.mxu0 %v5367_v6 }
 0x6a3   :  { %v1883_v39 = vpop.xlane.xlu0 %1882 }
 0x6a4   :  { %5275 = vrcp.f32 %v1883_v39 }
 0x6a5   :  { %5277 = vrcp.f32 %v2130_v31 }
 0x6a6   :  { %5279 = vrcp.f32 %v2133_v34 }
 0x6b1   :  { %v5276_v40 = vpop.eup %5275 }
 0x6b2   :  { %v1889_v41 = vmul.f32 %v5276_v40, %v5989_v2  ;;  %v5278_v43 = vpop.eup %5277 }
 0x6b3   :  { %v2140_v45 = vmul.f32 %v5278_v43, %v5976_v63  ;;  %v5280_v47 = vpop.eup %5279 }
 0x6b4   :  { %4916 = vmatmul.mubr.msk.f32.gmra.mxu0 %vm1361_vm14, %v1889_v41  ;;  %v2141_v49 = vmul.f32 %v5280_v47, %v5980_v62 }
 0x6b5   :  { %4939 = vmatprep.mubr.msk.f32.mxu0 %vm5368_vm2, %v5367_v6 }
 0x6b7   :  { %v2136_v42 = vpop.xlane.xlu0 %2135 }
 0x6b8   :  { %5281 = vrcp.f32 %v2136_v42 }
 0x6bb   :  { %v2144_v46 = vpop.permute.xlu0 %2143 }
 0x6bc   :  { %4938 = vmatpush3.msra.mxu0 %v2144_v46 }
 0x6bd   :  { %4940 = vmatmul.mubr.msk.f32.vlgmr.msra.gmra.mxu0 %vm1361_vm14, %v2140_v45  ;;  %4965 = vmatprep.subr.mxu0 %v5367_v6 }
 0x6be   :  { %4942 = vmatprep.mubr.msk.f32.mxu0 %vm5368_vm2, %v5367_v6 }
 0x6c1   :  { %4943 = vmatmul.mubr.msk.f32.gmra.mxu0 %vm1361_vm14, %v2141_v49 }
 0x6c2   :  { %4945 = vmatprep.mubr.msk.f32.mxu0 %vm5368_vm2, %v5367_v6 }
 0x6c5   :  { %v5282_v50 = vpop.eup %5281 }
 0x6c6   :  { %v2142_v52 = vmul.f32 %v5282_v50, %v5994_v16  ;;  %v2264_v16 = vld [vmem:[%s6716_s7 + $0x10] sm:$0xff] }
 0x6c7   :  { %4951 = vmatpush3.msra.mxu1 %v2264_v16 }
 0x6c8   :  { %4946 = vmatmul.mubr.msk.f32.gmra.mxu0 %vm1361_vm14, %v2142_v52  ;;  %4952 = vmatprep.subr.mxu1 %v5367_v6 }
 0x6c9   :  { %4973 = vmatprep.mubr.msk.f32.mxu0 %vm5368_vm2, %v5367_v6  ;;  %4953 = vmatpush3.msra.mxu1 %v2263_v56 }
 0x6ca   :  { %4954 = vmatprep.subr.mxu1 %v5367_v6 }
 0x6cb   :  { %4955 = vmatpush3.msra.mxu1 %v2262_v18 }
 0x6cc   :  { %4982 = vmatprep.subr.mxu1 %v5367_v6 }
 0x72f   :  { %v1482_v54 = vpop.f32.mrf.mxu0 }
 0x730   :  { %1496 = vst.msk [vmem:[#allocation2] sm:$0xff] %vm1265_vm12, %v1482_v54 }
 0x731   :  { %v4851_v55 = vpop.f32.mrf.mxu0 }
 0x733   :  { %v1487_v58 = vpop.f32.mrf.mxu0 }
 0x734   :  { %1497 = vst.msk [vmem:[#allocation2 + $0x8] sm:$0xff] %vm1265_vm12, %v1487_v58 }
 0x735   :  { %v4854_v57 = vpop.f32.mrf.mxu0 }
 0x737   :  { %v1492_v61 = vpop.f32.mrf.mxu0 }
 0x738   :  { %1499 = vst.msk [vmem:[#allocation2 + $0x10] sm:$0x7] %vm1498_vm0, %v1492_v61 }
 0x739   :  { %v4857_v63 = vpop.f32.mrf.mxu0 }
 0x73b   :  { %v1722_v3 = vpop.f32.mrf.mxu0 }
 0x73c   :  { %1739 = vrot.lane.b32.xlu1 %v1722_v3, %s5381_s28 }
 0x73d   :  { %v4881_v62 = vpop.f32.mrf.mxu0 }
 0x73f   :  { %v1727_v5 = vpop.f32.mrf.mxu0 }
 0x740   :  { %1741 = vrot.lane.b32.xlu0 %v1727_v5, %s5381_s28  ;;  %v2427_v5 = vld [vmem:[%s6718_s11 + $0x18] sm:$0xff] }
 0x741   :  { %v4884_v7 = vpop.f32.mrf.mxu0  ;;  %4966 = vmatpush3.msra.mxu0 %v2427_v5 }
 0x742   :  { %4967 = vmatprep.subr.mxu0 %v5367_v6  ;;  %v2426_v7 = vld [vmem:[%s6718_s11 + $0x10] sm:$0xff] }
 0x743   :  { %v1732_v11 = vpop.f32.mrf.mxu0  ;;  %4968 = vmatpush3.msra.mxu0 %v2426_v7 }
 0x744   :  { %4969 = vmatprep.subr.mxu0 %v5367_v6 }
 0x745   :  { %v4887_v2 = vpop.f32.mrf.mxu0 }
 0x746   :  { %v2424_v2 = vld [vmem:[%s6718_s11] sm:$0xff] }
 0x747   :  { %v1975_v12 = vpop.f32.mrf.mxu0 }
 0x748   :  { %1992 = vrot.lane.b32.xlu0 %v1975_v12, %s5370_s19 }
 0x749   :  { %v4911_v13 = vpop.f32.mrf.mxu0 }
 0x74b   :  { %v1980_v14 = vpop.f32.mrf.mxu0 }
 0x74c   :  { %1994 = vrot.lane.b32.xlu1 %v1980_v14, %s5370_s19 }
 0x74d   :  { %v4914_v60 = vpop.f32.mrf.mxu0 }
 0x774   :  { %v1985_v53 = vpop.f32.mrf.mxu0 }
 0x776   :  { %v4917_v17 = vpop.f32.mrf.mxu0 }
 0x77d   :  { %v2228_v0 = vpop.f32.mrf.mxu0 }
 0x77e   :  { %2245 = vrot.lane.b32.xlu1 %v2228_v0, %s6735_s29  ;;  %v4371_v0 = vld [vmem:[%s6719_s9] ss:$0 sm:$0xff] }
 0x77f   :  { %v4941_v19 = vpop.f32.mrf.mxu0 }
 0x781   :  { %v2233_v4 = vpop.f32.mrf.mxu0 }
 0x782   :  { %1743 = vrot.lane.b32.xlu1 %v1732_v11, %s5381_s28  ;;  %2247 = vrot.lane.b32.xlu0 %v2233_v4, %s6735_s29  ;;  %v2425_v11 = vld [vmem:[%s6718_s11 + $0x8] sm:$0xff]  ;;  %v4372_v4 = vld [vmem:[%s6720_s10] ss:$0 sm:$0xff] }
 0x783   :  { %v4944_v20 = vpop.f32.mrf.mxu0  ;;  %4970 = vmatpush3.msra.mxu0 %v2425_v11 }
 0x784   :  { %4971 = vmatprep.subr.mxu0 %v5367_v6 }
 0x785   :  { %4972 = vmatpush3.msra.mxu0 %v2424_v2 }
 0x786   :  { %1996 = vrot.lane.b32.xlu0 %v1985_v53, %s5370_s19  ;;  %5007 = vmatprep.subr.mxu0 %v5367_v6 }
 0x788   :  { %v2238_v21 = vpop.f32.mrf.mxu0 }
 0x789   :  { %2249 = vrot.lane.b32.xlu1 %v2238_v21, %s6735_s29 }
 0x78a   :  { %v4947_v22 = vpop.f32.mrf.mxu0 }
 0x7ae   :  { %v1740_v1 = vpop.permute.xlu1 %1739 }
 0x7af   :  { %1749 = vst.msk [vmem:[#allocation2] sm:$0xff] %vm1748_vm1, %v1740_v1 }
 0x7b2   :  { %v1742_v59 = vpop.permute.xlu0 %1741 }
 0x7b3   :  { %1750 = vst.msk [vmem:[#allocation2 + $0x8] sm:$0xff] %vm1748_vm1, %v1742_v59 }
 0x7ba   :  { %v1993_v24 = vpop.permute.xlu0 %1992 }
 0x7bb   :  { %2002 = vst.msk [vmem:[#allocation2] sm:$0xff] %vm2001_vm3, %v1993_v24 }
 0x7be   :  { %v1995_v23 = vpop.permute.xlu1 %1994 }
 0x7bf   :  { %2003 = vst.msk [vmem:[#allocation2 + $0x8] sm:$0xff] %vm2001_vm3, %v1995_v23 }
 0x7f0   :  { %v2246_v8 = vpop.permute.xlu1 %2245 }
 0x7f1   :  { %2255 = vst.msk [vmem:[#allocation2] sm:$0xff] %vm2254_vm4, %v2246_v8 }
 0x7f4   :  { %v1744_v25 = vpop.permute.xlu1 %1743  ;;  %v2248_v9 = vpop.permute.xlu0 %2247 }
 0x7f5   :  { %1752 = vst.msk [vmem:[#allocation2 + $0x10] sm:$0x7] %vm1751_vm5, %v1744_v25 }
 0x7f6   :  { %2256 = vst.msk [vmem:[#allocation2 + $0x8] sm:$0xff] %vm2254_vm4, %v2248_v9 }
 0x7f8   :  { %v1997_v26 = vpop.permute.xlu0 %1996  ;;  %v2259_v27 = vld [vmem:[#allocation2] sm:$0xff] }
 0x7f9   :  { %2005 = vst.msk [vmem:[#allocation2 + $0x10] sm:$0x7] %vm2004_vm6, %v1997_v26  ;;  %4957 = vmatmul.mubr.msk.f32.vlgmr.msra.gmra.mxu1 %vm1093_vm10, %v2259_v27  ;;  %v2558_v26 = vld [vmem:[%s6721_s13 + $0x38] sm:$0xff]  ;;  %v2557_v27 = vld [vmem:[%s6721_s13 + $0x30] sm:$0xff] }
 0x7fa   :  { %4959 = vmatprep.mubr.msk.f32.mxu1 %vm5368_vm2, %v5367_v6  ;;  %4983 = vmatpush3.msra.mxu1 %v2558_v26 }
 0x7fb   :  { %v2250_v10 = vpop.permute.xlu1 %2249  ;;  %4984 = vmatprep.subr.mxu1 %v5367_v6 }
 0x7fc   :  { %2258 = vst.msk [vmem:[#allocation2 + $0x10] sm:$0x7] %vm2257_vm7, %v2250_v10  ;;  %4985 = vmatpush3.msra.mxu1 %v2557_v27  ;;  %v2556_v10 = vld [vmem:[%s6721_s13 + $0x28] sm:$0xff] }
 0x7fd   :  { %v2260_v28 = vld [vmem:[#allocation2 + $0x8] sm:$0xff]  ;;  %4986 = vmatprep.subr.mxu1 %v5367_v6 }
 0x7fe   :  { %4960 = vmatmul.mubr.msk.f32.gmra.mxu1 %vm1093_vm10, %v2260_v28  ;;  %v2555_v28 = vld [vmem:[%s6721_s13 + $0x20] sm:$0xff] }
 0x7ff   :  { %4962 = vmatprep.mubr.msk.f32.mxu1 %vm5368_vm2, %v5367_v6  ;;  %4987 = vmatpush3.msra.mxu1 %v2556_v10 }
 0x800   :  { %4988 = vmatprep.subr.mxu1 %v5367_v6 }
 0x801   :  { %4989 = vmatpush3.msra.mxu1 %v2555_v28 }
 0x802   :  { %4990 = vmatprep.subr.mxu1 %v5367_v6 }
 0x803   :  { %v2261_v29 = vld [vmem:[#allocation2 + $0x10] sm:$0x7] }
 0x804   :  { %4963 = vmatmul.mubr.msk.f32.gmra.mxu1 %vm1093_vm10, %v2261_v29  ;;  %v2554_v29 = vld [vmem:[%s6721_s13 + $0x18] sm:$0xff] }
 0x805   :  { %4998 = vmatprep.mubr.msk.f32.mxu1 %vm5368_vm2, %v5367_v6  ;;  %4991 = vmatpush3.msra.mxu1 %v2554_v29 }
 0x806   :  { %4992 = vmatprep.subr.mxu1 %v5367_v6 }
 0x8b9   :  { %v2348_v31 = vpop.f32.mrf.mxu1 }
 0x8ba   :  { %v2349_v32 = vadd.f32 %v4367_v30, %v2348_v31  ;;  %v2552_v31 = vld [vmem:[%s6721_s13 + $0x8] sm:$0xff] }
 0x8bb   :  { %v4958_v33 = vpop.f32.mrf.mxu1 }
 0x8bc   :  { %v2362_v34 = vadd.f32 %v2349_v32, %v5759_v44  ;;  %v2551_v32 = vld [vmem:[%s6721_s13] sm:$0xff] }
 0x8bd   :  { %v4373_v33 = vld [vmem:[%s6722_s12] ss:$0 sm:$0xff] }
 0x8be   :  { %v2353_v35 = vpop.f32.mrf.mxu1  ;;  %v2367_v37 = vsel %vm1093_vm10, %v2362_v34, 0.0 }
 0x8bf   :  { %v2354_v36 = vadd.f32 %v4367_v30, %v2353_v35  ;;  %2368 = vadd.xlane.f32.xlu0 %v2367_v37 }
 0x8c0   :  { %v4961_v38 = vpop.f32.mrf.mxu1 }
 0x8c1   :  { %v2363_v39 = vadd.f32 %v2354_v36, %v5765_v48 }
 0x8c3   :  { %v2370_v40 = vsel %vm1093_vm10, %v2363_v39, 0.0 }
 0x8c4   :  { %2371 = vadd.xlane.f32.xlu1 %v2370_v40  ;;  %v2358_v41 = vpop.f32.mrf.mxu1 }
 0x8c5   :  { %v2359_v42 = vadd.f32 %v4367_v30, %v2358_v41  ;;  %v2553_v30 = vld [vmem:[%s6721_s13 + $0x10] sm:$0xff] }
 0x8c6   :  { %v4964_v43 = vpop.f32.mrf.mxu1  ;;  %4993 = vmatpush3.msra.mxu1 %v2553_v30 }
 0x8c7   :  { %v2364_v45 = vadd.f32 %v2359_v42, %v5771_v51  ;;  %4994 = vmatprep.subr.mxu1 %v5367_v6 }
 0x8c8   :  { %4995 = vmatpush3.msra.mxu1 %v2552_v31 }
 0x8c9   :  { %v2373_v46 = vsel %vm1100_vm11, %v2364_v45, 0.0  ;;  %4996 = vmatprep.subr.mxu1 %v5367_v6 }
 0x8ca   :  { %2374 = vadd.xlane.f32.xlu0 %v2373_v46  ;;  %4997 = vmatpush3.msra.mxu1 %v2551_v32 }
 0x8cb   :  { %5024 = vmatprep.subr.mxu1 %v5367_v6 }
 0x948   :  { %v2369_v44 = vpop.xlane.xlu0 %2368 }
 0x949   :  { %v2376_v47 = vmul.f32 0.03125, %v2369_v44 }
 0x94b   :  { %v2379_v49 = vsub.f32 %v2362_v34, %v2376_v47 }
 0x94d   :  { %v2372_v50 = vpop.xlane.xlu1 %2371  ;;  %v2382_v54 = vmul.f32 %v2379_v49, %v2379_v49 }
 0x94e   :  { %v2377_v52 = vmul.f32 0.03125, %v2372_v50 }
 0x94f   :  { %v2385_v48 = vsel %vm1093_vm10, %v2382_v54, 0.0 }
 0x950   :  { %v2380_v55 = vsub.f32 %v2363_v39, %v2377_v52  ;;  %2386 = vadd.xlane.f32.xlu0 %v2385_v48 }
 0x952   :  { %v2383_v58 = vmul.f32 %v2380_v55, %v2380_v55 }
 0x953   :  { %v2375_v57 = vpop.xlane.xlu0 %2374 }
 0x954   :  { %v2388_v61 = vsel %vm1093_vm10, %v2383_v58, 0.0  ;;  %v2378_v63 = vmul.f32 0.03125, %v2375_v57 }
 0x955   :  { %2389 = vadd.xlane.f32.xlu1 %v2388_v61 }
 0x956   :  { %v2381_v51 = vsub.f32 %v2364_v45, %v2378_v63 }
 0x958   :  { %v2384_v3 = vmul.f32 %v2381_v51, %v2381_v51 }
 0x95a   :  { %v2391_v62 = vsel %vm1100_vm11, %v2384_v3, 0.0 }
 0x95b   :  { %2392 = vadd.xlane.f32.xlu0 %v2391_v62 }
 0x9d9   :  { %v2387_v12 = vpop.xlane.xlu0 %2386 }
 0x9da   :  { %v2394_v13 = vmul.f32 0.03125, %v2387_v12 }
 0x9dc   :  { %v2397_v14 = vadd.f32 1e-05, %v2394_v13 }
 0x9de   :  { %v2390_v60 = vpop.xlane.xlu1 %2389  ;;  %5283 = vrsqrt.f32 %v2397_v14 }
 0x9df   :  { %v2395_v15 = vmul.f32 0.03125, %v2390_v60 }
 0x9e1   :  { %v2398_v16 = vadd.f32 1e-05, %v2395_v15 }
 0x9e3   :  { %5285 = vrsqrt.f32 %v2398_v16  ;;  %v4377_v16 = vld [vmem:[%s6723_s14] ss:$0 sm:$0xff] }
 0x9e4   :  { %v2393_v53 = vpop.xlane.xlu0 %2392 }
 0x9e5   :  { %v2396_v56 = vmul.f32 0.03125, %v2393_v53 }
 0x9e7   :  { %v2399_v17 = vadd.f32 1e-05, %v2396_v56 }
 0x9e9   :  { %5287 = vrsqrt.f32 %v2399_v17 }
 0x9eb   :  { %v5284_v18 = vpop.eup %5283 }
 0x9ec   :  { %v2403_v19 = vmul.f32 %v5284_v18, %v2379_v49 }
 0x9ee   :  { %v2412_v20 = vmul.f32 %v4371_v0, %v2403_v19 }
 0x9f0   :  { %v5286_v21 = vpop.eup %5285  ;;  %v6143_v22 = vadd.f32 %v4372_v4, %v2412_v20 }
 0x9f1   :  { %v2404_v1 = vmul.f32 %v5286_v21, %v2380_v55 }
 0x9f2   :  { %4974 = vmatmul.mubr.msk.f32.vlgmr.msra.gmra.mxu0 %vm1093_vm10, %v6143_v22 }
 0x9f3   :  { %v2413_v59 = vmul.f32 %v4371_v0, %v2404_v1  ;;  %4976 = vmatprep.mubr.msk.f32.mxu0 %vm5368_vm2, %v5367_v6 }
 0x9f5   :  { %v6149_v24 = vadd.f32 %v4372_v4, %v2413_v59 }
 0x9f6   :  { %v5288_v23 = vpop.eup %5287 }
 0x9f7   :  { %4977 = vmatmul.mubr.msk.f32.gmra.mxu0 %vm1093_vm10, %v6149_v24  ;;  %v2405_v8 = vmul.f32 %v5288_v23, %v2381_v51 }
 0x9f8   :  { %4979 = vmatprep.mubr.msk.f32.mxu0 %vm5368_vm2, %v5367_v6 }
 0x9f9   :  { %v2414_v25 = vmul.f32 %v4371_v0, %v2405_v8 }
 0x9fb   :  { %v6155_v9 = vadd.f32 %v4372_v4, %v2414_v25 }
 0x9fd   :  { %4980 = vmatmul.mubr.msk.f32.gmra.mxu0 %vm1093_vm10, %v6155_v9 }
 0x9fe   :  { %5015 = vmatprep.mubr.msk.f32.mxu0 %vm5368_vm2, %v5367_v6 }
 0xab2   :  { %v2510_v34 = vpop.f32.mrf.mxu0 }
 0xab3   :  { %v2511_v35 = vadd.f32 %v4373_v33, %v2510_v34 }
 0xab4   :  { %v4975_v36 = vpop.f32.mrf.mxu0 }
 0xab5   :  { %v2527_v37 = vmul.f32 0.044715, %v2511_v35  ;;  %v2524_v3 = vmul.f32 0.5, %v2511_v35 }
 0xab7   :  { %v2515_v38 = vpop.f32.mrf.mxu0  ;;  %v2530_v39 = vmul.f32 %v2527_v37, %v2511_v35 }
 0xab8   :  { %v2516_v40 = vadd.f32 %v4373_v33, %v2515_v38  ;;  %v4386_v38 = vld [vmem:[%s6712_s5 + $0x38] sm:$0xff] }
 0xab9   :  { %v4978_v41 = vpop.f32.mrf.mxu0  ;;  %v2533_v42 = vmul.f32 %v2530_v39, %v2511_v35  ;;  %5008 = vmatpush3.msra.mxu0 %v4386_v38  ;;  %v4385_v39 = vld [vmem:[%s6712_s5 + $0x30] sm:$0xff] }
 0xaba   :  { %v2528_v43 = vmul.f32 0.044715, %v2516_v40  ;;  %v2525_v11 = vmul.f32 0.5, %v2516_v40  ;;  %5009 = vmatprep.subr.mxu0 %v5367_v6  ;;  %v4383_v41 = vld [vmem:[%s6712_s5 + $0x20] sm:$0xff] }
 0xabb   :  { %v2536_v45 = vadd.f32 %v2533_v42, %v2511_v35  ;;  %5010 = vmatpush3.msra.mxu0 %v4385_v39 }
 0xabc   :  { %v2531_v46 = vmul.f32 %v2528_v43, %v2516_v40  ;;  %5011 = vmatprep.subr.mxu0 %v5367_v6 }
 0xabd   :  { %v2539_v44 = vmul.f32 0.7978846, %v2536_v45  ;;  %v2520_v49 = vpop.f32.mrf.mxu0 }
 0xabe   :  { %v2534_v47 = vmul.f32 %v2531_v46, %v2516_v40  ;;  %v2521_v50 = vadd.f32 %v4373_v33, %v2520_v49 }
 0xabf   :  { %5289 = vtanh.f32 %v2539_v44  ;;  %v4981_v54 = vpop.f32.mrf.mxu0 }
 0xac0   :  { %v2537_v52 = vadd.f32 %v2534_v47, %v2516_v40  ;;  %v2529_v55 = vmul.f32 0.044715, %v2521_v50  ;;  %v2526_v14 = vmul.f32 0.5, %v2521_v50  ;;  %v4384_v40 = vld [vmem:[%s6712_s5 + $0x28] sm:$0xff] }
 0xac1   :  { %5012 = vmatpush3.msra.mxu0 %v4384_v40 }
 0xac2   :  { %v2540_v48 = vmul.f32 0.7978846, %v2537_v52  ;;  %v2532_v58 = vmul.f32 %v2529_v55, %v2521_v50  ;;  %5013 = vmatprep.subr.mxu0 %v5367_v6  ;;  %v4381_v55 = vld [vmem:[%s6724_s15] ss:$0 sm:$0xff] }
 0xac3   :  { %5014 = vmatpush3.msra.mxu0 %v4383_v41 }
 0xac4   :  { %5291 = vtanh.f32 %v2540_v48  ;;  %v2535_v57 = vmul.f32 %v2532_v58, %v2521_v50  ;;  %5039 = vmatprep.subr.mxu0 %v5367_v6  ;;  %v4382_v58 = vld [vmem:[%s6725_s16] ss:$0 sm:$0xff] }
 0xac6   :  { %v2538_v61 = vadd.f32 %v2535_v57, %v2521_v50 }
 0xac8   :  { %v2541_v63 = vmul.f32 0.7978846, %v2538_v61 }
 0xaca   :  { %5293 = vtanh.f32 %v2541_v63 }
 0xacc   :  { %v5290_v51 = vpop.eup %5289 }
 0xacd   :  { %v2545_v62 = vadd.f32 1.0, %v5290_v51 }
 0xacf   :  { %v2548_v5 = vmul.f32 %v2545_v62, %v2524_v3 }
 0xad1   :  { %v5292_v7 = vpop.eup %5291  ;;  %4999 = vmatmul.mubr.msk.f32.vlgmr.msra.gmra.mxu1 %vm2566_vm8, %v2548_v5 }
 0xad2   :  { %v2546_v2 = vadd.f32 1.0, %v5292_v7  ;;  %5001 = vmatprep.mubr.msk.f32.mxu1 %vm5368_vm2, %v5367_v6 }
 0xad4   :  { %v2549_v12 = vmul.f32 %v2546_v2, %v2525_v11 }
 0xad6   :  { %5002 = vmatmul.mubr.msk.f32.gmra.mxu1 %vm2566_vm8, %v2549_v12 }
 0xad7   :  { %5004 = vmatprep.mubr.msk.f32.mxu1 %vm5368_vm2, %v5367_v6  ;;  %v5294_v13 = vpop.eup %5293 }
 0xad8   :  { %v2547_v60 = vadd.f32 1.0, %v5294_v13 }
 0xada   :  { %v2550_v15 = vmul.f32 %v2547_v60, %v2526_v14  ;;  %v4388_v14 = vld [vmem:[%s6715_s6 + $0x1] ss:$0 sm:$0xff]  ;;  %s6741_s6 = smov 56  }
 0xadc   :  { %5005 = vmatmul.mubr.msk.f32.gmra.mxu1 %vm2566_vm8, %v2550_v15 }
 0xadd   :  { %5030 = vmatprep.mubr.msk.f32.mxu1 %vm5368_vm2, %v5367_v6 }
 0xb91   :  { %v2642_v53 = vpop.f32.mrf.mxu1 }
 0xb92   :  { %v2643_v56 = vadd.f32 %v4377_v16, %v2642_v53 }
 0xb93   :  { %v5000_v17 = vpop.f32.mrf.mxu1 }
 0xb94   :  { %v2656_v18 = vadd.f32 %v2643_v56, %v6143_v22 }
 0xb96   :  { %v2647_v0 = vpop.f32.mrf.mxu1  ;;  %v2661_v4 = vsel %vm1093_vm10, %v2656_v18, 0.0 }
 0xb97   :  { %v2648_v19 = vadd.f32 %v4377_v16, %v2647_v0  ;;  %2662 = vadd.xlane.f32.xlu1 %v2661_v4 }
 0xb98   :  { %v5003_v20 = vpop.f32.mrf.mxu1 }
 0xb99   :  { %v2657_v21 = vadd.f32 %v2648_v19, %v6149_v24 }
 0xb9b   :  { %v2664_v1 = vsel %vm1093_vm10, %v2657_v21, 0.0 }
 0xb9c   :  { %2665 = vadd.xlane.f32.xlu0 %v2664_v1  ;;  %v2652_v59 = vpop.f32.mrf.mxu1 }
 0xb9d   :  { %v2653_v23 = vadd.f32 %v4377_v16, %v2652_v59 }
 0xb9e   :  { %v5006_v8 = vpop.f32.mrf.mxu1 }
 0xb9f   :  { %v2658_v25 = vadd.f32 %v2653_v23, %v6155_v9 }
 0xba1   :  { %v2667_v26 = vsel %vm1100_vm11, %v2658_v25, 0.0 }
 0xba2   :  { %2668 = vadd.xlane.f32.xlu1 %v2667_v26 }
 0xc20   :  { %v2663_v22 = vpop.xlane.xlu1 %2662 }
 0xc21   :  { %v2670_v27 = vmul.f32 0.03125, %v2663_v22 }
 0xc23   :  { %v2673_v10 = vsub.f32 %v2656_v18, %v2670_v27 }
 0xc25   :  { %v2666_v28 = vpop.xlane.xlu0 %2665  ;;  %v2676_v30 = vmul.f32 %v2673_v10, %v2673_v10 }
 0xc26   :  { %v2671_v29 = vmul.f32 0.03125, %v2666_v28 }
 0xc27   :  { %v2679_v24 = vsel %vm1093_vm10, %v2676_v30, 0.0 }
 0xc28   :  { %v2674_v31 = vsub.f32 %v2657_v21, %v2671_v29  ;;  %2680 = vadd.xlane.f32.xlu0 %v2679_v24 }
 0xc2a   :  { %v2677_v32 = vmul.f32 %v2674_v31, %v2674_v31 }
 0xc2b   :  { %v2669_v33 = vpop.xlane.xlu1 %2668 }
 0xc2c   :  { %v2682_v34 = vsel %vm1093_vm10, %v2677_v32, 0.0  ;;  %v2672_v35 = vmul.f32 0.03125, %v2669_v33 }
 0xc2d   :  { %2683 = vadd.xlane.f32.xlu1 %v2682_v34 }
 0xc2e   :  { %v2675_v9 = vsub.f32 %v2658_v25, %v2672_v35 }
 0xc30   :  { %v2678_v36 = vmul.f32 %v2675_v9, %v2675_v9 }
 0xc32   :  { %v2685_v37 = vsel %vm1100_vm11, %v2678_v36, 0.0 }
 0xc33   :  { %2686 = vadd.xlane.f32.xlu0 %v2685_v37 }
 0xcb1   :  { %v2681_v42 = vpop.xlane.xlu0 %2680 }
 0xcb2   :  { %v2688_v43 = vmul.f32 0.03125, %v2681_v42 }
 0xcb4   :  { %v2691_v45 = vadd.f32 1e-05, %v2688_v43 }
 0xcb6   :  { %v2684_v46 = vpop.xlane.xlu1 %2683  ;;  %5295 = vrsqrt.f32 %v2691_v45 }
 0xcb7   :  { %v2689_v44 = vmul.f32 0.03125, %v2684_v46 }
 0xcb9   :  { %v2692_v47 = vadd.f32 1e-05, %v2689_v44 }
 0xcbb   :  { %5297 = vrsqrt.f32 %v2692_v47 }
 0xcbc   :  { %v2687_v49 = vpop.xlane.xlu0 %2686 }
 0xcbd   :  { %v2690_v50 = vmul.f32 0.03125, %v2687_v49 }
 0xcbf   :  { %v2693_v52 = vadd.f32 1e-05, %v2690_v50 }
 0xcc1   :  { %5299 = vrsqrt.f32 %v2693_v52 }
 0xcc3   :  { %v5296_v54 = vpop.eup %5295 }
 0xcc4   :  { %v2697_v48 = vmul.f32 %v5296_v54, %v2673_v10 }
 0xcc6   :  { %v2706_v57 = vmul.f32 %v4381_v55, %v2697_v48 }
 0xcc8   :  { %v5298_v61 = vpop.eup %5297  ;;  %v6239_v63 = vadd.f32 %v4382_v58, %v2706_v57 }
 0xcc9   :  { %v2698_v51 = vmul.f32 %v5298_v61, %v2674_v31 }
 0xcca   :  { %5016 = vmatmul.mubr.msk.f32.vlgmr.msra.gmra.mxu0 %vm1093_vm10, %v6239_v63 }
 0xccb   :  { %v2707_v3 = vmul.f32 %v4381_v55, %v2698_v51  ;;  %5018 = vmatprep.mubr.msk.f32.mxu0 %vm5368_vm2, %v5367_v6 }
 0xccd   :  { %v6245_v62 = vadd.f32 %v4382_v58, %v2707_v3 }
 0xcce   :  { %v5300_v5 = vpop.eup %5299 }
 0xccf   :  { %5019 = vmatmul.mubr.msk.f32.gmra.mxu0 %vm1093_vm10, %v6245_v62  ;;  %v2699_v7 = vmul.f32 %v5300_v5, %v2675_v9 }
 0xcd0   :  { %5021 = vmatprep.mubr.msk.f32.mxu0 %vm5368_vm2, %v5367_v6 }
 0xcd1   :  { %v2708_v11 = vmul.f32 %v4381_v55, %v2699_v7 }
 0xcd3   :  { %v6251_v2 = vadd.f32 %v4382_v58, %v2708_v11 }
 0xcd5   :  { %5022 = vmatmul.mubr.msk.f32.gmra.mxu0 %vm1093_vm10, %v6251_v2 }
 0xcd6   :  { %5045 = vmatprep.mubr.msk.f32.mxu0 %vm5368_vm2, %v5367_v6 }
 0xd8a   :  { %v2806_v12 = vpop.f32.mrf.mxu0 }
 0xd8b   :  { %v6264_v53 = vadd.f32 %v4388_v14, %v2806_v12 }
 0xd8c   :  { %v5017_v13 = vpop.f32.mrf.mxu0 }
 0xd8d   :  { %v2820_v0 = vmul.f32 0.35355338, %v6264_v53 }
 0xd8f   :  { %v2811_v60 = vpop.f32.mrf.mxu0 }
 0xd90   :  { %v6260_v15 = vadd.f32 %v4388_v14, %v2811_v60 }
 0xd91   :  { %v5020_v16 = vpop.f32.mrf.mxu0 }
 0xd92   :  { %2828 = vrot.lane.b32.xlu0 %v6260_v15, %s5371_s18  ;;  %v2821_v19 = vmul.f32 0.35355338, %v6260_v15 }
 0xd95   :  { %v2816_v56 = vpop.f32.mrf.mxu0 }
 0xd96   :  { %3070 = vrot.lane.b32.xlu0 %v6260_v15, %s5372_s1  ;;  %v6268_v17 = vadd.f32 %v4388_v14, %v2816_v56 }
 0xd97   :  { %v5023_v18 = vpop.f32.mrf.mxu0 }
 0xd98   :  { %2830 = vrot.lane.b32.xlu1 %v6268_v17, %s5371_s18  ;;  %v2822_v4 = vmul.f32 0.35355338, %v6268_v17 }
 0xd9a   :  { %3062 = vrot.lane.b32.xlu0 %v2820_v0, %s5373_s2 }
 0xd9c   :  { %2826 = vrot.lane.b32.xlu1 %v6264_v53, %s5371_s18  ;;  %s6743_s18 = smov 40  }
 0xd9e   :  { %3064 = vrot.lane.b32.xlu0 %v2821_v19, %s5373_s2 }
 0xda0   :  { %3072 = vrot.lane.b32.xlu1 %v6268_v17, %s5372_s1 }
 0xda2   :  { %3066 = vrot.lane.b32.xlu0 %v2822_v4, %s5373_s2 }
 0xda4   :  { %3068 = vrot.lane.b32.xlu1 %v6264_v53, %s5372_s1 }
 0xda6   :  { %3313 = vrot.lane.b32.xlu0 %v2820_v0, %s5369_s25 }
 0xda8   :  { %3323 = vrot.lane.b32.xlu1 %v6268_v17, %s5374_s20 }
 0xdaa   :  { %3315 = vrot.lane.b32.xlu0 %v2821_v19, %s5369_s25 }
 0xdac   :  { %3321 = vrot.lane.b32.xlu1 %v6260_v15, %s5374_s20 }
 0xdae   :  { %3317 = vrot.lane.b32.xlu0 %v2822_v4, %s5369_s25  ;;  %s6742_s25 = smov 48  }
 0xdb0   :  { %3319 = vrot.lane.b32.xlu1 %v6264_v53, %s5374_s20 }
 0xdb2   :  { %3564 = vrot.lane.b32.xlu0 %v2820_v0, %s5376_s22 }
 0xdb4   :  { %3574 = vrot.lane.b32.xlu1 %v6268_v17, %s5375_s21 }
 0xdb6   :  { %3568 = vrot.lane.b32.xlu0 %v2822_v4, %s5376_s22 }
 0xdb8   :  { %3572 = vrot.lane.b32.xlu1 %v6260_v15, %s5375_s21 }
 0xdba   :  { %2964 = vrot.lane.b32.xlu0 %v6268_v17, %s5377_s23 }
 0xdbc   :  { %3570 = vrot.lane.b32.xlu1 %v6264_v53, %s5375_s21 }
 0xdbe   :  { %2960 = vrot.lane.b32.xlu0 %v6264_v53, %s5377_s23 }
 0xdc0   :  { %3566 = vrot.lane.b32.xlu1 %v2821_v19, %s5376_s22 }
 0xdc2   :  { %3203 = vrot.lane.b32.xlu0 %v6268_v17, %s6741_s6 }
 0xdc4   :  { %2962 = vrot.lane.b32.xlu1 %v6260_v15, %s5377_s23 }
 0xdc6   :  { %3199 = vrot.lane.b32.xlu0 %v6264_v53, %s6741_s6 }
 0xdc8   :  { %3201 = vrot.lane.b32.xlu1 %v6260_v15, %s6741_s6 }
 0xe04   :  { %v2829_v20 = vpop.permute.xlu0 %2828 }
 0xe08   :  { %v3071_v21 = vpop.permute.xlu0 %3070 }
 0xe0a   :  { %v2831_v1 = vpop.permute.xlu1 %2830 }
 0xe0b   :  { %5025 = vmatpush3.xpose.msk.msra.mxu1 %vm1265_vm12, %v2831_v1 }
 0xe0c   :  { %v3063_v59 = vpop.permute.xlu0 %3062  ;;  %5026 = vmatprep.subr.mxu1 %v5367_v6 }
 0xe0e   :  { %v2827_v23 = vpop.permute.xlu1 %2826 }
 0xe0f   :  { %5027 = vmatpush3.xpose.msk.msra.mxu1 %vm1265_vm12, %v2829_v20 }
 0xe10   :  { %v3065_v8 = vpop.permute.xlu0 %3064  ;;  %5028 = vmatprep.subr.mxu1 %v5367_v6 }
 0xe12   :  { %v3073_v25 = vpop.permute.xlu1 %3072 }
 0xe13   :  { %5029 = vmatpush3.xpose.msk.msra.mxu1 %vm1265_vm12, %v2827_v23 }
 0xe14   :  { %v3067_v26 = vpop.permute.xlu0 %3066  ;;  %5054 = vmatprep.subr.mxu1 %v5367_v6 }
 0xe16   :  { %5031 = vmatmul.mubr.msk.f32.vlgmr.msra.gmra.mxu1 %vm1265_vm12, %v2820_v0  ;;  %v3069_v22 = vpop.permute.xlu1 %3068 }
 0xe17   :  { %5055 = vmatpush3.xpose.msk.msra.mxu1 %vm1265_vm12, %v3073_v25  ;;  %5033 = vmatprep.mubr.msk.f32.mxu1 %vm5368_vm2, %v5367_v6 }
 0xe18   :  { %v3314_v27 = vpop.permute.xlu0 %3313  ;;  %5056 = vmatprep.subr.mxu1 %v5367_v6 }
 0xe1a   :  { %5034 = vmatmul.mubr.msk.f32.gmra.mxu1 %vm1265_vm12, %v2821_v19  ;;  %v3324_v10 = vpop.permute.xlu1 %3323 }
 0xe1b   :  { %5057 = vmatpush3.xpose.msk.msra.mxu1 %vm1265_vm12, %v3071_v21  ;;  %5036 = vmatprep.mubr.msk.f32.mxu1 %vm5368_vm2, %v5367_v6 }
 0xe1c   :  { %v3316_v28 = vpop.permute.xlu0 %3315  ;;  %5058 = vmatprep.subr.mxu1 %v5367_v6 }
 0xe1e   :  { %v3322_v29 = vpop.permute.xlu1 %3321  ;;  %5037 = vmatmul.mubr.msk.f32.gmra.mxu1 %vm1265_vm12, %v2822_v4 }
 0xe1f   :  { %5059 = vmatpush3.xpose.msk.msra.mxu1 %vm1265_vm12, %v3069_v22  ;;  %5060 = vmatprep.mubr.msk.f32.mxu1 %vm5368_vm2, %v5367_v6 }
 0xe20   :  { %v3318_v30 = vpop.permute.xlu0 %3317  ;;  %5084 = vmatprep.subr.mxu1 %v5367_v6 }
 0xe22   :  { %v3320_v31 = vpop.permute.xlu1 %3319  ;;  %5061 = vmatmul.mubr.msk.f32.vlgmr.msra.gmra.mxu1 %vm1265_vm12, %v3063_v59 }
 0xe23   :  { %5085 = vmatpush3.xpose.msk.msra.mxu1 %vm1265_vm12, %v3324_v10  ;;  %5063 = vmatprep.mubr.msk.f32.mxu1 %vm5368_vm2, %v5367_v6 }
 0xe24   :  { %v3565_v24 = vpop.permute.xlu0 %3564  ;;  %5086 = vmatprep.subr.mxu1 %v5367_v6 }
 0xe26   :  { %v3575_v32 = vpop.permute.xlu1 %3574  ;;  %5064 = vmatmul.mubr.msk.f32.gmra.mxu1 %vm1265_vm12, %v3065_v8 }
 0xe27   :  { %5087 = vmatpush3.xpose.msk.msra.mxu1 %vm1265_vm12, %v3322_v29  ;;  %5066 = vmatprep.mubr.msk.f32.mxu1 %vm5368_vm2, %v5367_v6 }
 0xe28   :  { %v3569_v33 = vpop.permute.xlu0 %3568  ;;  %5088 = vmatprep.subr.mxu1 %v5367_v6 }
 0xe2a   :  { %v3573_v34 = vpop.permute.xlu1 %3572  ;;  %5067 = vmatmul.mubr.msk.f32.gmra.mxu1 %vm1265_vm12, %v3067_v26 }
 0xe2b   :  { %5089 = vmatpush3.xpose.msk.msra.mxu1 %vm1265_vm12, %v3320_v31  ;;  %5090 = vmatprep.mubr.msk.f32.mxu1 %vm5368_vm2, %v5367_v6 }
 0xe2c   :  { %v2965_v35 = vpop.permute.xlu0 %2964  ;;  %5114 = vmatprep.subr.mxu1 %v5367_v6 }
 0xe2d   :  { %5040 = vmatpush3.msk.msra.mxu0 %vm1413_vm13, %v2965_v35 }
 0xe2e   :  { %5041 = vmatprep.subr.mxu0 %v5367_v6  ;;  %v3571_v9 = vpop.permute.xlu1 %3570  ;;  %5091 = vmatmul.mubr.msk.f32.vlgmr.msra.gmra.mxu1 %vm1265_vm12, %v3314_v27 }
 0xe2f   :  { %5115 = vmatpush3.xpose.msk.msra.mxu1 %vm1265_vm12, %v3575_v32  ;;  %5093 = vmatprep.mubr.msk.f32.mxu1 %vm5368_vm2, %v5367_v6 }
 0xe30   :  { %5116 = vmatprep.subr.mxu1 %v5367_v6  ;;  %v2961_v38 = vpop.permute.xlu0 %2960 }
 0xe32   :  { %v3567_v36 = vpop.permute.xlu1 %3566  ;;  %5094 = vmatmul.mubr.msk.f32.gmra.mxu1 %vm1265_vm12, %v3316_v28 }
 0xe33   :  { %5117 = vmatpush3.xpose.msk.msra.mxu1 %vm1265_vm12, %v3573_v34  ;;  %5096 = vmatprep.mubr.msk.f32.mxu1 %vm5368_vm2, %v5367_v6 }
 0xe34   :  { %5118 = vmatprep.subr.mxu1 %v5367_v6  ;;  %v6414_v59 = vpop.permute.xlu0 %3203 }
 0xe36   :  { %v2963_v37 = vpop.permute.xlu1 %2962  ;;  %5097 = vmatmul.mubr.msk.f32.gmra.mxu1 %vm1265_vm12, %v3318_v30 }
 0xe37   :  { %5042 = vmatpush3.msra.mxu0 %v2963_v37  ;;  %5119 = vmatpush3.xpose.msk.msra.mxu1 %vm1265_vm12, %v3571_v9 }
 0xe38   :  { %5043 = vmatprep.subr.mxu0 %v5367_v6  ;;  %5120 = vmatprep.mubr.msk.f32.mxu1 %vm5368_vm2, %v5367_v6  ;;  %v6418_v8 = vpop.permute.xlu0 %3199 }
 0xe39   :  { %5044 = vmatpush3.msra.mxu0 %v2961_v38  ;;  %5144 = vmatprep.subr.mxu1 %v5367_v6 }
 0xe3a   :  { %5121 = vmatmul.mubr.msk.f32.vlgmr.msra.gmra.mxu1 %vm1265_vm12, %v3565_v24  ;;  %5069 = vmatprep.subr.mxu0 %v5367_v6  ;;  %v6416_v23 = vpop.permute.xlu1 %3201 }
 0xe3b   :  { %5123 = vmatprep.mubr.msk.f32.mxu1 %vm5368_vm2, %v5367_v6 }
 0xe3e   :  { %5124 = vmatmul.mubr.msk.f32.gmra.mxu1 %vm1265_vm12, %v3567_v36 }
 0xe3f   :  { %5126 = vmatprep.mubr.msk.f32.mxu1 %vm5368_vm2, %v5367_v6 }
 0xe42   :  { %5127 = vmatmul.mubr.msk.f32.gmra.mxu1 %vm1265_vm12, %v3569_v33 }
 0xe43   :  { %5152 = vmatprep.mubr.msk.f32.mxu1 %vm5368_vm2, %v5367_v6 }
 0xed6   :  { %v2913_v39 = vpop.f32.mrf.mxu1 }
 0xed7   :  { %v2927_v40 = vsel %vm1361_vm14, %v2913_v39, -inf }
 0xed8   :  { %2928 = vmax.xlane.f32.xlu1 %v2927_v40  ;;  %v5032_v41 = vpop.f32.mrf.mxu1 }
 0xeda   :  { %v2918_v42 = vpop.f32.mrf.mxu1 }
 0xedb   :  { %v2930_v43 = vsel %vm1361_vm14, %v2918_v42, -inf }
 0xedc   :  { %v5035_v45 = vpop.f32.mrf.mxu1  ;;  %2931 = vmax.xlane.f32.xlu0 %v2930_v43 }
 0xede   :  { %v2923_v46 = vpop.f32.mrf.mxu1 }
 0xedf   :  { %v2933_v44 = vsel %vm1368_vm15, %v2923_v46, -inf }
 0xee0   :  { %2934 = vmax.xlane.f32.xlu0 %v2933_v44  ;;  %v5038_v47 = vpop.f32.mrf.mxu1 }
 0xee2   :  { %v3152_v49 = vpop.f32.mrf.mxu1 }
 0xee3   :  { %v3166_v50 = vsel %vm1361_vm14, %v3152_v49, -inf }
 0xee4   :  { %3167 = vmax.xlane.f32.xlu1 %v3166_v50  ;;  %v5062_v52 = vpop.f32.mrf.mxu1 }
 0xee6   :  { %v3157_v54 = vpop.f32.mrf.mxu1 }
 0xee7   :  { %v3169_v55 = vsel %vm1361_vm14, %v3157_v54, -inf }
 0xee8   :  { %3170 = vmax.xlane.f32.xlu0 %v3169_v55  ;;  %v5065_v48 = vpop.f32.mrf.mxu1 }
 0xeea   :  { %v3162_v58 = vpop.f32.mrf.mxu1 }
 0xeeb   :  { %v3172_v57 = vsel %vm1368_vm15, %v3162_v58, -inf }
 0xeec   :  { %3173 = vmax.xlane.f32.xlu1 %v3172_v57  ;;  %v5068_v61 = vpop.f32.mrf.mxu1 }
 0xeee   :  { %v6384_v51 = vpop.f32.mrf.mxu1 }
 0xeef   :  { %v3417_v3 = vsel %vm1361_vm14, %v6384_v51, -inf }
 0xef0   :  { %3418 = vmax.xlane.f32.xlu0 %v3417_v3  ;;  %v5092_v5 = vpop.f32.mrf.mxu1 }
 0xef2   :  { %v6388_v7 = vpop.f32.mrf.mxu1 }
 0xef3   :  { %v3420_v11 = vsel %vm1361_vm14, %v6388_v7, -inf }
 0xef4   :  { %3421 = vmax.xlane.f32.xlu1 %v3420_v11  ;;  %v5095_v12 = vpop.f32.mrf.mxu1 }
 0xef6   :  { %v6392_v13 = vpop.f32.mrf.mxu1 }
 0xef7   :  { %v3423_v14 = vsel %vm1368_vm15, %v6392_v13, -inf }
 0xef8   :  { %3424 = vmax.xlane.f32.xlu0 %v3423_v14  ;;  %v5098_v60 = vpop.f32.mrf.mxu1 }
 0xefa   :  { %v6396_v16 = vpop.f32.mrf.mxu1 }
 0xefb   :  { %v3668_v56 = vsel %vm1361_vm14, %v6396_v16, -inf }
 0xefc   :  { %3669 = vmax.xlane.f32.xlu1 %v3668_v56  ;;  %v5122_v18 = vpop.f32.mrf.mxu1 }
 0xefe   :  { %v6400_v0 = vpop.f32.mrf.mxu1 }
 0xeff   :  { %v3671_v19 = vsel %vm1361_vm14, %v6400_v0, -inf }
 0xf00   :  { %3672 = vmax.xlane.f32.xlu0 %v3671_v19  ;;  %v5125_v4 = vpop.f32.mrf.mxu1 }
 0xf02   :  { %v6404_v20 = vpop.f32.mrf.mxu1 }
 0xf03   :  { %v3674_v1 = vsel %vm1368_vm15, %v6404_v20, -inf }
 0xf04   :  { %v5128_v21 = vpop.f32.mrf.mxu1 }
 0xf0d   :  { %3452 = vrot.lane.b32.xlu1 %v6260_v15, %s6742_s25 }
 0xf16   :  { %3454 = vrot.lane.b32.xlu0 %v6268_v17, %s6742_s25 }
 0xf31   :  { %3675 = vmax.xlane.f32.xlu1 %v3674_v1 }
 0xf42   :  { %3450 = vrot.lane.b32.xlu1 %v6264_v53, %s6742_s25 }
 0xf61   :  { %v2929_v25 = vpop.xlane.xlu1 %2928 }
 0xf62   :  { %v2936_v26 = vsub.f32 %v2913_v39, %v2929_v25 }
 0xf64   :  { %v2939_v22 = vmul.f32 1.442695, %v2936_v26 }
 0xf65   :  { %v2932_v27 = vpop.xlane.xlu0 %2931 }
 0xf66   :  { %5301 = vpow2.f32 %v2939_v22  ;;  %v2937_v10 = vsub.f32 %v2918_v42, %v2932_v27 }
 0xf68   :  { %v2941_v28 = vmul.f32 1.442695, %v2937_v10 }
 0xf69   :  { %v2935_v29 = vpop.xlane.xlu0 %2934 }
 0xf6a   :  { %5303 = vpow2.f32 %v2941_v28  ;;  %v2938_v30 = vsub.f32 %v2923_v46, %v2935_v29 }
 0xf6c   :  { %v2943_v31 = vmul.f32 1.442695, %v2938_v30 }
 0xf6d   :  { %v3168_v24 = vpop.xlane.xlu1 %3167 }
 0xf6e   :  { %5305 = vpow2.f32 %v2943_v31  ;;  %v3175_v32 = vsub.f32 %v3152_v49, %v3168_v24 }
 0xf70   :  { %v3178_v33 = vmul.f32 1.442695, %v3175_v32 }
 0xf71   :  { %v3171_v34 = vpop.xlane.xlu0 %3170 }
 0xf72   :  { %5307 = vpow2.f32 %v3178_v33  ;;  %v3176_v35 = vsub.f32 %v3157_v54, %v3171_v34 }
 0xf73   :  { %v6420_v9 = vpop.eup %5301 }
 0xf74   :  { %v3180_v36 = vmul.f32 1.442695, %v3176_v35  ;;  %v2945_v37 = vsel %vm1361_vm14, %v6420_v9, 0.0 }
 0xf75   :  { %v3174_v38 = vpop.xlane.xlu1 %3173  ;;  %2946 = vadd.xlane.f32.xlu0 %v2945_v37 }
 0xf76   :  { %5309 = vpow2.f32 %v3180_v36  ;;  %v3177_v39 = vsub.f32 %v3162_v58, %v3174_v38 }
 0xf77   :  { %v6424_v40 = vpop.eup %5303 }
 0xf78   :  { %v3182_v41 = vmul.f32 1.442695, %v3177_v39  ;;  %v2948_v42 = vsel %vm1361_vm14, %v6424_v40, 0.0 }
 0xf79   :  { %v3419_v43 = vpop.xlane.xlu0 %3418  ;;  %2949 = vadd.xlane.f32.xlu1 %v2948_v42 }
 0xf7a   :  { %5311 = vpow2.f32 %v3182_v41  ;;  %v3426_v45 = vsub.f32 %v6384_v51, %v3419_v43 }
 0xf7b   :  { %v6429_v46 = vpop.eup %5305 }
 0xf7c   :  { %v3429_v44 = vmul.f32 1.442695, %v3426_v45  ;;  %v2951_v47 = vsel %vm1368_vm15, %v6429_v46, 0.0 }
 0xf7d   :  { %v3422_v49 = vpop.xlane.xlu1 %3421  ;;  %2952 = vadd.xlane.f32.xlu0 %v2951_v47 }
 0xf7e   :  { %5313 = vpow2.f32 %v3429_v44  ;;  %v3427_v50 = vsub.f32 %v6388_v7, %v3422_v49 }
 0xf7f   :  { %v6434_v52 = vpop.eup %5307 }
 0xf80   :  { %v3431_v54 = vmul.f32 1.442695, %v3427_v50  ;;  %v3184_v55 = vsel %vm1361_vm14, %v6434_v52, 0.0 }
 0xf81   :  { %3185 = vadd.xlane.f32.xlu1 %v3184_v55  ;;  %v3425_v57 = vpop.xlane.xlu0 %3424 }
 0xf82   :  { %5315 = vpow2.f32 %v3431_v54  ;;  %v3428_v1 = vsub.f32 %v6392_v13, %v3425_v57 }
 0xf83   :  { %v6438_v48 = vpop.eup %5309 }
 0xf84   :  { %v3187_v58 = vsel %vm1361_vm14, %v6438_v48, 0.0  ;;  %v3433_v25 = vmul.f32 1.442695, %v3428_v1 }
 0xf85   :  { %v3670_v61 = vpop.xlane.xlu1 %3669  ;;  %3188 = vadd.xlane.f32.xlu0 %v3187_v58 }
 0xf86   :  { %v3677_v51 = vsub.f32 %v6396_v16, %v3670_v61 }
 0xf87   :  { %v6443_v3 = vpop.eup %5311 }
 0xf88   :  { %v3680_v5 = vmul.f32 1.442695, %v3677_v51  ;;  %v3190_v7 = vsel %vm1368_vm15, %v6443_v3, 0.0 }
 0xf89   :  { %v3673_v11 = vpop.xlane.xlu0 %3672  ;;  %3191 = vadd.xlane.f32.xlu1 %v3190_v7  ;;  %v3453_v22 = vpop.permute.xlu1 %3452 }
 0xf8a   :  { %5317 = vpow2.f32 %v3680_v5  ;;  %v3678_v12 = vsub.f32 %v6400_v0, %v3673_v11 }
 0xf8b   :  { %v6448_v14 = vpop.eup %5313 }
 0xf8c   :  { %v3682_v60 = vmul.f32 1.442695, %v3678_v12  ;;  %v3435_v56 = vsel %vm1361_vm14, %v6448_v14, 0.0 }
 0xf8d   :  { %3436 = vadd.xlane.f32.xlu1 %v3435_v56 }
 0xf8e   :  { %5319 = vpow2.f32 %v3682_v60 }
 0xf8f   :  { %v6452_v16 = vpop.eup %5315  ;;  %5321 = vpow2.f32 %v3433_v25 }
 0xf90   :  { %v3438_v18 = vsel %vm1361_vm14, %v6452_v16, 0.0 }
 0xf91   :  { %3439 = vadd.xlane.f32.xlu1 %v3438_v18 }
 0xf97   :  { %v6456_v19 = vpop.eup %5317 }
 0xf98   :  { %v3686_v4 = vsel %vm1361_vm14, %v6456_v19, 0.0 }
 0xf99   :  { %3687 = vadd.xlane.f32.xlu1 %v3686_v4 }
 0xf9b   :  { %v6460_v0 = vpop.eup %5319  ;;  %3705 = vrot.lane.b32.xlu0 %v6268_v17, %s6743_s18 }
 0xf9c   :  { %v3689_v21 = vsel %vm1361_vm14, %v6460_v0, 0.0  ;;  %v6469_v26 = vpop.eup %5321 }
 0xf9d   :  { %3690 = vadd.xlane.f32.xlu1 %v3689_v21  ;;  %v3441_v27 = vsel %vm1368_vm15, %v6469_v26, 0.0 }
 0xfae   :  { %3703 = vrot.lane.b32.xlu1 %v6260_v15, %s6743_s18  ;;  %v3455_v15 = vpop.permute.xlu0 %3454 }
 0xfba   :  { %3442 = vadd.xlane.f32.xlu0 %v3441_v27  ;;  %v3676_v10 = vpop.xlane.xlu1 %3675 }
 0xfbb   :  { %v3679_v17 = vsub.f32 %v6404_v20, %v3676_v10 }
 0xfbd   :  { %v3684_v28 = vmul.f32 1.442695, %v3679_v17 }
 0xfbe   :  { %v3451_v30 = vpop.permute.xlu1 %3450 }
 0xfbf   :  { %5323 = vpow2.f32 %v3684_v28  ;;  %v4435_v28 = vld [vmem:[%s6716_s7 + $0x38] sm:$0xff] }
 0xfc0   :  { %5145 = vmatpush3.msra.mxu1 %v4435_v28 }
 0xfc1   :  { %5146 = vmatprep.subr.mxu1 %v5367_v6 }
 0xfcc   :  { %v6474_v29 = vpop.eup %5323 }
 0xfcd   :  { %v3692_v13 = vsel %vm1368_vm15, %v6474_v29, 0.0 }
 0xfce   :  { %3693 = vadd.xlane.f32.xlu0 %v3692_v13 }
 0xfe4   :  { %3701 = vrot.lane.b32.xlu0 %v6264_v53, %s6743_s18 }
 0xffe   :  { %v2947_v31 = vpop.xlane.xlu0 %2946 }
 0xfff   :  { %5325 = vrcp.f32 %v2947_v31 }
0x1002   :  { %v2950_v24 = vpop.xlane.xlu1 %2949 }
0x1003   :  { %5327 = vrcp.f32 %v2950_v24 }
0x1006   :  { %v2953_v32 = vpop.xlane.xlu0 %2952 }
0x1007   :  { %5329 = vrcp.f32 %v2953_v32 }
0x100a   :  { %v3186_v20 = vpop.xlane.xlu1 %3185 }
0x100b   :  { %5331 = vrcp.f32 %v3186_v20 }
0x100c   :  { %v5326_v33 = vpop.eup %5325 }
0x100d   :  { %v2957_v34 = vmul.f32 %v5326_v33, %v6420_v9 }
0x100e   :  { %v3189_v35 = vpop.xlane.xlu0 %3188 }
0x100f   :  { %5333 = vrcp.f32 %v3189_v35  ;;  %5046 = vmatmul.mubr.msk.f32.vlgmr.msra.gmra.mxu0 %vm1361_vm14, %v2957_v34 }
0x1010   :  { %v5328_v36 = vpop.eup %5327  ;;  %5070 = vmatpush3.msk.msra.mxu0 %vm1413_vm13, %v6414_v59  ;;  %5048 = vmatprep.mubr.msk.f32.mxu0 %vm5368_vm2, %v5367_v6 }
0x1011   :  { %5071 = vmatprep.subr.mxu0 %v5367_v6  ;;  %v2958_v53 = vmul.f32 %v5328_v36, %v6424_v40 }
0x1012   :  { %5072 = vmatpush3.msra.mxu0 %v6416_v23  ;;  %v3192_v37 = vpop.xlane.xlu1 %3191  ;;  %v3706_v49 = vpop.permute.xlu0 %3705 }
0x1013   :  { %5073 = vmatprep.subr.mxu0 %v5367_v6  ;;  %5335 = vrcp.f32 %v3192_v37  ;;  %5049 = vmatmul.mubr.msk.f32.gmra.mxu0 %vm1361_vm14, %v2958_v53 }
0x1014   :  { %v5330_v9 = vpop.eup %5329  ;;  %5074 = vmatpush3.msra.mxu0 %v6418_v8  ;;  %5051 = vmatprep.mubr.msk.f32.mxu0 %vm5368_vm2, %v5367_v6 }
0x1015   :  { %v2959_v59 = vmul.f32 %v5330_v9, %v6429_v46  ;;  %5099 = vmatprep.subr.mxu0 %v5367_v6 }
0x1016   :  { %v3437_v38 = vpop.xlane.xlu1 %3436 }
0x1017   :  { %5337 = vrcp.f32 %v3437_v38  ;;  %5052 = vmatmul.mubr.msk.f32.gmra.mxu0 %vm1361_vm14, %v2959_v59 }
0x1018   :  { %v5332_v23 = vpop.eup %5331  ;;  %5075 = vmatprep.mubr.msk.f32.mxu0 %vm5368_vm2, %v5367_v6 }
0x1019   :  { %v3196_v39 = vmul.f32 %v5332_v23, %v6434_v52 }
0x101a   :  { %v3440_v40 = vpop.xlane.xlu1 %3439 }
0x101b   :  { %5339 = vrcp.f32 %v3440_v40  ;;  %5076 = vmatmul.mubr.msk.f32.vlgmr.msra.gmra.mxu0 %vm1361_vm14, %v3196_v39 }
0x101c   :  { %v5334_v8 = vpop.eup %5333  ;;  %5100 = vmatpush3.msk.msra.mxu0 %vm1413_vm13, %v3455_v15  ;;  %5078 = vmatprep.mubr.msk.f32.mxu0 %vm5368_vm2, %v5367_v6  ;;  %v4433_v15 = vld [vmem:[%s6716_s7 + $0x28] sm:$0xff] }
0x101d   :  { %5101 = vmatprep.subr.mxu0 %v5367_v6  ;;  %v3197_v41 = vmul.f32 %v5334_v8, %v6438_v48 }
0x101e   :  { %5102 = vmatpush3.msra.mxu0 %v3453_v22 }
0x101f   :  { %5103 = vmatprep.subr.mxu0 %v5367_v6  ;;  %5079 = vmatmul.mubr.msk.f32.gmra.mxu0 %vm1361_vm14, %v3197_v41 }
0x1020   :  { %v5336_v42 = vpop.eup %5335  ;;  %5104 = vmatpush3.msra.mxu0 %v3451_v30  ;;  %5081 = vmatprep.mubr.msk.f32.mxu0 %vm5368_vm2, %v5367_v6  ;;  %v4432_v30 = vld [vmem:[%s6716_s7 + $0x20] sm:$0xff] }
0x1021   :  { %v3198_v43 = vmul.f32 %v5336_v42, %v6443_v3  ;;  %5129 = vmatprep.subr.mxu0 %v5367_v6 }
0x1022   :  { %v3688_v45 = vpop.xlane.xlu1 %3687 }
0x1023   :  { %5082 = vmatmul.mubr.msk.f32.gmra.mxu0 %vm1361_vm14, %v3198_v43  ;;  %v4437_v43 = vld [vmem:[%s6717_s8 + $0x1] ss:$0 sm:$0xff] }
0x1024   :  { %v5338_v46 = vpop.eup %5337  ;;  %5105 = vmatprep.mubr.msk.f32.mxu0 %vm5368_vm2, %v5367_v6 }
0x1025   :  { %v3447_v44 = vmul.f32 %v5338_v46, %v6448_v14 }
0x1026   :  { %v3691_v47 = vpop.xlane.xlu1 %3690 }
0x1027   :  { %5106 = vmatmul.mubr.msk.f32.vlgmr.msra.gmra.mxu0 %vm1361_vm14, %v3447_v44 }
0x1028   :  { %v5340_v50 = vpop.eup %5339  ;;  %5130 = vmatpush3.msk.msra.mxu0 %vm1413_vm13, %v3706_v49  ;;  %5108 = vmatprep.mubr.msk.f32.mxu0 %vm5368_vm2, %v5367_v6 }
0x1029   :  { %5131 = vmatprep.subr.mxu0 %v5367_v6  ;;  %v3448_v52 = vmul.f32 %v5340_v50, %v6452_v16 }
0x102a   :  { %v3704_v54 = vpop.permute.xlu1 %3703 }
0x102b   :  { %5109 = vmatmul.mubr.msk.f32.gmra.mxu0 %vm1361_vm14, %v3448_v52 }
0x102c   :  { %5132 = vmatpush3.msra.mxu0 %v3704_v54  ;;  %5111 = vmatprep.mubr.msk.f32.mxu0 %vm5368_vm2, %v5367_v6 }
0x102d   :  { %5133 = vmatprep.subr.mxu0 %v5367_v6 }
0x1043   :  { %v3443_v55 = vpop.xlane.xlu0 %3442 }
0x1044   :  { %5341 = vrcp.f32 %v3443_v55 }
0x1045   :  { %5343 = vrcp.f32 %v3688_v45 }
0x1046   :  { %5345 = vrcp.f32 %v3691_v47 }
0x1051   :  { %v5342_v48 = vpop.eup %5341 }
0x1052   :  { %v3449_v58 = vmul.f32 %v5342_v48, %v6469_v26  ;;  %v5344_v61 = vpop.eup %5343 }
0x1053   :  { %v3698_v51 = vmul.f32 %v5344_v61, %v6456_v19  ;;  %v5346_v5 = vpop.eup %5345 }
0x1054   :  { %5112 = vmatmul.mubr.msk.f32.gmra.mxu0 %vm1361_vm14, %v3449_v58  ;;  %v3699_v7 = vmul.f32 %v5346_v5, %v6460_v0 }
0x1055   :  { %5135 = vmatprep.mubr.msk.f32.mxu0 %vm5368_vm2, %v5367_v6 }
0x1057   :  { %v3694_v57 = vpop.xlane.xlu0 %3693 }
0x1058   :  { %5347 = vrcp.f32 %v3694_v57 }
0x105b   :  { %v3702_v3 = vpop.permute.xlu0 %3701 }
0x105c   :  { %5134 = vmatpush3.msra.mxu0 %v3702_v3 }
0x105d   :  { %5136 = vmatmul.mubr.msk.f32.vlgmr.msra.gmra.mxu0 %vm1361_vm14, %v3698_v51  ;;  %5161 = vmatprep.subr.mxu0 %v5367_v6 }
0x105e   :  { %5138 = vmatprep.mubr.msk.f32.mxu0 %vm5368_vm2, %v5367_v6 }
0x1061   :  { %5139 = vmatmul.mubr.msk.f32.gmra.mxu0 %vm1361_vm14, %v3699_v7 }
0x1062   :  { %5141 = vmatprep.mubr.msk.f32.mxu0 %vm5368_vm2, %v5367_v6 }
0x1065   :  { %v5348_v11 = vpop.eup %5347 }
0x1066   :  { %v3700_v12 = vmul.f32 %v5348_v11, %v6474_v29  ;;  %v4434_v29 = vld [vmem:[%s6716_s7 + $0x30] sm:$0xff] }
0x1067   :  { %5147 = vmatpush3.msra.mxu1 %v4434_v29 }
0x1068   :  { %5142 = vmatmul.mubr.msk.f32.gmra.mxu0 %vm1361_vm14, %v3700_v12  ;;  %5148 = vmatprep.subr.mxu1 %v5367_v6 }
0x1069   :  { %5169 = vmatprep.mubr.msk.f32.mxu0 %vm5368_vm2, %v5367_v6  ;;  %5149 = vmatpush3.msra.mxu1 %v4433_v15 }
0x106a   :  { %5150 = vmatprep.subr.mxu1 %v5367_v6 }
0x106b   :  { %5151 = vmatpush3.msra.mxu1 %v4432_v30 }
0x106c   :  { %5178 = vmatprep.subr.mxu1 %v5367_v6 }
0x10cf   :  { %v3045_v14 = vpop.f32.mrf.mxu0 }
0x10d0   :  { %3059 = vst.msk [vmem:[#allocation2] sm:$0xff] %vm1265_vm12, %v3045_v14 }
0x10d1   :  { %v5047_v60 = vpop.f32.mrf.mxu0 }
0x10d3   :  { %v3050_v56 = vpop.f32.mrf.mxu0 }
0x10d4   :  { %3060 = vst.msk [vmem:[#allocation2 + $0x8] sm:$0xff] %vm1265_vm12, %v3050_v56 }
0x10d5   :  { %v5050_v16 = vpop.f32.mrf.mxu0 }
0x10d7   :  { %v3055_v18 = vpop.f32.mrf.mxu0 }
0x10d8   :  { %3061 = vst.msk [vmem:[#allocation2 + $0x10] sm:$0x7] %vm1498_vm0, %v3055_v18 }
0x10d9   :  { %v5053_v19 = vpop.f32.mrf.mxu0 }
0x10db   :  { %v3284_v4 = vpop.f32.mrf.mxu0 }
0x10dc   :  { %3301 = vrot.lane.b32.xlu1 %v3284_v4, %s5381_s28 }
0x10dd   :  { %v5077_v0 = vpop.f32.mrf.mxu0 }
0x10df   :  { %v3289_v21 = vpop.f32.mrf.mxu0 }
0x10e0   :  { %3303 = vrot.lane.b32.xlu0 %v3289_v21, %s5381_s28  ;;  %v4448_v21 = vld [vmem:[%s6718_s11 + $0x38] sm:$0xff] }
0x10e1   :  { %v5080_v1 = vpop.f32.mrf.mxu0  ;;  %5162 = vmatpush3.msra.mxu0 %v4448_v21 }
0x10e2   :  { %5163 = vmatprep.subr.mxu0 %v5367_v6  ;;  %v4447_v1 = vld [vmem:[%s6718_s11 + $0x30] sm:$0xff] }
0x10e3   :  { %v3294_v25 = vpop.f32.mrf.mxu0  ;;  %5164 = vmatpush3.msra.mxu0 %v4447_v1 }
0x10e4   :  { %5165 = vmatprep.subr.mxu0 %v5367_v6 }
0x10e5   :  { %v5083_v26 = vpop.f32.mrf.mxu0 }
0x10e6   :  { %v4445_v26 = vld [vmem:[%s6718_s11 + $0x20] sm:$0xff] }
0x10e7   :  { %v3535_v22 = vpop.f32.mrf.mxu0 }
0x10e8   :  { %3552 = vrot.lane.b32.xlu0 %v3535_v22, %s5370_s19 }
0x10e9   :  { %v5107_v27 = vpop.f32.mrf.mxu0 }
0x10eb   :  { %v3540_v10 = vpop.f32.mrf.mxu0 }
0x10ec   :  { %3554 = vrot.lane.b32.xlu1 %v3540_v10, %s5370_s19 }
0x10ed   :  { %v5110_v17 = vpop.f32.mrf.mxu0 }
0x1114   :  { %v3545_v13 = vpop.f32.mrf.mxu0 }
0x1116   :  { %v5113_v31 = vpop.f32.mrf.mxu0 }
0x111d   :  { %v3786_v24 = vpop.f32.mrf.mxu0 }
0x111e   :  { %3803 = vrot.lane.b32.xlu1 %v3786_v24, %s6744_s26  ;;  %v4443_v24 = vld [vmem:[%s6719_s9 + $0x1] ss:$0 sm:$0xff] }
0x111f   :  { %v5137_v32 = vpop.f32.mrf.mxu0 }
0x1121   :  { %v3791_v20 = vpop.f32.mrf.mxu0 }
0x1122   :  { %3305 = vrot.lane.b32.xlu1 %v3294_v25, %s5381_s28  ;;  %3805 = vrot.lane.b32.xlu0 %v3791_v20, %s6744_s26  ;;  %v4446_v25 = vld [vmem:[%s6718_s11 + $0x28] sm:$0xff]  ;;  %v4444_v20 = vld [vmem:[%s6720_s10 + $0x1] ss:$0 sm:$0xff] }
0x1123   :  { %v5140_v33 = vpop.f32.mrf.mxu0  ;;  %5166 = vmatpush3.msra.mxu0 %v4446_v25 }
0x1124   :  { %5167 = vmatprep.subr.mxu0 %v5367_v6 }
0x1125   :  { %5168 = vmatpush3.msra.mxu0 %v4445_v26 }
0x1126   :  { %3556 = vrot.lane.b32.xlu0 %v3545_v13, %s5370_s19 }
0x1128   :  { %v3796_v34 = vpop.f32.mrf.mxu0 }
0x1129   :  { %3807 = vrot.lane.b32.xlu1 %v3796_v34, %s6744_s26 }
0x112a   :  { %v5143_v35 = vpop.f32.mrf.mxu0 }
0x114e   :  { %v3302_v36 = vpop.permute.xlu1 %3301 }
0x114f   :  { %3310 = vst.msk [vmem:[#allocation2] sm:$0xff] %vm1748_vm1, %v3302_v36 }
0x1152   :  { %v3304_v53 = vpop.permute.xlu0 %3303 }
0x1153   :  { %3311 = vst.msk [vmem:[#allocation2 + $0x8] sm:$0xff] %vm1748_vm1, %v3304_v53 }
0x115a   :  { %v3553_v37 = vpop.permute.xlu0 %3552 }
0x115b   :  { %3561 = vst.msk [vmem:[#allocation2] sm:$0xff] %vm2001_vm3, %v3553_v37 }
0x115e   :  { %v3555_v9 = vpop.permute.xlu1 %3554 }
0x115f   :  { %3562 = vst.msk [vmem:[#allocation2 + $0x8] sm:$0xff] %vm2001_vm3, %v3555_v9 }
0x1190   :  { %v3804_v59 = vpop.permute.xlu1 %3803 }
0x1191   :  { %3812 = vst.msk [vmem:[#allocation2] sm:$0xff] %vm2254_vm4, %v3804_v59 }
0x1194   :  { %v3306_v38 = vpop.permute.xlu1 %3305  ;;  %v3806_v23 = vpop.permute.xlu0 %3805 }
0x1195   :  { %3312 = vst.msk [vmem:[#allocation2 + $0x10] sm:$0x7] %vm1751_vm5, %v3306_v38 }
0x1196   :  { %3813 = vst.msk [vmem:[#allocation2 + $0x8] sm:$0xff] %vm2254_vm4, %v3806_v23 }
0x1198   :  { %v3557_v39 = vpop.permute.xlu0 %3556  ;;  %v3815_v40 = vld [vmem:[#allocation2] sm:$0xff] }
0x1199   :  { %3563 = vst.msk [vmem:[#allocation2 + $0x10] sm:$0x7] %vm2004_vm6, %v3557_v39  ;;  %5153 = vmatmul.mubr.msk.f32.vlgmr.msra.gmra.mxu1 %vm1093_vm10, %v3815_v40  ;;  %v4461_v39 = vld [vmem:[%s6721_s13 + $0x78] sm:$0xff]  ;;  %v4460_v40 = vld [vmem:[%s6721_s13 + $0x70] sm:$0xff] }
0x119a   :  { %5155 = vmatprep.mubr.msk.f32.mxu1 %vm5368_vm2, %v5367_v6  ;;  %5179 = vmatpush3.msra.mxu1 %v4461_v39 }
0x119b   :  { %v3808_v8 = vpop.permute.xlu1 %3807  ;;  %5180 = vmatprep.subr.mxu1 %v5367_v6 }
0x119c   :  { %3814 = vst.msk [vmem:[#allocation2 + $0x10] sm:$0x7] %vm2257_vm7, %v3808_v8  ;;  %5181 = vmatpush3.msra.mxu1 %v4460_v40  ;;  %v4459_v8 = vld [vmem:[%s6721_s13 + $0x68] sm:$0xff] }
0x119d   :  { %v3816_v41 = vld [vmem:[#allocation2 + $0x8] sm:$0xff]  ;;  %5182 = vmatprep.subr.mxu1 %v5367_v6 }
0x119e   :  { %5156 = vmatmul.mubr.msk.f32.gmra.mxu1 %vm1093_vm10, %v3816_v41  ;;  %v4458_v41 = vld [vmem:[%s6721_s13 + $0x60] sm:$0xff] }
0x119f   :  { %5158 = vmatprep.mubr.msk.f32.mxu1 %vm5368_vm2, %v5367_v6  ;;  %5183 = vmatpush3.msra.mxu1 %v4459_v8 }
0x11a0   :  { %5184 = vmatprep.subr.mxu1 %v5367_v6 }
0x11a1   :  { %5185 = vmatpush3.msra.mxu1 %v4458_v41 }
0x11a2   :  { %5186 = vmatprep.subr.mxu1 %v5367_v6 }
0x11a3   :  { %v3817_v42 = vld [vmem:[#allocation2 + $0x10] sm:$0x7] }
0x11a4   :  { %5159 = vmatmul.mubr.msk.f32.gmra.mxu1 %vm1093_vm10, %v3817_v42  ;;  %v4457_v42 = vld [vmem:[%s6721_s13 + $0x58] sm:$0xff] }
0x11a5   :  { %5194 = vmatprep.mubr.msk.f32.mxu1 %vm5368_vm2, %v5367_v6  ;;  %5187 = vmatpush3.msra.mxu1 %v4457_v42 }
0x11a6   :  { %5188 = vmatprep.subr.mxu1 %v5367_v6 }
0x1259   :  { %v3906_v45 = vpop.f32.mrf.mxu1 }
0x125a   :  { %v3907_v46 = vadd.f32 %v4437_v43, %v3906_v45  ;;  %v4455_v45 = vld [vmem:[%s6721_s13 + $0x48] sm:$0xff] }
0x125b   :  { %v5154_v44 = vpop.f32.mrf.mxu1 }
0x125c   :  { %v3920_v47 = vadd.f32 %v3907_v46, %v6239_v63  ;;  %v4454_v46 = vld [vmem:[%s6721_s13 + $0x40] sm:$0xff] }
0x125d   :  { %v4450_v44 = vld [vmem:[%s6722_s12 + $0x1] ss:$0 sm:$0xff] }
0x125e   :  { %v3911_v49 = vpop.f32.mrf.mxu1  ;;  %v3927_v52 = vsel %vm1093_vm10, %v3920_v47, 0.0 }
0x125f   :  { %v3912_v50 = vadd.f32 %v4437_v43, %v3911_v49  ;;  %3928 = vadd.xlane.f32.xlu0 %v3927_v52 }
0x1260   :  { %v5157_v54 = vpop.f32.mrf.mxu1 }
0x1261   :  { %v3921_v55 = vadd.f32 %v3912_v50, %v6245_v62 }
0x1263   :  { %v3930_v48 = vsel %vm1093_vm10, %v3921_v55, 0.0 }
0x1264   :  { %3931 = vadd.xlane.f32.xlu1 %v3930_v48  ;;  %v3916_v58 = vpop.f32.mrf.mxu1 }
0x1265   :  { %v3917_v57 = vadd.f32 %v4437_v43, %v3916_v58  ;;  %v4456_v43 = vld [vmem:[%s6721_s13 + $0x50] sm:$0xff] }
0x1266   :  { %v5160_v61 = vpop.f32.mrf.mxu1  ;;  %5189 = vmatpush3.msra.mxu1 %v4456_v43 }
0x1267   :  { %v3922_v51 = vadd.f32 %v3917_v57, %v6251_v2  ;;  %5190 = vmatprep.subr.mxu1 %v5367_v6 }
0x1268   :  { %5191 = vmatpush3.msra.mxu1 %v4455_v45 }
0x1269   :  { %v3933_v3 = vsel %vm1100_vm11, %v3922_v51, 0.0  ;;  %5192 = vmatprep.subr.mxu1 %v5367_v6 }
0x126a   :  { %3934 = vadd.xlane.f32.xlu0 %v3933_v3  ;;  %5193 = vmatpush3.msra.mxu1 %v4454_v46 }
0x12e8   :  { %v3929_v63 = vpop.xlane.xlu0 %3928 }
0x12e9   :  { %v3936_v5 = vmul.f32 0.03125, %v3929_v63 }
0x12eb   :  { %v3939_v7 = vsub.f32 %v3920_v47, %v3936_v5 }
0x12ed   :  { %v3932_v11 = vpop.xlane.xlu1 %3931  ;;  %v3942_v14 = vmul.f32 %v3939_v7, %v3939_v7 }
0x12ee   :  { %v3937_v12 = vmul.f32 0.03125, %v3932_v11 }
0x12ef   :  { %v3945_v62 = vsel %vm1093_vm10, %v3942_v14, 0.0 }
0x12f0   :  { %v3940_v60 = vsub.f32 %v3921_v55, %v3937_v12  ;;  %3946 = vadd.xlane.f32.xlu0 %v3945_v62 }
0x12f2   :  { %v3943_v56 = vmul.f32 %v3940_v60, %v3940_v60 }
0x12f3   :  { %v3935_v16 = vpop.xlane.xlu0 %3934 }
0x12f4   :  { %v3948_v18 = vsel %vm1093_vm10, %v3943_v56, 0.0  ;;  %v3938_v19 = vmul.f32 0.03125, %v3935_v16 }
0x12f5   :  { %3949 = vadd.xlane.f32.xlu1 %v3948_v18 }
0x12f6   :  { %v3941_v2 = vsub.f32 %v3922_v51, %v3938_v19 }
0x12f8   :  { %v3944_v4 = vmul.f32 %v3941_v2, %v3941_v2 }
0x12fa   :  { %v3951_v0 = vsel %vm1100_vm11, %v3944_v4, 0.0 }
0x12fb   :  { %3952 = vadd.xlane.f32.xlu0 %v3951_v0 }
0x1379   :  { %v3947_v22 = vpop.xlane.xlu0 %3946 }
0x137a   :  { %v3954_v27 = vmul.f32 0.03125, %v3947_v22 }
0x137c   :  { %v3957_v10 = vadd.f32 1e-05, %v3954_v27 }
0x137e   :  { %v3950_v17 = vpop.xlane.xlu1 %3949  ;;  %5349 = vrsqrt.f32 %v3957_v10 }
0x137f   :  { %v3955_v28 = vmul.f32 0.03125, %v3950_v17 }
0x1381   :  { %v3958_v29 = vadd.f32 1e-05, %v3955_v28 }
0x1383   :  { %5351 = vrsqrt.f32 %v3958_v29  ;;  %v4463_v29 = vld [vmem:[%s6723_s14 + $0x1] ss:$0 sm:$0xff] }
0x1384   :  { %v3953_v13 = vpop.xlane.xlu0 %3952 }
0x1385   :  { %v3956_v15 = vmul.f32 0.03125, %v3953_v13 }
0x1387   :  { %v3959_v30 = vadd.f32 1e-05, %v3956_v15 }
0x1389   :  { %5353 = vrsqrt.f32 %v3959_v30 }
0x138b   :  { %v5350_v31 = vpop.eup %5349 }
0x138c   :  { %v3963_v32 = vmul.f32 %v5350_v31, %v3939_v7 }
0x138e   :  { %v3972_v33 = vmul.f32 %v4443_v24, %v3963_v32 }
0x1390   :  { %v5352_v34 = vpop.eup %5351  ;;  %v6622_v35 = vadd.f32 %v4444_v20, %v3972_v33 }
0x1391   :  { %v3964_v36 = vmul.f32 %v5352_v34, %v3940_v60 }
0x1392   :  { %5170 = vmatmul.mubr.msk.f32.vlgmr.msra.gmra.mxu0 %vm1093_vm10, %v6622_v35 }
0x1393   :  { %v3973_v53 = vmul.f32 %v4443_v24, %v3964_v36  ;;  %5172 = vmatprep.mubr.msk.f32.mxu0 %vm5368_vm2, %v5367_v6 }
0x1395   :  { %v6628_v37 = vadd.f32 %v4444_v20, %v3973_v53 }
0x1396   :  { %v5354_v9 = vpop.eup %5353 }
0x1397   :  { %5173 = vmatmul.mubr.msk.f32.gmra.mxu0 %vm1093_vm10, %v6628_v37  ;;  %v3965_v59 = vmul.f32 %v5354_v9, %v3941_v2 }
0x1398   :  { %5175 = vmatprep.mubr.msk.f32.mxu0 %vm5368_vm2, %v5367_v6 }
0x1399   :  { %v3974_v38 = vmul.f32 %v4443_v24, %v3965_v59 }
0x139b   :  { %v6634_v23 = vadd.f32 %v4444_v20, %v3974_v38 }
0x139d   :  { %5176 = vmatmul.mubr.msk.f32.gmra.mxu0 %vm1093_vm10, %v6634_v23 }
0x1452   :  { %v4072_v47 = vpop.f32.mrf.mxu0 }
0x1453   :  { %v4073_v49 = vadd.f32 %v4450_v44, %v4072_v47 }
0x1454   :  { %v5171_v50 = vpop.f32.mrf.mxu0 }
0x1455   :  { %v4089_v52 = vmul.f32 0.044715, %v4073_v49  ;;  %v4086_v4 = vmul.f32 0.5, %v4073_v49 }
0x1457   :  { %v4077_v54 = vpop.f32.mrf.mxu0  ;;  %v4092_v55 = vmul.f32 %v4089_v52, %v4073_v49 }
0x1458   :  { %v4078_v48 = vadd.f32 %v4450_v44, %v4077_v54 }
0x1459   :  { %v5174_v58 = vpop.f32.mrf.mxu0  ;;  %v4095_v57 = vmul.f32 %v4092_v55, %v4073_v49 }
0x145a   :  { %v4090_v61 = vmul.f32 0.044715, %v4078_v48  ;;  %v4087_v25 = vmul.f32 0.5, %v4078_v48 }
0x145b   :  { %v4098_v51 = vadd.f32 %v4095_v57, %v4073_v49 }
0x145c   :  { %v4093_v3 = vmul.f32 %v4090_v61, %v4078_v48 }
0x145d   :  { %v4101_v63 = vmul.f32 0.7978846, %v4098_v51  ;;  %v4082_v7 = vpop.f32.mrf.mxu0 }
0x145e   :  { %v4096_v5 = vmul.f32 %v4093_v3, %v4078_v48  ;;  %v4083_v11 = vadd.f32 %v4450_v44, %v4082_v7 }
0x145f   :  { %5355 = vtanh.f32 %v4101_v63  ;;  %v5177_v14 = vpop.f32.mrf.mxu0 }
0x1460   :  { %v4099_v12 = vadd.f32 %v4096_v5, %v4078_v48  ;;  %v4091_v60 = vmul.f32 0.044715, %v4083_v11  ;;  %v4088_v10 = vmul.f32 0.5, %v4083_v11  ;;  %v4469_v5 = vld [vmem:[%s6724_s15 + $0x1] ss:$0 sm:$0xff] }
0x1462   :  { %v4102_v62 = vmul.f32 0.7978846, %v4099_v12  ;;  %v4094_v56 = vmul.f32 %v4091_v60, %v4083_v11 }
0x1464   :  { %5357 = vtanh.f32 %v4102_v62  ;;  %v4097_v16 = vmul.f32 %v4094_v56, %v4083_v11 }
0x1466   :  { %v4100_v18 = vadd.f32 %v4097_v16, %v4083_v11  ;;  %v4470_v11 = vld [vmem:[%s6725_s16 + $0x1] ss:$0 sm:$0xff] }
0x1468   :  { %v4103_v19 = vmul.f32 0.7978846, %v4100_v18 }
0x146a   :  { %5359 = vtanh.f32 %v4103_v19 }
0x146c   :  { %v5356_v2 = vpop.eup %5355 }
0x146d   :  { %v4107_v0 = vadd.f32 1.0, %v5356_v2 }
0x146f   :  { %v4110_v21 = vmul.f32 %v4107_v0, %v4086_v4 }
0x1471   :  { %v5358_v1 = vpop.eup %5357  ;;  %5195 = vmatmul.mubr.msk.f32.vlgmr.msra.gmra.mxu1 %vm2566_vm8, %v4110_v21 }
0x1472   :  { %v4108_v26 = vadd.f32 1.0, %v5358_v1  ;;  %5197 = vmatprep.mubr.msk.f32.mxu1 %vm5368_vm2, %v5367_v6 }
0x1474   :  { %v4111_v22 = vmul.f32 %v4108_v26, %v4087_v25 }
0x1476   :  { %5198 = vmatmul.mubr.msk.f32.gmra.mxu1 %vm2566_vm8, %v4111_v22 }
0x1477   :  { %5200 = vmatprep.mubr.msk.f32.mxu1 %vm5368_vm2, %v5367_v6  ;;  %v5360_v27 = vpop.eup %5359 }
0x1478   :  { %v4109_v17 = vadd.f32 1.0, %v5360_v27 }
0x147a   :  { %v4112_v28 = vmul.f32 %v4109_v17, %v4088_v10 }
0x147c   :  { %5201 = vmatmul.mubr.msk.f32.gmra.mxu1 %vm2566_vm8, %v4112_v28 }
0x1531   :  { %v4205_v13 = vpop.f32.mrf.mxu1 }
0x1532   :  { %v4206_v15 = vadd.f32 %v4463_v29, %v4205_v13 }
0x1533   :  { %v5196_v30 = vpop.f32.mrf.mxu1 }
0x1534   :  { %v4219_v31 = vadd.f32 %v4206_v15, %v6622_v35 }
0x1536   :  { %v4210_v24 = vpop.f32.mrf.mxu1  ;;  %v4226_v20 = vsel %vm1093_vm10, %v4219_v31, 0.0 }
0x1537   :  { %v4211_v32 = vadd.f32 %v4463_v29, %v4210_v24  ;;  %4227 = vadd.xlane.f32.xlu1 %v4226_v20 }
0x1538   :  { %v5199_v6 = vpop.f32.mrf.mxu1 }
0x1539   :  { %v4220_v33 = vadd.f32 %v4211_v32, %v6628_v37 }
0x153b   :  { %v4229_v34 = vsel %vm1093_vm10, %v4220_v33, 0.0 }
0x153c   :  { %4230 = vadd.xlane.f32.xlu0 %v4229_v34  ;;  %v4215_v36 = vpop.f32.mrf.mxu1 }
0x153d   :  { %v4216_v53 = vadd.f32 %v4463_v29, %v4215_v36 }
0x153e   :  { %v5202_v9 = vpop.f32.mrf.mxu1 }
0x153f   :  { %v4221_v59 = vadd.f32 %v4216_v53, %v6634_v23 }
0x1541   :  { %v4232_v38 = vsel %vm1100_vm11, %v4221_v59, 0.0 }
0x1542   :  { %4233 = vadd.xlane.f32.xlu1 %v4232_v38 }
0x15c0   :  { %v4228_v35 = vpop.xlane.xlu1 %4227 }
0x15c1   :  { %v4235_v39 = vmul.f32 0.03125, %v4228_v35 }
0x15c3   :  { %v4238_v40 = vsub.f32 %v4219_v31, %v4235_v39 }
0x15c5   :  { %v4231_v8 = vpop.xlane.xlu0 %4230  ;;  %v4241_v42 = vmul.f32 %v4238_v40, %v4238_v40 }
0x15c6   :  { %v4236_v41 = vmul.f32 0.03125, %v4231_v8 }
0x15c7   :  { %v4244_v37 = vsel %vm1093_vm10, %v4241_v42, 0.0 }
0x15c8   :  { %v4239_v43 = vsub.f32 %v4220_v33, %v4236_v41  ;;  %4245 = vadd.xlane.f32.xlu0 %v4244_v37 }
0x15ca   :  { %v4242_v45 = vmul.f32 %v4239_v43, %v4239_v43 }
0x15cb   :  { %v4234_v46 = vpop.xlane.xlu1 %4233 }
0x15cc   :  { %v4247_v44 = vsel %vm1093_vm10, %v4242_v45, 0.0  ;;  %v4237_v47 = vmul.f32 0.03125, %v4234_v46 }
0x15cd   :  { %4248 = vadd.xlane.f32.xlu1 %v4247_v44 }
0x15ce   :  { %v4240_v23 = vsub.f32 %v4221_v59, %v4237_v47 }
0x15d0   :  { %v4243_v49 = vmul.f32 %v4240_v23, %v4240_v23 }
0x15d2   :  { %v4250_v50 = vsel %vm1100_vm11, %v4243_v49, 0.0 }
0x15d3   :  { %4251 = vadd.xlane.f32.xlu0 %v4250_v50 }
0x1651   :  { %v4246_v52 = vpop.xlane.xlu0 %4245 }
0x1652   :  { %v4253_v54 = vmul.f32 0.03125, %v4246_v52 }
0x1654   :  { %v4256_v55 = vadd.f32 1e-05, %v4253_v54 }
0x1656   :  { %v4249_v48 = vpop.xlane.xlu1 %4248  ;;  %5361 = vrsqrt.f32 %v4256_v55 }
0x1657   :  { %v4254_v58 = vmul.f32 0.03125, %v4249_v48 }
0x1659   :  { %v4257_v57 = vadd.f32 1e-05, %v4254_v58 }
0x165b   :  { %5363 = vrsqrt.f32 %v4257_v57 }
0x165c   :  { %v4252_v61 = vpop.xlane.xlu0 %4251 }
0x165d   :  { %v4255_v51 = vmul.f32 0.03125, %v4252_v61 }
0x165f   :  { %v4258_v3 = vadd.f32 1e-05, %v4255_v51 }
0x1661   :  { %5365 = vrsqrt.f32 %v4258_v3 }
0x1663   :  { %v5362_v63 = vpop.eup %5361 }
0x1664   :  { %v4262_v7 = vmul.f32 %v5362_v63, %v4238_v40 }
0x1666   :  { %v4271_v12 = vmul.f32 %v4469_v5, %v4262_v7 }
0x1668   :  { %v5364_v14 = vpop.eup %5363  ;;  %v4280_v60 = vadd.f32 %v4470_v11, %v4271_v12 }
0x1669   :  { %v4263_v62 = vmul.f32 %v5364_v14, %v4239_v43 }
0x166a   :  { %4283 = vst.msk [vmem:[%s6726_s17] sm:$0xff] %vm1093_vm10, %v4280_v60 }
0x166b   :  { %v4272_v56 = vmul.f32 %v4469_v5, %v4263_v62 }
0x166d   :  { %v4281_v16 = vadd.f32 %v4470_v11, %v4272_v56 }
0x166e   :  { %v5366_v18 = vpop.eup %5365 }
0x166f   :  { %4284 = vst.msk [vmem:[%s6726_s17 + $0x8] sm:$0xff] %vm1093_vm10, %v4281_v16  ;;  %v4264_v19 = vmul.f32 %v5366_v18, %v4240_v23 }
0x1671   :  { %v4273_v2 = vmul.f32 %v4469_v5, %v4264_v19 }
0x1673   :  { %v4282_v4 = vadd.f32 %v4470_v11, %v4273_v2 }
0x1675   :  { %4285 = vst.msk [vmem:[%s6726_s17 + $0x10] sm:$0x7] %vm1100_vm11, %v4282_v4 }

</bundles_post_ra>
